<compile_context>
chip_gen: v5e
topology: v5e:2x2
jax: 0.10.0
libtpu: 0.0.40
codegen_flags: <defaults>
</compile_context>

<pallas_src>
import functools

import jax
import jax.numpy as jnp
import numpy as np
from jax.experimental import pallas as pl
from jax.experimental.pallas import tpu as pltpu

NEG_SLOPE = 0.2


def _pad_into(dst_ref, val):
    """Zero a (H+2, W+2, C) VMEM scratch and write the (H, W, C) value into its interior."""
    H, W, _ = val.shape
    dst_ref[...] = jnp.zeros_like(dst_ref)
    dst_ref[1:H + 1, 1:W + 1, :] = val


def _conv3x3_lrelu(xp_ref, w_ref, b_ref, H, W):
    """3x3 'same' conv + bias + LeakyReLU(0.2) on a padded VMEM scratch.

    xp_ref: (H+2, W+2, C) padded activation (VMEM scratch)
    w_ref : (9*C, Cout) flattened taps, tap-major (tap = dy*3 + dx), channel-minor
    b_ref : (1, Cout) float32
    returns (H*W, Cout) float32
    """
    C = xp_ref.shape[-1]
    cout = w_ref.shape[-1]
    acc = jnp.zeros((H * W, cout), jnp.float32)
    # Hoist the dx shifts: they move data along the sublane (W) axis and are the only
    # relayout-costly slices -> 3 instead of 9.  The dy slices are leading-axis picks
    # (free) and the reshape keeps the lane dim, so it is layout-preserving.
    for dx in range(3):
        band = xp_ref[:, dx:dx + W, :]                         # (H+2, W, C)
        for dy in range(3):
            tap = dy * 3 + dx
            patch = band[dy:dy + H].reshape(H * W, C)          # free reshape
            acc += jnp.dot(patch, w_ref[tap * C:(tap + 1) * C, :],
                           preferred_element_type=jnp.float32)
    acc += b_ref[0][None, :]
    return jnp.where(acc > 0, acc, NEG_SLOPE * acc)            # LeakyReLU(0.2)


def agent_conv_block_kernel(x_ref, w1_ref, b1_ref, w2_ref, b2_ref, o_ref,
                            xp_ref, h1p_ref, *, H, W):
    cout = w1_ref.shape[-1]

    # ---- conv1 + LeakyReLU (in-kernel zero padding, no HBM round trip for the pad) ----
    _pad_into(xp_ref, x_ref[0])
    h1 = _conv3x3_lrelu(xp_ref, w1_ref, b1_ref, H, W)          # (H*W, Cout) f32

    # ---- conv2 + LeakyReLU (h1 never leaves VMEM: written straight into scratch) ----
    _pad_into(h1p_ref, h1.reshape(H, W, cout).astype(h1p_ref.dtype))
    h2 = _conv3x3_lrelu(h1p_ref, w2_ref, b2_ref, H, W)         # (H*W, Cout) f32

    # ---- fused 2x2 average pool: reduce H first (leading-axis split), then W ----
    r = h2.reshape(H // 2, 2, W, cout)
    hsum = r[:, 0] + r[:, 1]                                   # (H//2, W, Cout)
    r2 = hsum.reshape(H // 2, W // 2, 2, cout)
    pooled = (r2[:, :, 0, :] + r2[:, :, 1, :]) * 0.25          # (H//2, W//2, Cout)
    o_ref[0] = pooled.reshape((H // 2) * (W // 2), cout).astype(o_ref.dtype)


def agent_conv_block(x_nchw, params, *, compute_dtype=jnp.float32):
    """Forward pass matching the PyTorch AgentConvBlock. Input/output are NCHW."""
    x = jnp.transpose(x_nchw, (0, 2, 3, 1)).astype(compute_dtype)   # -> NHWC
    N, H, W, cin = x.shape
    assert H % 2 == 0 and W % 2 == 0, "AvgPool2d(2) fusion assumes even H and W"
    cout = params["w1"].shape[-1]
    H2, W2 = H // 2, W // 2

    # Flatten (9, Cin, Cout) -> (9*Cin, Cout): one small 2-D VMEM-resident weight tile.
    w1 = params["w1"].reshape(9 * cin, cout).astype(compute_dtype)
    w2 = params["w2"].reshape(9 * cout, cout).astype(compute_dtype)
    b1 = params["b1"].astype(jnp.float32)
    b2 = params["b2"].astype(jnp.float32)

    # NOTE on the output block: with Cout=8 the last dim is narrow (masked stores), but
    # flattening to a >=128-lane slab would need a lane-dim-changing relayout that costs
    # more than the ~2 KiB of masked stores it saves at this size; at realistic channel
    # counts (Cout >= 128) this layout is already lane-dense.
    # For large H/W (esp. v7x's 64 MiB VMEM) add an H-row-tile grid axis with a 1-row
    # halo and set pltpu.CompilerParams(vmem_limit_bytes=...); not needed at 16x16.
    kern = functools.partial(agent_conv_block_kernel, H=H, W=W)
    out = pl.pallas_call(
        kern,
        out_shape=jax.ShapeDtypeStruct((N, H2 * W2, cout), jnp.float32),
        grid=(N,),
        in_specs=[
            pl.BlockSpec((1, H, W, cin), lambda n: (n, 0, 0, 0)),
            pl.BlockSpec((9 * cin, cout), lambda n: (0, 0)),
            pl.BlockSpec((1, cout), lambda n: (0, 0)),
            pl.BlockSpec((9 * cout, cout), lambda n: (0, 0)),
            pl.BlockSpec((1, cout), lambda n: (0, 0)),
        ],
        out_specs=pl.BlockSpec((1, H2 * W2, cout), lambda n: (n, 0, 0)),
        scratch_shapes=[
            pltpu.VMEM((H + 2, W + 2, cin), compute_dtype),    # padded input
            pltpu.VMEM((H + 2, W + 2, cout), compute_dtype),   # padded h1 (VMEM-only)
        ],
        compiler_params=pltpu.CompilerParams(
            dimension_semantics=("parallel",)),                # batch shards across 2 TCs (v7x)
    )(x, w1, b1, w2, b2)

    out = out.reshape(N, H2, W2, cout)
    return jnp.transpose(out, (0, 3, 1, 2))                    # -> NCHW


def init_params(key, nin, nout, ksize=3):
    """Deterministic PyTorch-style uniform init (kaiming-uniform-ish bounds)."""
    k1, k2, k3, k4 = jax.random.split(key, 4)
    b1 = 1.0 / np.sqrt(nin * ksize * ksize)
    b2 = 1.0 / np.sqrt(nout * ksize * ksize)
    w1 = jax.random.uniform(k1, (ksize * ksize, nin, nout), jnp.float32, -b1, b1)
    bias1 = jax.random.uniform(k2, (1, nout), jnp.float32, -b1, b1)
    w2 = jax.random.uniform(k3, (ksize * ksize, nout, nout), jnp.float32, -b2, b2)
    bias2 = jax.random.uniform(k4, (1, nout), jnp.float32, -b2, b2)
    return {"w1": w1, "b1": bias1, "w2": w2, "b2": bias2}


def reference_forward(x_nchw, params):
    """Pure-JAX reference (lax.conv) for correctness checking."""
    def conv(x, w_flat, b):
        kk, ci, co = w_flat.shape
        w = w_flat.reshape(3, 3, ci, co)
        y = jax.lax.conv_general_dilated(
            x, w, window_strides=(1, 1), padding=((1, 1), (1, 1)),
            dimension_numbers=("NHWC", "HWIO", "NHWC"))
        return y + b.reshape(1, 1, 1, -1)

    x = jnp.transpose(x_nchw, (0, 2, 3, 1)).astype(jnp.float32)
    h = conv(x, params["w1"], params["b1"])
    h = jnp.where(h > 0, h, NEG_SLOPE * h)
    h = conv(h, params["w2"], params["b2"])
    h = jnp.where(h > 0, h, NEG_SLOPE * h)
    N, H, W, C = h.shape
    h = h.reshape(N, H // 2, 2, W // 2, 2, C).mean(axis=(2, 4))
    return jnp.transpose(h, (0, 3, 1, 2))


if __name__ == "__main__":
    nin, nout = 4, 8
    N, H, W = 2, 16, 16

    key = jax.random.PRNGKey(0)
    kx, kp = jax.random.split(key)
    x = jax.random.normal(kx, (N, nin, H, W), jnp.float32)
    params = init_params(kp, nin, nout)

    out = agent_conv_block(x, params)          # f32 for a tight numeric check
    out = jax.block_until_ready(out)

    ref = jax.block_until_ready(reference_forward(x, params))
    assert out.shape == (N, nout, H // 2, W // 2), out.shape
    np.testing.assert_allclose(np.asarray(out), np.asarray(ref), atol=2e-4, rtol=2e-4)

    print("KERNEL_OK")
</pallas_src>

<mosaic_0001>
module attributes {stable_mosaic.version = 11 : i64} {
  func.func @agent_conv_block_kernel(%arg0: i32, %arg1: memref<1x16x16x4xf32, #tpu.memory_space<vmem>>, %arg2: memref<36x8xf32, #tpu.memory_space<vmem>>, %arg3: memref<1x8xf32, #tpu.memory_space<vmem>>, %arg4: memref<72x8xf32, #tpu.memory_space<vmem>>, %arg5: memref<1x8xf32, #tpu.memory_space<vmem>>, %arg6: memref<1x64x8xf32, #tpu.memory_space<vmem>>, %arg7: memref<18x18x4xf32, #tpu.memory_space<vmem>>, %arg8: memref<18x18x8xf32, #tpu.memory_space<vmem>>) attributes {dimension_semantics = [#tpu.dimension_semantics<parallel>], iteration_bounds = array<i64: 2>, scalar_prefetch = 0 : i64, scratch_operands = 2 : i64, tpu.core_type = #tpu.core_type<tc>, window_params = [{transform_indices = @transform_0, window_bounds = array<i64: 1, 16, 16, 4>}, {pipeline_mode = #tpu.pipeline_mode<synchronous>, transform_indices = @transform_1, window_bounds = array<i64: 36, 8>}, {pipeline_mode = #tpu.pipeline_mode<synchronous>, transform_indices = @transform_2, window_bounds = array<i64: 1, 8>}, {pipeline_mode = #tpu.pipeline_mode<synchronous>, transform_indices = @transform_3, window_bounds = array<i64: 72, 8>}, {pipeline_mode = #tpu.pipeline_mode<synchronous>, transform_indices = @transform_4, window_bounds = array<i64: 1, 8>}, {transform_indices = @transform_5, window_bounds = array<i64: 1, 64, 8>}]} {
    %c0 = arith.constant 0 : index
    %c0_0 = arith.constant 0 : index
    %c0_1 = arith.constant 0 : index
    %c0_2 = arith.constant 0 : index
    %0 = vector.load %arg1[%c0, %c0_0, %c0_1, %c0_2] : memref<1x16x16x4xf32, #tpu.memory_space<vmem>>, vector<1x16x16x4xf32>
    %1 = vector.shape_cast %0 : vector<1x16x16x4xf32> to vector<16x16x4xf32>
    %cst = arith.constant 0.000000e+00 : f32
    %2 = vector.broadcast %cst : f32 to vector<18x18x4xf32>
    %c0_3 = arith.constant 0 : index
    %c0_4 = arith.constant 0 : index
    %c0_5 = arith.constant 0 : index
    %3 = vector.load %arg7[%c0_3, %c0_4, %c0_5] : memref<18x18x4xf32, #tpu.memory_space<vmem>>, vector<18x18x4xf32>
    tpu.vector_store %arg7[%c0_3, %c0_4, %c0_5], %2 {strides = array<i32>} : memref<18x18x4xf32, #tpu.memory_space<vmem>>, vector<18x18x4xf32>,
    %c1 = arith.constant 1 : index
    %c1_6 = arith.constant 1 : index
    %c0_7 = arith.constant 0 : index
    %4 = vector.load %arg7[%c1, %c1_6, %c0_7] : memref<18x18x4xf32, #tpu.memory_space<vmem>>, vector<16x16x4xf32>
    tpu.vector_store %arg7[%c1, %c1_6, %c0_7], %1 {strides = array<i32>} : memref<18x18x4xf32, #tpu.memory_space<vmem>>, vector<16x16x4xf32>,
    %cst_8 = arith.constant 0.000000e+00 : f32
    %5 = vector.broadcast %cst_8 : f32 to vector<256x8xf32>
    %c0_9 = arith.constant 0 : index
    %c0_10 = arith.constant 0 : index
    %c0_11 = arith.constant 0 : index
    %6 = vector.load %arg7[%c0_9, %c0_10, %c0_11] : memref<18x18x4xf32, #tpu.memory_space<vmem>>, vector<18x16x4xf32>
    %7 = vector.extract_strided_slice %6 {offsets = [0, 0, 0], sizes = [16, 16, 4], strides = [1, 1, 1]} : vector<18x16x4xf32> to vector<16x16x4xf32>
    %8 = vector.shape_cast %7 : vector<16x16x4xf32> to vector<256x4xf32>
    %c0_12 = arith.constant 0 : index
    %c0_13 = arith.constant 0 : index
    %9 = vector.load %arg2[%c0_12, %c0_13] : memref<36x8xf32, #tpu.memory_space<vmem>>, vector<4x8xf32>
    %cst_14 = arith.constant dense<0.000000e+00> : vector<256x8xf32>
    %10 = tpu.matmul %8, %9, %cst_14 {dimension_numbers = #tpu.dot_dimension_numbers<[1], [0], [0], [1], [0, 0, 1, 1], [], []>} : vector<256x4xf32>, vector<4x8xf32>, vector<256x8xf32> -> vector<256x8xf32>
    %11 = arith.addf %5, %10 : vector<256x8xf32>
    %12 = vector.extract_strided_slice %6 {offsets = [1, 0, 0], sizes = [16, 16, 4], strides = [1, 1, 1]} : vector<18x16x4xf32> to vector<16x16x4xf32>
    %13 = vector.shape_cast %12 : vector<16x16x4xf32> to vector<256x4xf32>
    %c12 = arith.constant 12 : index
    %c0_15 = arith.constant 0 : index
    %14 = vector.load %arg2[%c12, %c0_15] : memref<36x8xf32, #tpu.memory_space<vmem>>, vector<4x8xf32>
    %cst_16 = arith.constant dense<0.000000e+00> : vector<256x8xf32>
    %15 = tpu.matmul %13, %14, %cst_16 {dimension_numbers = #tpu.dot_dimension_numbers<[1], [0], [0], [1], [0, 0, 1, 1], [], []>} : vector<256x4xf32>, vector<4x8xf32>, vector<256x8xf32> -> vector<256x8xf32>
    %16 = arith.addf %11, %15 : vector<256x8xf32>
    %17 = vector.extract_strided_slice %6 {offsets = [2, 0, 0], sizes = [16, 16, 4], strides = [1, 1, 1]} : vector<18x16x4xf32> to vector<16x16x4xf32>
    %18 = vector.shape_cast %17 : vector<16x16x4xf32> to vector<256x4xf32>
    %c24 = arith.constant 24 : index
    %c0_17 = arith.constant 0 : index
    %19 = vector.load %arg2[%c24, %c0_17] : memref<36x8xf32, #tpu.memory_space<vmem>>, vector<4x8xf32>
    %cst_18 = arith.constant dense<0.000000e+00> : vector<256x8xf32>
    %20 = tpu.matmul %18, %19, %cst_18 {dimension_numbers = #tpu.dot_dimension_numbers<[1], [0], [0], [1], [0, 0, 1, 1], [], []>} : vector<256x4xf32>, vector<4x8xf32>, vector<256x8xf32> -> vector<256x8xf32>
    %21 = arith.addf %16, %20 : vector<256x8xf32>
    %c0_19 = arith.constant 0 : index
    %c1_20 = arith.constant 1 : index
    %c0_21 = arith.constant 0 : index
    %22 = vector.load %arg7[%c0_19, %c1_20, %c0_21] : memref<18x18x4xf32, #tpu.memory_space<vmem>>, vector<18x16x4xf32>
    %23 = vector.extract_strided_slice %22 {offsets = [0, 0, 0], sizes = [16, 16, 4], strides = [1, 1, 1]} : vector<18x16x4xf32> to vector<16x16x4xf32>
    %24 = vector.shape_cast %23 : vector<16x16x4xf32> to vector<256x4xf32>
    %c4 = arith.constant 4 : index
    %c0_22 = arith.constant 0 : index
    %25 = vector.load %arg2[%c4, %c0_22] : memref<36x8xf32, #tpu.memory_space<vmem>>, vector<4x8xf32>
    %cst_23 = arith.constant dense<0.000000e+00> : vector<256x8xf32>
    %26 = tpu.matmul %24, %25, %cst_23 {dimension_numbers = #tpu.dot_dimension_numbers<[1], [0], [0], [1], [0, 0, 1, 1], [], []>} : vector<256x4xf32>, vector<4x8xf32>, vector<256x8xf32> -> vector<256x8xf32>
    %27 = arith.addf %21, %26 : vector<256x8xf32>
    %28 = vector.extract_strided_slice %22 {offsets = [1, 0, 0], sizes = [16, 16, 4], strides = [1, 1, 1]} : vector<18x16x4xf32> to vector<16x16x4xf32>
    %29 = vector.shape_cast %28 : vector<16x16x4xf32> to vector<256x4xf32>
    %c16 = arith.constant 16 : index
    %c0_24 = arith.constant 0 : index
    %30 = vector.load %arg2[%c16, %c0_24] : memref<36x8xf32, #tpu.memory_space<vmem>>, vector<4x8xf32>
    %cst_25 = arith.constant dense<0.000000e+00> : vector<256x8xf32>
    %31 = tpu.matmul %29, %30, %cst_25 {dimension_numbers = #tpu.dot_dimension_numbers<[1], [0], [0], [1], [0, 0, 1, 1], [], []>} : vector<256x4xf32>, vector<4x8xf32>, vector<256x8xf32> -> vector<256x8xf32>
    %32 = arith.addf %27, %31 : vector<256x8xf32>
    %33 = vector.extract_strided_slice %22 {offsets = [2, 0, 0], sizes = [16, 16, 4], strides = [1, 1, 1]} : vector<18x16x4xf32> to vector<16x16x4xf32>
    %34 = vector.shape_cast %33 : vector<16x16x4xf32> to vector<256x4xf32>
    %c28 = arith.constant 28 : index
    %c0_26 = arith.constant 0 : index
    %35 = vector.load %arg2[%c28, %c0_26] : memref<36x8xf32, #tpu.memory_space<vmem>>, vector<4x8xf32>
    %cst_27 = arith.constant dense<0.000000e+00> : vector<256x8xf32>
    %36 = tpu.matmul %34, %35, %cst_27 {dimension_numbers = #tpu.dot_dimension_numbers<[1], [0], [0], [1], [0, 0, 1, 1], [], []>} : vector<256x4xf32>, vector<4x8xf32>, vector<256x8xf32> -> vector<256x8xf32>
    %37 = arith.addf %32, %36 : vector<256x8xf32>
    %c0_28 = arith.constant 0 : index
    %c2 = arith.constant 2 : index
    %c0_29 = arith.constant 0 : index
    %38 = vector.load %arg7[%c0_28, %c2, %c0_29] : memref<18x18x4xf32, #tpu.memory_space<vmem>>, vector<18x16x4xf32>
    %39 = vector.extract_strided_slice %38 {offsets = [0, 0, 0], sizes = [16, 16, 4], strides = [1, 1, 1]} : vector<18x16x4xf32> to vector<16x16x4xf32>
    %40 = vector.shape_cast %39 : vector<16x16x4xf32> to vector<256x4xf32>
    %c8 = arith.constant 8 : index
    %c0_30 = arith.constant 0 : index
    %41 = vector.load %arg2[%c8, %c0_30] : memref<36x8xf32, #tpu.memory_space<vmem>>, vector<4x8xf32>
    %cst_31 = arith.constant dense<0.000000e+00> : vector<256x8xf32>
    %42 = tpu.matmul %40, %41, %cst_31 {dimension_numbers = #tpu.dot_dimension_numbers<[1], [0], [0], [1], [0, 0, 1, 1], [], []>} : vector<256x4xf32>, vector<4x8xf32>, vector<256x8xf32> -> vector<256x8xf32>
    %43 = arith.addf %37, %42 : vector<256x8xf32>
    %44 = vector.extract_strided_slice %38 {offsets = [1, 0, 0], sizes = [16, 16, 4], strides = [1, 1, 1]} : vector<18x16x4xf32> to vector<16x16x4xf32>
    %45 = vector.shape_cast %44 : vector<16x16x4xf32> to vector<256x4xf32>
    %c20 = arith.constant 20 : index
    %c0_32 = arith.constant 0 : index
    %46 = vector.load %arg2[%c20, %c0_32] : memref<36x8xf32, #tpu.memory_space<vmem>>, vector<4x8xf32>
    %cst_33 = arith.constant dense<0.000000e+00> : vector<256x8xf32>
    %47 = tpu.matmul %45, %46, %cst_33 {dimension_numbers = #tpu.dot_dimension_numbers<[1], [0], [0], [1], [0, 0, 1, 1], [], []>} : vector<256x4xf32>, vector<4x8xf32>, vector<256x8xf32> -> vector<256x8xf32>
    %48 = arith.addf %43, %47 : vector<256x8xf32>
    %49 = vector.extract_strided_slice %38 {offsets = [2, 0, 0], sizes = [16, 16, 4], strides = [1, 1, 1]} : vector<18x16x4xf32> to vector<16x16x4xf32>
    %50 = vector.shape_cast %49 : vector<16x16x4xf32> to vector<256x4xf32>
    %c32 = arith.constant 32 : index
    %c0_34 = arith.constant 0 : index
    %51 = vector.load %arg2[%c32, %c0_34] : memref<36x8xf32, #tpu.memory_space<vmem>>, vector<4x8xf32>
    %cst_35 = arith.constant dense<0.000000e+00> : vector<256x8xf32>
    %52 = tpu.matmul %50, %51, %cst_35 {dimension_numbers = #tpu.dot_dimension_numbers<[1], [0], [0], [1], [0, 0, 1, 1], [], []>} : vector<256x4xf32>, vector<4x8xf32>, vector<256x8xf32> -> vector<256x8xf32>
    %53 = arith.addf %48, %52 : vector<256x8xf32>
    %c0_36 = arith.constant 0 : index
    %c0_37 = arith.constant 0 : index
    %54 = vector.load %arg3[%c0_36, %c0_37] : memref<1x8xf32, #tpu.memory_space<vmem>>, vector<1x8xf32>
    %55 = vector.shape_cast %54 : vector<1x8xf32> to vector<8xf32>
    %56 = vector.shape_cast %55 : vector<8xf32> to vector<1x8xf32>
    %57 = vector.broadcast %56 : vector<1x8xf32> to vector<256x8xf32>
    %58 = arith.addf %53, %57 : vector<256x8xf32>
    %cst_38 = arith.constant 0.000000e+00 : f32
    %59 = vector.broadcast %cst_38 : f32 to vector<256x8xf32>
    %60 = arith.cmpf ogt, %58, %59 : vector<256x8xf32>
    %cst_39 = arith.constant 2.000000e-01 : f32
    %61 = vector.broadcast %cst_39 : f32 to vector<256x8xf32>
    %62 = arith.mulf %61, %58 : vector<256x8xf32>
    %63 = arith.select %60, %58, %62 : vector<256x8xi1>, vector<256x8xf32>
    %64 = vector.shape_cast %63 : vector<256x8xf32> to vector<16x16x8xf32>
    %cst_40 = arith.constant 0.000000e+00 : f32
    %65 = vector.broadcast %cst_40 : f32 to vector<18x18x8xf32>
    %c0_41 = arith.constant 0 : index
    %c0_42 = arith.constant 0 : index
    %c0_43 = arith.constant 0 : index
    %66 = vector.load %arg8[%c0_41, %c0_42, %c0_43] : memref<18x18x8xf32, #tpu.memory_space<vmem>>, vector<18x18x8xf32>
    tpu.vector_store %arg8[%c0_41, %c0_42, %c0_43], %65 {strides = array<i32>} : memref<18x18x8xf32, #tpu.memory_space<vmem>>, vector<18x18x8xf32>,
    %c1_44 = arith.constant 1 : index
    %c1_45 = arith.constant 1 : index
    %c0_46 = arith.constant 0 : index
    %67 = vector.load %arg8[%c1_44, %c1_45, %c0_46] : memref<18x18x8xf32, #tpu.memory_space<vmem>>, vector<16x16x8xf32>
    tpu.vector_store %arg8[%c1_44, %c1_45, %c0_46], %64 {strides = array<i32>} : memref<18x18x8xf32, #tpu.memory_space<vmem>>, vector<16x16x8xf32>,
    %cst_47 = arith.constant 0.000000e+00 : f32
    %68 = vector.broadcast %cst_47 : f32 to vector<256x8xf32>
    %c0_48 = arith.constant 0 : index
    %c0_49 = arith.constant 0 : index
    %c0_50 = arith.constant 0 : index
    %69 = vector.load %arg8[%c0_48, %c0_49, %c0_50] : memref<18x18x8xf32, #tpu.memory_space<vmem>>, vector<18x16x8xf32>
    %70 = vector.extract_strided_slice %69 {offsets = [0, 0, 0], sizes = [16, 16, 8], strides = [1, 1, 1]} : vector<18x16x8xf32> to vector<16x16x8xf32>
    %71 = vector.shape_cast %70 : vector<16x16x8xf32> to vector<256x8xf32>
    %c0_51 = arith.constant 0 : index
    %c0_52 = arith.constant 0 : index
    %72 = vector.load %arg4[%c0_51, %c0_52] : memref<72x8xf32, #tpu.memory_space<vmem>>, vector<8x8xf32>
    %cst_53 = arith.constant dense<0.000000e+00> : vector<256x8xf32>
    %73 = tpu.matmul %71, %72, %cst_53 {dimension_numbers = #tpu.dot_dimension_numbers<[1], [0], [0], [1], [0, 0, 1, 1], [], []>} : vector<256x8xf32>, vector<8x8xf32>, vector<256x8xf32> -> vector<256x8xf32>
    %74 = arith.addf %68, %73 : vector<256x8xf32>
    %75 = vector.extract_strided_slice %69 {offsets = [1, 0, 0], sizes = [16, 16, 8], strides = [1, 1, 1]} : vector<18x16x8xf32> to vector<16x16x8xf32>
    %76 = vector.shape_cast %75 : vector<16x16x8xf32> to vector<256x8xf32>
    %c24_54 = arith.constant 24 : index
    %c0_55 = arith.constant 0 : index
    %77 = vector.load %arg4[%c24_54, %c0_55] : memref<72x8xf32, #tpu.memory_space<vmem>>, vector<8x8xf32>
    %cst_56 = arith.constant dense<0.000000e+00> : vector<256x8xf32>
    %78 = tpu.matmul %76, %77, %cst_56 {dimension_numbers = #tpu.dot_dimension_numbers<[1], [0], [0], [1], [0, 0, 1, 1], [], []>} : vector<256x8xf32>, vector<8x8xf32>, vector<256x8xf32> -> vector<256x8xf32>
    %79 = arith.addf %74, %78 : vector<256x8xf32>
    %80 = vector.extract_strided_slice %69 {offsets = [2, 0, 0], sizes = [16, 16, 8], strides = [1, 1, 1]} : vector<18x16x8xf32> to vector<16x16x8xf32>
    %81 = vector.shape_cast %80 : vector<16x16x8xf32> to vector<256x8xf32>
    %c48 = arith.constant 48 : index
    %c0_57 = arith.constant 0 : index
    %82 = vector.load %arg4[%c48, %c0_57] : memref<72x8xf32, #tpu.memory_space<vmem>>, vector<8x8xf32>
    %cst_58 = arith.constant dense<0.000000e+00> : vector<256x8xf32>
    %83 = tpu.matmul %81, %82, %cst_58 {dimension_numbers = #tpu.dot_dimension_numbers<[1], [0], [0], [1], [0, 0, 1, 1], [], []>} : vector<256x8xf32>, vector<8x8xf32>, vector<256x8xf32> -> vector<256x8xf32>
    %84 = arith.addf %79, %83 : vector<256x8xf32>
    %c0_59 = arith.constant 0 : index
    %c1_60 = arith.constant 1 : index
    %c0_61 = arith.constant 0 : index
    %85 = vector.load %arg8[%c0_59, %c1_60, %c0_61] : memref<18x18x8xf32, #tpu.memory_space<vmem>>, vector<18x16x8xf32>
    %86 = vector.extract_strided_slice %85 {offsets = [0, 0, 0], sizes = [16, 16, 8], strides = [1, 1, 1]} : vector<18x16x8xf32> to vector<16x16x8xf32>
    %87 = vector.shape_cast %86 : vector<16x16x8xf32> to vector<256x8xf32>
    %c8_62 = arith.constant 8 : index
    %c0_63 = arith.constant 0 : index
    %88 = vector.load %arg4[%c8_62, %c0_63] : memref<72x8xf32, #tpu.memory_space<vmem>>, vector<8x8xf32>
    %cst_64 = arith.constant dense<0.000000e+00> : vector<256x8xf32>
    %89 = tpu.matmul %87, %88, %cst_64 {dimension_numbers = #tpu.dot_dimension_numbers<[1], [0], [0], [1], [0, 0, 1, 1], [], []>} : vector<256x8xf32>, vector<8x8xf32>, vector<256x8xf32> -> vector<256x8xf32>
    %90 = arith.addf %84, %89 : vector<256x8xf32>
    %91 = vector.extract_strided_slice %85 {offsets = [1, 0, 0], sizes = [16, 16, 8], strides = [1, 1, 1]} : vector<18x16x8xf32> to vector<16x16x8xf32>
    %92 = vector.shape_cast %91 : vector<16x16x8xf32> to vector<256x8xf32>
    %c32_65 = arith.constant 32 : index
    %c0_66 = arith.constant 0 : index
    %93 = vector.load %arg4[%c32_65, %c0_66] : memref<72x8xf32, #tpu.memory_space<vmem>>, vector<8x8xf32>
    %cst_67 = arith.constant dense<0.000000e+00> : vector<256x8xf32>
    %94 = tpu.matmul %92, %93, %cst_67 {dimension_numbers = #tpu.dot_dimension_numbers<[1], [0], [0], [1], [0, 0, 1, 1], [], []>} : vector<256x8xf32>, vector<8x8xf32>, vector<256x8xf32> -> vector<256x8xf32>
    %95 = arith.addf %90, %94 : vector<256x8xf32>
    %96 = vector.extract_strided_slice %85 {offsets = [2, 0, 0], sizes = [16, 16, 8], strides = [1, 1, 1]} : vector<18x16x8xf32> to vector<16x16x8xf32>
    %97 = vector.shape_cast %96 : vector<16x16x8xf32> to vector<256x8xf32>
    %c56 = arith.constant 56 : index
    %c0_68 = arith.constant 0 : index
    %98 = vector.load %arg4[%c56, %c0_68] : memref<72x8xf32, #tpu.memory_space<vmem>>, vector<8x8xf32>
    %cst_69 = arith.constant dense<0.000000e+00> : vector<256x8xf32>
    %99 = tpu.matmul %97, %98, %cst_69 {dimension_numbers = #tpu.dot_dimension_numbers<[1], [0], [0], [1], [0, 0, 1, 1], [], []>} : vector<256x8xf32>, vector<8x8xf32>, vector<256x8xf32> -> vector<256x8xf32>
    %100 = arith.addf %95, %99 : vector<256x8xf32>
    %c0_70 = arith.constant 0 : index
    %c2_71 = arith.constant 2 : index
    %c0_72 = arith.constant 0 : index
    %101 = vector.load %arg8[%c0_70, %c2_71, %c0_72] : memref<18x18x8xf32, #tpu.memory_space<vmem>>, vector<18x16x8xf32>
    %102 = vector.extract_strided_slice %101 {offsets = [0, 0, 0], sizes = [16, 16, 8], strides = [1, 1, 1]} : vector<18x16x8xf32> to vector<16x16x8xf32>
    %103 = vector.shape_cast %102 : vector<16x16x8xf32> to vector<256x8xf32>
    %c16_73 = arith.constant 16 : index
    %c0_74 = arith.constant 0 : index
    %104 = vector.load %arg4[%c16_73, %c0_74] : memref<72x8xf32, #tpu.memory_space<vmem>>, vector<8x8xf32>
    %cst_75 = arith.constant dense<0.000000e+00> : vector<256x8xf32>
    %105 = tpu.matmul %103, %104, %cst_75 {dimension_numbers = #tpu.dot_dimension_numbers<[1], [0], [0], [1], [0, 0, 1, 1], [], []>} : vector<256x8xf32>, vector<8x8xf32>, vector<256x8xf32> -> vector<256x8xf32>
    %106 = arith.addf %100, %105 : vector<256x8xf32>
    %107 = vector.extract_strided_slice %101 {offsets = [1, 0, 0], sizes = [16, 16, 8], strides = [1, 1, 1]} : vector<18x16x8xf32> to vector<16x16x8xf32>
    %108 = vector.shape_cast %107 : vector<16x16x8xf32> to vector<256x8xf32>
    %c40 = arith.constant 40 : index
    %c0_76 = arith.constant 0 : index
    %109 = vector.load %arg4[%c40, %c0_76] : memref<72x8xf32, #tpu.memory_space<vmem>>, vector<8x8xf32>
    %cst_77 = arith.constant dense<0.000000e+00> : vector<256x8xf32>
    %110 = tpu.matmul %108, %109, %cst_77 {dimension_numbers = #tpu.dot_dimension_numbers<[1], [0], [0], [1], [0, 0, 1, 1], [], []>} : vector<256x8xf32>, vector<8x8xf32>, vector<256x8xf32> -> vector<256x8xf32>
    %111 = arith.addf %106, %110 : vector<256x8xf32>
    %112 = vector.extract_strided_slice %101 {offsets = [2, 0, 0], sizes = [16, 16, 8], strides = [1, 1, 1]} : vector<18x16x8xf32> to vector<16x16x8xf32>
    %113 = vector.shape_cast %112 : vector<16x16x8xf32> to vector<256x8xf32>
    %c64 = arith.constant 64 : index
    %c0_78 = arith.constant 0 : index
    %114 = vector.load %arg4[%c64, %c0_78] : memref<72x8xf32, #tpu.memory_space<vmem>>, vector<8x8xf32>
    %cst_79 = arith.constant dense<0.000000e+00> : vector<256x8xf32>
    %115 = tpu.matmul %113, %114, %cst_79 {dimension_numbers = #tpu.dot_dimension_numbers<[1], [0], [0], [1], [0, 0, 1, 1], [], []>} : vector<256x8xf32>, vector<8x8xf32>, vector<256x8xf32> -> vector<256x8xf32>
    %116 = arith.addf %111, %115 : vector<256x8xf32>
    %c0_80 = arith.constant 0 : index
    %c0_81 = arith.constant 0 : index
    %117 = vector.load %arg5[%c0_80, %c0_81] : memref<1x8xf32, #tpu.memory_space<vmem>>, vector<1x8xf32>
    %118 = vector.shape_cast %117 : vector<1x8xf32> to vector<8xf32>
    %119 = vector.shape_cast %118 : vector<8xf32> to vector<1x8xf32>
    %120 = vector.broadcast %119 : vector<1x8xf32> to vector<256x8xf32>
    %121 = arith.addf %116, %120 : vector<256x8xf32>
    %cst_82 = arith.constant 0.000000e+00 : f32
    %122 = vector.broadcast %cst_82 : f32 to vector<256x8xf32>
    %123 = arith.cmpf ogt, %121, %122 : vector<256x8xf32>
    %cst_83 = arith.constant 2.000000e-01 : f32
    %124 = vector.broadcast %cst_83 : f32 to vector<256x8xf32>
    %125 = arith.mulf %124, %121 : vector<256x8xf32>
    %126 = arith.select %123, %121, %125 : vector<256x8xi1>, vector<256x8xf32>
    %127 = vector.shape_cast %126 : vector<256x8xf32> to vector<8x2x16x8xf32>
    %128 = vector.extract_strided_slice %127 {offsets = [0, 0, 0, 0], sizes = [8, 1, 16, 8], strides = [1, 1, 1, 1]} : vector<8x2x16x8xf32> to vector<8x1x16x8xf32>
    %129 = vector.shape_cast %128 : vector<8x1x16x8xf32> to vector<8x16x8xf32>
    %130 = vector.extract_strided_slice %127 {offsets = [0, 1, 0, 0], sizes = [8, 1, 16, 8], strides = [1, 1, 1, 1]} : vector<8x2x16x8xf32> to vector<8x1x16x8xf32>
    %131 = vector.shape_cast %130 : vector<8x1x16x8xf32> to vector<8x16x8xf32>
    %132 = arith.addf %129, %131 : vector<8x16x8xf32>
    %133 = vector.shape_cast %132 : vector<8x16x8xf32> to vector<8x8x2x8xf32>
    %134 = vector.extract_strided_slice %133 {offsets = [0, 0, 0, 0], sizes = [8, 8, 1, 8], strides = [1, 1, 1, 1]} : vector<8x8x2x8xf32> to vector<8x8x1x8xf32>
    %135 = vector.shape_cast %134 : vector<8x8x1x8xf32> to vector<8x8x8xf32>
    %136 = vector.extract_strided_slice %133 {offsets = [0, 0, 1, 0], sizes = [8, 8, 1, 8], strides = [1, 1, 1, 1]} : vector<8x8x2x8xf32> to vector<8x8x1x8xf32>
    %137 = vector.shape_cast %136 : vector<8x8x1x8xf32> to vector<8x8x8xf32>
    %138 = arith.addf %135, %137 : vector<8x8x8xf32>
    %cst_84 = arith.constant 2.500000e-01 : f32
    %139 = vector.broadcast %cst_84 : f32 to vector<8x8x8xf32>
    %140 = arith.mulf %138, %139 : vector<8x8x8xf32>
    %141 = vector.shape_cast %140 : vector<8x8x8xf32> to vector<64x8xf32>
    %c0_85 = arith.constant 0 : index
    %c0_86 = arith.constant 0 : index
    %c0_87 = arith.constant 0 : index
    %142 = vector.load %arg6[%c0_85, %c0_86, %c0_87] : memref<1x64x8xf32, #tpu.memory_space<vmem>>, vector<1x64x8xf32>
    %143 = vector.shape_cast %142 : vector<1x64x8xf32> to vector<64x8xf32>
    %144 = vector.shape_cast %141 : vector<64x8xf32> to vector<1x64x8xf32>
    tpu.vector_store %arg6[%c0_85, %c0_86, %c0_87], %144 {strides = array<i32>} : memref<1x64x8xf32, #tpu.memory_space<vmem>>, vector<1x64x8xf32>,
    return
  }
  func.func @transform_0(%arg0: i32) -> (i32, i32, i32, i32) {
    %c0_i32 = arith.constant 0 : i32
    %c0_i32_0 = arith.constant 0 : i32
    %c0_i32_1 = arith.constant 0 : i32
    %c0_i32_2 = arith.constant 0 : i32
    return %arg0, %c0_i32, %c0_i32_0, %c0_i32_1 : i32, i32, i32, i32
  }
  func.func @transform_1(%arg0: i32) -> (i32, i32) {
    %c0_i32 = arith.constant 0 : i32
    %c0_i32_0 = arith.constant 0 : i32
    %c0_i32_1 = arith.constant 0 : i32
    return %c0_i32, %c0_i32_0 : i32, i32
  }
  func.func @transform_2(%arg0: i32) -> (i32, i32) {
    %c0_i32 = arith.constant 0 : i32
    %c0_i32_0 = arith.constant 0 : i32
    %c0_i32_1 = arith.constant 0 : i32
    return %c0_i32, %c0_i32_0 : i32, i32
  }
  func.func @transform_3(%arg0: i32) -> (i32, i32) {
    %c0_i32 = arith.constant 0 : i32
    %c0_i32_0 = arith.constant 0 : i32
    %c0_i32_1 = arith.constant 0 : i32
    return %c0_i32, %c0_i32_0 : i32, i32
  }
  func.func @transform_4(%arg0: i32) -> (i32, i32) {
    %c0_i32 = arith.constant 0 : i32
    %c0_i32_0 = arith.constant 0 : i32
    %c0_i32_1 = arith.constant 0 : i32
    return %c0_i32, %c0_i32_0 : i32, i32
  }
  func.func @transform_5(%arg0: i32) -> (i32, i32, i32) {
    %c0_i32 = arith.constant 0 : i32
    %c0_i32_0 = arith.constant 0 : i32
    %c0_i32_1 = arith.constant 0 : i32
    return %arg0, %c0_i32, %c0_i32_0 : i32, i32, i32
  }
}

</mosaic_0001>

<bundles_post_ra>
// kernel: tpu_custom_call.1
= control target key start
LH: loop header
LB: loop body
LE: loop exit
PB: predicated region body
PF: predicated region fallthrough
CT: control target
= control target key end

     0   :  { %s5517_s18 = smov 0   ;;  %s8263_s0 = inlined_call_operand.vmem [shape: f32[2,16,16,4], index: 0, kind: input, shape index: {}]   ;;  %s8264_s1 = inlined_call_operand.vmem [shape: f32[36,8], index: 1, kind: input, shape index: {}]   ;;  %s8265_s2 = inlined_call_operand.vmem [shape: f32[1,8], index: 2, kind: input, shape index: {}]   ;;  %s8266_s3 = inlined_call_operand.vmem [shape: f32[72,8], index: 3, kind: input, shape index: {}]   ;;  %s8267_s4 = inlined_call_operand.vmem [shape: f32[1,8], index: 4, kind: input, shape index: {}]   ;;  %s8268_s5 = inlined_call_operand.vmem [shape: f32[2,64,8], index: 5, kind: output, shape index: {}]  }
   0x1 LB: > { %s4801_s19 = sadd.s32 4294967295, %s5484_s18   ;;  %p4805_p0 = scmp.ge.s32.totalorder %s5484_s18, 1  ;;  %s5484_s18 = sphi %s5517_s18, %s15_s18  }
   0x2   : > { %p187_p1 = scmp.lt.s32.totalorder %s5484_s18, 3 }
   0x4   : > { %p188_p2 = pnand %p4805_p0, %p187_p1 }
   0x6   : > { %191 = sbr.rel (%p188_p2) target bundleno = 1519 (0x5ef), region = 40 }
   0xb   : > { %v383_v0 = vld [vmem:[%s8264_s1 + $0xc] sm:$0xf]  ;;  %vm480_vm0 = vcmask 1043456   ;;  %v382_v1 = vld [vmem:[%s8264_s1] sm:$0xf]  ;;  %p215_p3 = scmp.lt.s32.totalorder %s4801_s19, 1 }
   0xc   : > { %4810 = vmatpush.msk.msra.mxu0 %vm480_vm0, %v383_v0  ;;  %5463 = vmatpush.msk.msra.mxu2 %vm480_vm0, %v383_v0  ;;  %vm257_vm1 = vcmask 31744   ;;  %v8269_v2 = vmov 0.0   ;;  %v719_v5 = vld [vmem:[%s8264_s1 + $0x18] sm:$0xf]  ;;  %v910_v6 = vld [vmem:[%s8264_s1 + $0x4] sm:$0xf] }
   0xd   : > { %5464 = vmatpush.msk.msra.mxu3 %vm480_vm0, %v382_v1  ;;  %s8379_s19 = smov (!%p215_p3, %s4801_s19), 1  ;;  %262 = vst.msk [vmem:[#allocation2 + $0x18] sm:$0xff] %vm257_vm1, %v8269_v2  ;;  %4843 = vmatpush.msk.msra.mxu1 %vm480_vm0, %v382_v1  ;;  %v1155_v10 = vld [vmem:[%s8264_s1 + $0x10] sm:$0xf]  ;;  %vm260_vm2 = vcmask 25600   ;;  %vm2188_vm3 = vcmask 64512  }
   0xe   : > { %263 = vst.msk [vmem:[#allocation2 + $0x20] sm:$0xff] %vm257_vm1, %v8269_v2  ;;  %s5461_s24 = sshll.u32 %s8379_s19, 8  ;;  %4876 = vmatpush.msk.msrb.mxu2 %vm480_vm0, %v719_v5  ;;  %4942 = vmatpush.msk.msrb.mxu0 %vm480_vm0, %v1155_v10  ;;  %v1901_v10 = vld [vmem:[%s8264_s1 + $0x20] sm:$0xf]  ;;  %vm2191_vm5 = vcmask 58368   ;;  %s5462_s20 = sshll.u32 %s8379_s19, 6 }
   0xf   : > { %258 = vst.msk [vmem:[#allocation2] sm:$0xff] %vm257_vm1, %v8269_v2  ;;  %s5547_s27 = scalar_lea.vmem %s8263_s0, %s5461_s24  ;;  %4909 = vmatpush.msk.msrb.mxu3 %vm480_vm0, %v910_v6  ;;  %v1501_v6 = vld [vmem:[%s8264_s1 + $0x8] sm:$0xf]  ;;  %s7959_s19 = scalar_lea.vmem %s8268_s5, %s5462_s20 }
  0x10   : > { %259 = vst.msk [vmem:[#allocation2 + $0x8] sm:$0xff] %vm257_vm1, %v8269_v2  ;;  %v225_v3 = vld [vmem:[%s5547_s27] sm:$0xff]  ;;  %v239_v8 = vld [vmem:[%s5547_s27 + $0x70] sm:$0xff]  ;;  %v226_v11 = vld [vmem:[%s5547_s27 + $0x8] sm:$0xff] }
  0x11   : > { %265 = vst.msk [vmem:[#allocation2 + $0x30] sm:$0xff] %vm257_vm1, %v8269_v2  ;;  %v241_v7 = vld [vmem:[%s5547_s27 + $0x80] sm:$0xff]  ;;  %v242_v16 = vld [vmem:[%s5547_s27 + $0x88] sm:$0xff]  ;;  %v240_v17 = vld [vmem:[%s5547_s27 + $0x78] sm:$0xff] }
  0x12   : > { %314 = vst.msk [vmem:[#allocation2 + $0x19] sm:$0xff] %vm257_vm1, %v225_v3  ;;  %v227_v18 = vld [vmem:[%s5547_s27 + $0x10] sm:$0xff]  ;;  %v228_v20 = vld [vmem:[%s5547_s27 + $0x18] sm:$0xff]  ;;  %v229_v22 = vld [vmem:[%s5547_s27 + $0x20] sm:$0xff] }
  0x13   : > { %266 = vst.msk [vmem:[#allocation2 + $0x38] sm:$0xff] %vm257_vm1, %v8269_v2  ;;  %v243_v19 = vld [vmem:[%s5547_s27 + $0x90] sm:$0xff]  ;;  %v244_v21 = vld [vmem:[%s5547_s27 + $0x98] sm:$0xff]  ;;  %v245_v23 = vld [vmem:[%s5547_s27 + $0xa0] sm:$0xff] }
  0x14   : > { %268 = vst.msk [vmem:[#allocation2 + $0x48] sm:$0xff] %vm257_vm1, %v8269_v2  ;;  %v230_v24 = vld [vmem:[%s5547_s27 + $0x28] sm:$0xff]  ;;  %v231_v28 = vld [vmem:[%s5547_s27 + $0x30] sm:$0xff]  ;;  %v232_v33 = vld [vmem:[%s5547_s27 + $0x38] sm:$0xff] }
  0x15   : > { %269 = vst.msk [vmem:[#allocation2 + $0x50] sm:$0xff] %vm257_vm1, %v8269_v2  ;;  %v246_v25 = vld [vmem:[%s5547_s27 + $0xa8] sm:$0xff]  ;;  %v247_v29 = vld [vmem:[%s5547_s27 + $0xb0] sm:$0xff]  ;;  %v248_v34 = vld [vmem:[%s5547_s27 + $0xb8] sm:$0xff] }
  0x16   : > { %271 = vst.msk [vmem:[#allocation2 + $0x60] sm:$0xff] %vm257_vm1, %v8269_v2  ;;  %v346_v9 = vld [vmem:[#allocation2] sm:$0xff]  ;;  %v234_v41 = vld [vmem:[%s5547_s27 + $0x48] sm:$0xff]  ;;  %v235_v45 = vld [vmem:[%s5547_s27 + $0x50] sm:$0xff] }
  0x17   : > { %272 = vst.msk [vmem:[#allocation2 + $0x68] sm:$0xff] %vm257_vm1, %v8269_v2  ;;  %4844 = vmatmul.msk.f32.vlgmr.msra.gmra.mxu1 %vm257_vm1, %v346_v9  ;;  %v347_v12 = vld [vmem:[#allocation2 + $0x8] sm:$0xff]  ;;  %v233_v37 = vld [vmem:[%s5547_s27 + $0x40] sm:$0xff]  ;;  %v251_v46 = vld [vmem:[%s5547_s27 + $0xd0] sm:$0xff] }
  0x18   : > { %274 = vst.msk [vmem:[#allocation2 + $0x78] sm:$0xff] %vm257_vm1, %v8269_v2  ;;  %v249_v38 = vld [vmem:[%s5547_s27 + $0xc0] sm:$0xff]  ;;  %v250_v42 = vld [vmem:[%s5547_s27 + $0xc8] sm:$0xff]  ;;  %v236_v49 = vld [vmem:[%s5547_s27 + $0x58] sm:$0xff] }
  0x19   : > { %v5567_v4 = vld [vmem:[#allocation2 + $0x18] sm:$0xff]  ;;  %275 = vst.msk [vmem:[#allocation2 + $0x80] sm:$0xff] %vm257_vm1, %v8269_v2  ;;  %v237_v53 = vld [vmem:[%s5547_s27 + $0x60] sm:$0xff]  ;;  %v238_v57 = vld [vmem:[%s5547_s27 + $0x68] sm:$0xff] }
  0x1a   : > { %4811 = vmatmul.msk.f32.vlgmr.msra.gmra.mxu0 %vm257_vm1, %v5567_v4  ;;  %277 = vst.msk [vmem:[#allocation2 + $0x90] sm:$0xff] %vm257_vm1, %v8269_v2  ;;  %v252_v50 = vld [vmem:[%s5547_s27 + $0xd8] sm:$0xff]  ;;  %v253_v54 = vld [vmem:[%s5547_s27 + $0xe0] sm:$0xff]  ;;  %v254_v58 = vld [vmem:[%s5547_s27 + $0xe8] sm:$0xff] }
  0x1b   : > { %278 = vst.msk [vmem:[#allocation2 + $0x98] sm:$0xff] %vm257_vm1, %v8269_v2  ;;  %v255_v61 = vld [vmem:[%s5547_s27 + $0xf0] sm:$0xff]  ;;  %v256_v0 = vld [vmem:[%s5547_s27 + $0xf8] sm:$0xff]  ;;  %5074 = vmatpush.msk.msra.mxu0 %vm480_vm0, %v1901_v10 }
  0x1c   : > { %280 = vst.msk [vmem:[#allocation2 + $0xa8] sm:$0xff] %vm257_vm1, %v8269_v2 }
  0x1d   : > { %281 = vst.msk [vmem:[#allocation2 + $0xb0] sm:$0xff] %vm257_vm1, %v8269_v2 }
  0x1e   : > { %283 = vst.msk [vmem:[#allocation2 + $0xc0] sm:$0xff] %vm257_vm1, %v8269_v2 }
  0x1f   : > { %284 = vst.msk [vmem:[#allocation2 + $0xc8] sm:$0xff] %vm257_vm1, %v8269_v2  ;;  %4845 = vmatmul.msk.f32.gmra.mxu1 %vm257_vm1, %v347_v12 }
  0x20   : > { %286 = vst.msk [vmem:[#allocation2 + $0xd8] sm:$0xff] %vm257_vm1, %v8269_v2 }
  0x21   : > { %287 = vst.msk [vmem:[#allocation2 + $0xe0] sm:$0xff] %vm257_vm1, %v8269_v2 }
  0x22   : > { %289 = vst.msk [vmem:[#allocation2 + $0xf0] sm:$0xff] %vm257_vm1, %v8269_v2 }
  0x23   : > { %290 = vst.msk [vmem:[#allocation2 + $0xf8] sm:$0xff] %vm257_vm1, %v8269_v2 }
  0x24   : > { %292 = vst.msk [vmem:[#allocation2 + $0x108] sm:$0xff] %vm257_vm1, %v8269_v2 }
  0x25   : > { %293 = vst.msk [vmem:[#allocation2 + $0x110] sm:$0xff] %vm257_vm1, %v8269_v2 }
  0x26   : > { %295 = vst.msk [vmem:[#allocation2 + $0x120] sm:$0xff] %vm257_vm1, %v8269_v2 }
  0x27   : > { %296 = vst.msk [vmem:[#allocation2 + $0x128] sm:$0xff] %vm257_vm1, %v8269_v2  ;;  %4846 = vmatmul.msk.f32.gmra.mxu1 %vm257_vm1, %v5567_v4 }
  0x28   : > { %298 = vst.msk [vmem:[#allocation2 + $0x138] sm:$0xff] %vm257_vm1, %v8269_v2 }
  0x29   : > { %299 = vst.msk [vmem:[#allocation2 + $0x140] sm:$0xff] %vm257_vm1, %v8269_v2 }
  0x2a   : > { %301 = vst.msk [vmem:[#allocation2 + $0x150] sm:$0xff] %vm257_vm1, %v8269_v2 }
  0x2b   : > { %302 = vst.msk [vmem:[#allocation2 + $0x158] sm:$0xff] %vm257_vm1, %v8269_v2 }
  0x2c   : > { %304 = vst.msk [vmem:[#allocation2 + $0x168] sm:$0xff] %vm257_vm1, %v8269_v2 }
  0x2d   : > { %305 = vst.msk [vmem:[#allocation2 + $0x170] sm:$0xff] %vm257_vm1, %v8269_v2 }
  0x2e   : > { %307 = vst.msk [vmem:[#allocation2 + $0x180] sm:$0xff] %vm257_vm1, %v8269_v2 }
  0x2f   : > { %308 = vst.msk [vmem:[#allocation2 + $0x188] sm:$0xff] %vm257_vm1, %v8269_v2 }
  0x30   : > { %310 = vst.msk [vmem:[#allocation2 + $0x198] sm:$0xff] %vm257_vm1, %v8269_v2 }
  0x31   : > { %311 = vst.msk [vmem:[#allocation2 + $0x1a0] sm:$0xff] %vm257_vm1, %v8269_v2 }
  0x32   : > { %330 = vst.msk [vmem:[#allocation2 + $0xd9] sm:$0xff] %vm257_vm1, %v241_v7  ;;  %v1746_v7 = vld [vmem:[%s8264_s1 + $0x14] sm:$0xf] }
  0x33   : > { %328 = vst.msk [vmem:[#allocation2 + $0xc1] sm:$0xff] %vm257_vm1, %v239_v8 }
  0x34   : > { %264 = vst.msk [vmem:[#allocation2 + $0x28] sm:$0x3] %vm260_vm2, %v8269_v2 }
  0x35   : > { %315 = vst.msk [vmem:[#allocation2 + $0x21] sm:$0xff] %vm257_vm1, %v226_v11  ;;  %v1310_v11 = vld [vmem:[%s8264_s1 + $0x1c] sm:$0xf] }
  0x36   : > { %261 = vst.msk [vmem:[#allocation2 + $0x10] sm:$0x3] %vm260_vm2, %v8269_v2  ;;  %4975 = vmatpush.msk.msrb.mxu1 %vm480_vm0, %v1310_v11 }
  0x37   : > { %267 = vst.msk [vmem:[#allocation2 + $0x40] sm:$0x3] %vm260_vm2, %v8269_v2 }
  0x38   : > { %270 = vst.msk [vmem:[#allocation2 + $0x58] sm:$0x3] %vm260_vm2, %v8269_v2 }
  0x39   : > { %v5648_v13 = vld [vmem:[#allocation2 + $0xd8] sm:$0xff]  ;;  %273 = vst.msk [vmem:[#allocation2 + $0x70] sm:$0x3] %vm260_vm2, %v8269_v2 }
  0x3a   : > { %4827 = vmatmul.msk.f32.vlgmr.msra.gmra.mxu2 %vm257_vm1, %v5648_v13  ;;  %v5655_v14 = vld [vmem:[#allocation2 + $0xc0] sm:$0xff]  ;;  %276 = vst.msk [vmem:[#allocation2 + $0x88] sm:$0x3] %vm260_vm2, %v8269_v2 }
  0x3b   : > { %4860 = vmatmul.msk.f32.vlgmr.msra.gmra.mxu3 %vm257_vm1, %v5655_v14  ;;  %279 = vst.msk [vmem:[#allocation2 + $0xa0] sm:$0x3] %vm260_vm2, %v8269_v2  ;;  %5008 = vmatpush.msk.msra.mxu2 %vm480_vm0, %v1501_v6 }
  0x3c   : > { %v349_v15 = vld [vmem:[#allocation2 + $0x20] sm:$0xff]  ;;  %282 = vst.msk [vmem:[#allocation2 + $0xb8] sm:$0x3] %vm260_vm2, %v8269_v2  ;;  %5041 = vmatpush.msk.msra.mxu3 %vm480_vm0, %v1746_v7 }
  0x3d   : > { %4812 = vmatmul.msk.f32.gmra.mxu0 %vm257_vm1, %v349_v15  ;;  %285 = vst.msk [vmem:[#allocation2 + $0xd0] sm:$0x3] %vm260_vm2, %v8269_v2  ;;  %4847 = vmatmul.msk.f32.gmra.mxu1 %vm257_vm1, %v349_v15 }
  0x3e   : > { %288 = vst.msk [vmem:[#allocation2 + $0xe8] sm:$0x3] %vm260_vm2, %v8269_v2 }
  0x3f   : > { %291 = vst.msk [vmem:[#allocation2 + $0x100] sm:$0x3] %vm260_vm2, %v8269_v2 }
  0x40   : > { %294 = vst.msk [vmem:[#allocation2 + $0x118] sm:$0x3] %vm260_vm2, %v8269_v2 }
  0x41   : > { %297 = vst.msk [vmem:[#allocation2 + $0x130] sm:$0x3] %vm260_vm2, %v8269_v2 }
  0x42   : > { %300 = vst.msk [vmem:[#allocation2 + $0x148] sm:$0x3] %vm260_vm2, %v8269_v2 }
  0x43   : > { %303 = vst.msk [vmem:[#allocation2 + $0x160] sm:$0x3] %vm260_vm2, %v8269_v2 }
  0x44   : > { %306 = vst.msk [vmem:[#allocation2 + $0x178] sm:$0x3] %vm260_vm2, %v8269_v2 }
  0x45   : > { %309 = vst.msk [vmem:[#allocation2 + $0x190] sm:$0x3] %vm260_vm2, %v8269_v2 }
  0x46   : > { %312 = vst.msk [vmem:[#allocation2 + $0x1a8] sm:$0x3] %vm260_vm2, %v8269_v2 }
  0x47   : > { %331 = vst.msk [vmem:[#allocation2 + $0xe1] sm:$0xff] %vm257_vm1, %v242_v16 }
  0x48   : > { %329 = vst.msk [vmem:[#allocation2 + $0xc9] sm:$0xff] %vm257_vm1, %v240_v17 }
  0x49   : > { %316 = vst.msk [vmem:[#allocation2 + $0x31] sm:$0xff] %vm257_vm1, %v227_v18 }
  0x4a   : > { %332 = vst.msk [vmem:[#allocation2 + $0xf1] sm:$0xff] %vm257_vm1, %v243_v19 }
  0x4b   : > { %317 = vst.msk [vmem:[#allocation2 + $0x39] sm:$0xff] %vm257_vm1, %v228_v20  ;;  %v876_v20 = vld [vmem:[#allocation2 + $0x19] sm:$0xff] }
  0x4c   : > { %333 = vst.msk [vmem:[#allocation2 + $0xf9] sm:$0xff] %vm257_vm1, %v244_v21 }
  0x4d   : > { %318 = vst.msk [vmem:[#allocation2 + $0x49] sm:$0xff] %vm257_vm1, %v229_v22 }
  0x4e   : > { %v5706_v26 = vld [vmem:[#allocation2 + $0xe0] sm:$0xff]  ;;  %334 = vst.msk [vmem:[#allocation2 + $0x109] sm:$0xff] %vm257_vm1, %v245_v23 }
  0x4f   : > { %4828 = vmatmul.msk.f32.gmra.mxu2 %vm257_vm1, %v5706_v26  ;;  %v5711_v27 = vld [vmem:[#allocation2 + $0xc8] sm:$0xff]  ;;  %319 = vst.msk [vmem:[#allocation2 + $0x51] sm:$0xff] %vm257_vm1, %v230_v24 }
  0x50   : > { %4861 = vmatmul.msk.f32.gmra.mxu3 %vm257_vm1, %v5711_v27  ;;  %v5718_v30 = vld [vmem:[#allocation2 + $0x30] sm:$0xff]  ;;  %335 = vst.msk [vmem:[#allocation2 + $0x111] sm:$0xff] %vm257_vm1, %v246_v25  ;;  %v874_v24 = vld [vmem:[#allocation2 + $0x1] sm:$0xff] }
  0x51   : > { %4813 = vmatmul.msk.f32.gmra.mxu0 %vm257_vm1, %v5718_v30  ;;  %4848 = vmatmul.msk.f32.gmra.mxu1 %vm257_vm1, %v5718_v30  ;;  %320 = vst.msk [vmem:[#allocation2 + $0x61] sm:$0xff] %vm257_vm1, %v231_v28  ;;  %v5727_v31 = vld [vmem:[#allocation2 + $0xf0] sm:$0xff]  ;;  %v877_v25 = vld [vmem:[#allocation2 + $0x21] sm:$0xff] }
  0x52   : > { %336 = vst.msk [vmem:[#allocation2 + $0x121] sm:$0xff] %vm257_vm1, %v247_v29  ;;  %v5729_v32 = vld [vmem:[#allocation2 + $0x38] sm:$0xff] }
  0x53   : > { %321 = vst.msk [vmem:[#allocation2 + $0x69] sm:$0xff] %vm257_vm1, %v232_v33  ;;  %v5743_v35 = vld [vmem:[#allocation2 + $0xf8] sm:$0xff] }
  0x54   : > { %337 = vst.msk [vmem:[#allocation2 + $0x129] sm:$0xff] %vm257_vm1, %v248_v34  ;;  %v5745_v36 = vld [vmem:[#allocation2 + $0x48] sm:$0xff]  ;;  %v878_v12 = vld [vmem:[#allocation2 + $0x31] sm:$0xff]  ;;  %v5930_v18 = vld [vmem:[#allocation2 + $0x39] sm:$0xff] }
  0x55   : > { %322 = vst.msk [vmem:[#allocation2 + $0x79] sm:$0xff] %vm257_vm1, %v233_v37  ;;  %v5759_v39 = vld [vmem:[#allocation2 + $0x108] sm:$0xff] }
  0x56   : > { %338 = vst.msk [vmem:[#allocation2 + $0x139] sm:$0xff] %vm257_vm1, %v249_v38  ;;  %v5761_v40 = vld [vmem:[#allocation2 + $0x50] sm:$0xff] }
  0x57   : > { %4829 = vmatmul.msk.f32.gmra.mxu2 %vm257_vm1, %v5727_v31  ;;  %323 = vst.msk [vmem:[#allocation2 + $0x81] sm:$0xff] %vm257_vm1, %v234_v41  ;;  %v5775_v43 = vld [vmem:[#allocation2 + $0x110] sm:$0xff] }
  0x58   : > { %4862 = vmatmul.msk.f32.gmra.mxu3 %vm257_vm1, %v5648_v13  ;;  %339 = vst.msk [vmem:[#allocation2 + $0x141] sm:$0xff] %vm257_vm1, %v250_v42  ;;  %v5777_v44 = vld [vmem:[#allocation2 + $0x60] sm:$0xff]  ;;  %v5943_v22 = vld [vmem:[#allocation2 + $0x49] sm:$0xff]  ;;  %v5959_v34 = vld [vmem:[#allocation2 + $0x51] sm:$0xff] }
  0x59   : > { %4814 = vmatmul.msk.f32.gmra.mxu0 %vm257_vm1, %v5729_v32  ;;  %4849 = vmatmul.msk.f32.gmra.mxu1 %vm257_vm1, %v5729_v32  ;;  %324 = vst.msk [vmem:[#allocation2 + $0x91] sm:$0xff] %vm257_vm1, %v235_v45  ;;  %v5791_v47 = vld [vmem:[#allocation2 + $0x120] sm:$0xff]  ;;  %v875_v37 = vld [vmem:[#allocation2 + $0x9] sm:$0xff] }
  0x5a   : > { %340 = vst.msk [vmem:[#allocation2 + $0x151] sm:$0xff] %vm257_vm1, %v251_v46  ;;  %v5793_v48 = vld [vmem:[#allocation2 + $0x68] sm:$0xff] }
  0x5b   : > { %325 = vst.msk [vmem:[#allocation2 + $0x99] sm:$0xff] %vm257_vm1, %v236_v49  ;;  %v5807_v51 = vld [vmem:[#allocation2 + $0x128] sm:$0xff] }
  0x5c   : > { %341 = vst.msk [vmem:[#allocation2 + $0x159] sm:$0xff] %vm257_vm1, %v252_v50  ;;  %v5809_v52 = vld [vmem:[#allocation2 + $0x78] sm:$0xff]  ;;  %v5971_v45 = vld [vmem:[#allocation2 + $0x61] sm:$0xff] }
  0x5d   : > { %326 = vst.msk [vmem:[#allocation2 + $0xa9] sm:$0xff] %vm257_vm1, %v237_v53  ;;  %v5823_v55 = vld [vmem:[#allocation2 + $0x138] sm:$0xff] }
  0x5e   : > { %342 = vst.msk [vmem:[#allocation2 + $0x169] sm:$0xff] %vm257_vm1, %v253_v54  ;;  %v5825_v56 = vld [vmem:[#allocation2 + $0x80] sm:$0xff]  ;;  %v5986_v54 = vld [vmem:[#allocation2 + $0x69] sm:$0xff] }
  0x5f   : > { %4830 = vmatmul.msk.f32.gmra.mxu2 %vm257_vm1, %v5743_v35  ;;  %327 = vst.msk [vmem:[#allocation2 + $0xb1] sm:$0xff] %vm257_vm1, %v238_v57  ;;  %v5839_v59 = vld [vmem:[#allocation2 + $0x140] sm:$0xff] }
  0x60   : > { %4863 = vmatmul.msk.f32.gmra.mxu3 %vm257_vm1, %v5706_v26  ;;  %343 = vst.msk [vmem:[#allocation2 + $0x171] sm:$0xff] %vm257_vm1, %v254_v58  ;;  %v5841_v60 = vld [vmem:[#allocation2 + $0x90] sm:$0xff]  ;;  %v6001_v6 = vld [vmem:[#allocation2 + $0x79] sm:$0xff] }
  0x61   : > { %4815 = vmatmul.msk.f32.gmra.mxu0 %vm257_vm1, %v5745_v36  ;;  %4850 = vmatmul.msk.f32.gmra.mxu1 %vm257_vm1, %v5745_v36  ;;  %344 = vst.msk [vmem:[#allocation2 + $0x181] sm:$0xff] %vm257_vm1, %v255_v61  ;;  %v5853_v62 = vld [vmem:[#allocation2 + $0x150] sm:$0xff] }
  0x62   : > { %v5855_v63 = vld [vmem:[#allocation2 + $0x98] sm:$0xff]  ;;  %345 = vst.msk [vmem:[#allocation2 + $0x189] sm:$0xff] %vm257_vm1, %v256_v0 }
  0x63   : > { %v5867_v1 = vld [vmem:[#allocation2 + $0x158] sm:$0xff] }
  0x64   : > { %v5869_v3 = vld [vmem:[#allocation2 + $0xa8] sm:$0xff] }
  0x65   : > { %v5879_v4 = vld [vmem:[#allocation2 + $0x168] sm:$0xff] }
  0x66   : > { %v5881_v5 = vld [vmem:[#allocation2 + $0xb0] sm:$0xff] }
  0x67   : > { %4831 = vmatmul.msk.f32.gmra.mxu2 %vm257_vm1, %v5759_v39  ;;  %v5899_v8 = vld [vmem:[#allocation2 + $0x170] sm:$0xff] }
  0x68   : > { %4864 = vmatmul.msk.f32.gmra.mxu3 %vm257_vm1, %v5727_v31  ;;  %v5917_v15 = vld [vmem:[#allocation2 + $0x180] sm:$0xff] }
  0x69   : > { %4816 = vmatmul.msk.f32.gmra.mxu0 %vm257_vm1, %v5761_v40  ;;  %4851 = vmatmul.msk.f32.gmra.mxu1 %vm257_vm1, %v5761_v40  ;;  %v5932_v19 = vld [vmem:[#allocation2 + $0x188] sm:$0xff] }
  0x6f   : > { %4832 = vmatmul.msk.f32.gmra.mxu2 %vm257_vm1, %v5775_v43 }
  0x70   : > { %4865 = vmatmul.msk.f32.gmra.mxu3 %vm257_vm1, %v5743_v35 }
  0x71   : > { %4817 = vmatmul.msk.f32.gmra.mxu0 %vm257_vm1, %v5777_v44  ;;  %4852 = vmatmul.msk.f32.gmra.mxu1 %vm257_vm1, %v5777_v44 }
  0x77   : > { %4833 = vmatmul.msk.f32.gmra.mxu2 %vm257_vm1, %v5791_v47 }
  0x78   : > { %4866 = vmatmul.msk.f32.gmra.mxu3 %vm257_vm1, %v5759_v39 }
  0x79   : > { %4818 = vmatmul.msk.f32.gmra.mxu0 %vm257_vm1, %v5793_v48  ;;  %4853 = vmatmul.msk.f32.gmra.mxu1 %vm257_vm1, %v5793_v48 }
  0x7f   : > { %4834 = vmatmul.msk.f32.gmra.mxu2 %vm257_vm1, %v5807_v51 }
  0x80   : > { %4867 = vmatmul.msk.f32.gmra.mxu3 %vm257_vm1, %v5775_v43 }
  0x81   : > { %4819 = vmatmul.msk.f32.gmra.mxu0 %vm257_vm1, %v5809_v52  ;;  %4854 = vmatmul.msk.f32.gmra.mxu1 %vm257_vm1, %v5809_v52 }
  0x87   : > { %4835 = vmatmul.msk.f32.gmra.mxu2 %vm257_vm1, %v5823_v55 }
  0x88   : > { %4868 = vmatmul.msk.f32.gmra.mxu3 %vm257_vm1, %v5791_v47 }
  0x89   : > { %4820 = vmatmul.msk.f32.gmra.mxu0 %vm257_vm1, %v5825_v56  ;;  %4855 = vmatmul.msk.f32.gmra.mxu1 %vm257_vm1, %v5825_v56 }
  0x8f   : > { %4836 = vmatmul.msk.f32.gmra.mxu2 %vm257_vm1, %v5839_v59 }
  0x90   : > { %4869 = vmatmul.msk.f32.gmra.mxu3 %vm257_vm1, %v5807_v51 }
  0x91   : > { %4821 = vmatmul.msk.f32.gmra.mxu0 %vm257_vm1, %v5841_v60  ;;  %4856 = vmatmul.msk.f32.gmra.mxu1 %vm257_vm1, %v5841_v60 }
  0x94   : > { %v5901_v9 = vpop.f32.mrf.mxu1 }
  0x97   : > { %4837 = vmatmul.msk.f32.gmra.mxu2 %vm257_vm1, %v5853_v62  ;;  %v5928_v17 = vpop.f32.mrf.mxu0 }
  0x98   : > { %4870 = vmatmul.msk.f32.gmra.mxu3 %vm257_vm1, %v5823_v55 }
  0x99   : > { %4822 = vmatmul.msk.f32.gmra.mxu0 %vm257_vm1, %v5855_v63  ;;  %4857 = vmatmul.msk.f32.gmra.mxu1 %vm257_vm1, %v5855_v63 }
  0x9c   : > { %v5920_v16 = vpop.f32.mrf.mxu1 }
  0x9f   : > { %4838 = vmatmul.msk.f32.gmra.mxu2 %vm257_vm1, %v5867_v1 }
  0xa0   : > { %4871 = vmatmul.msk.f32.gmra.mxu3 %vm257_vm1, %v5839_v59 }
  0xa1   : > { %4823 = vmatmul.msk.f32.gmra.mxu0 %vm257_vm1, %v5869_v3  ;;  %4858 = vmatmul.msk.f32.gmra.mxu1 %vm257_vm1, %v5869_v3 }
  0xa4   : > { %v5936_v21 = vpop.f32.mrf.mxu1 }
  0xa7   : > { %4839 = vmatmul.msk.f32.gmra.mxu2 %vm257_vm1, %v5879_v4 }
  0xa8   : > { %4872 = vmatmul.msk.f32.gmra.mxu3 %vm257_vm1, %v5853_v62 }
  0xa9   : > { %4824 = vmatmul.msk.f32.gmra.mxu0 %vm257_vm1, %v5881_v5  ;;  %4859 = vmatmul.msk.f32.gmra.mxu1 %vm257_vm1, %v5881_v5 }
  0xaf   : > { %4840 = vmatmul.msk.f32.gmra.mxu2 %vm257_vm1, %v5899_v8 }
  0xb0   : > { %4873 = vmatmul.msk.f32.gmra.mxu3 %vm257_vm1, %v5867_v1 }
  0xb1   : > { %4825 = vmatmul.msk.f32.gmra.mxu0 %vm257_vm1, %v5655_v14  ;;  %4976 = vmatmul.msk.f32.vlgmr.msrb.gmra.mxu1 %vm257_vm1, %v878_v12 }
  0xb7   : > { %4841 = vmatmul.msk.f32.gmra.mxu2 %vm257_vm1, %v5917_v15 }
  0xb8   : > { %4874 = vmatmul.msk.f32.gmra.mxu3 %vm257_vm1, %v5879_v4 }
  0xb9   : > { %4826 = vmatmul.msk.f32.gmra.mxu0 %vm257_vm1, %v5711_v27  ;;  %4977 = vmatmul.msk.f32.gmra.mxu1 %vm257_vm1, %v5930_v18 }
  0xba   : > { %v5945_v23 = vpop.f32.mrf.mxu0  ;;  %v5949_v28 = vpop.f32.mrf.mxu1 }
  0xbd   : > { %v5954_v29 = vpop.f32.mrf.mxu2 }
  0xbe   : > { %8271 = vst [vmem:[#allocation4_spill] sm:$0xff] %v5954_v29  ;;  %v5956_v33 = vpop.f32.mrf.mxu3 }
  0xbf   : > { %4842 = vmatmul.msk.f32.gmra.mxu2 %vm257_vm1, %v5932_v19  ;;  %8272 = vst [vmem:[#allocation5_spill] sm:$0xff] %v5956_v33 }
  0xc0   : > { %4875 = vmatmul.msk.f32.gmra.mxu3 %vm257_vm1, %v5899_v8 }
  0xc1   : > { %4943 = vmatmul.msk.f32.vlgmr.msrb.gmra.mxu0 %vm257_vm1, %v876_v20  ;;  %4978 = vmatmul.msk.f32.gmra.mxu1 %vm257_vm1, %v5943_v22 }
  0xc7   : > { %4877 = vmatmul.msk.f32.vlgmr.msrb.gmra.mxu2 %vm257_vm1, %v5718_v30 }
  0xc8   : > { %4910 = vmatmul.msk.f32.vlgmr.msrb.gmra.mxu3 %vm257_vm1, %v874_v24  ;;  %v6016_v24 = vld [vmem:[#allocation2 + $0x81] sm:$0xff] }
  0xc9   : > { %4944 = vmatmul.msk.f32.gmra.mxu0 %vm257_vm1, %v877_v25  ;;  %4979 = vmatmul.msk.f32.gmra.mxu1 %vm257_vm1, %v5959_v34 }
  0xce   : > { %v5963_v38 = vpop.f32.mrf.mxu0  ;;  %v5965_v41 = vpop.f32.mrf.mxu1 }
  0xcf   : > { %4878 = vmatmul.msk.f32.gmra.mxu2 %vm257_vm1, %v5729_v32 }
  0xd0   : > { %4911 = vmatmul.msk.f32.gmra.mxu3 %vm257_vm1, %v875_v37 }
  0xd1   : > { %4945 = vmatmul.msk.f32.gmra.mxu0 %vm257_vm1, %v878_v12  ;;  %4980 = vmatmul.msk.f32.gmra.mxu1 %vm257_vm1, %v5971_v45 }
  0xd2   : > { %v552_v30 = vpop.f32.mrf.mxu2 }
  0xd3   : > { %v674_v42 = vpop.f32.mrf.mxu3 }
  0xd4   : > { %v5973_v46 = vadd.f32 %v674_v42, %v552_v30  ;;  %v6032_v42 = vld [vmem:[#allocation2 + $0x91] sm:$0xff] }
  0xd6   : > { %8273 = vst [vmem:[#allocation6_spill] sm:$0xff] %v5973_v46  ;;  %v5977_v49 = vpop.f32.mrf.mxu0  ;;  %v5979_v50 = vpop.f32.mrf.mxu1 }
  0xd7   : > { %4879 = vmatmul.msk.f32.gmra.mxu2 %vm257_vm1, %v5745_v36 }
  0xd8   : > { %4912 = vmatmul.msk.f32.gmra.mxu3 %vm257_vm1, %v876_v20 }
  0xd9   : > { %4946 = vmatmul.msk.f32.gmra.mxu0 %vm257_vm1, %v5930_v18  ;;  %4981 = vmatmul.msk.f32.gmra.mxu1 %vm257_vm1, %v5986_v54 }
  0xda   : > { %v555_v32 = vpop.f32.mrf.mxu2 }
  0xdb   : > { %v677_v53 = vpop.f32.mrf.mxu3 }
  0xdc   : > { %v5988_v57 = vadd.f32 %v677_v53, %v555_v32 }
  0xde   : > { %8274 = vst [vmem:[#allocation7_spill] sm:$0xff] %v5988_v57  ;;  %v5992_v58 = vpop.f32.mrf.mxu0  ;;  %v5994_v61 = vpop.f32.mrf.mxu1 }
  0xdf   : > { %4880 = vmatmul.msk.f32.gmra.mxu2 %vm257_vm1, %v5761_v40 }
  0xe0   : > { %4913 = vmatmul.msk.f32.gmra.mxu3 %vm257_vm1, %v877_v25 }
  0xe1   : > { %4947 = vmatmul.msk.f32.gmra.mxu0 %vm257_vm1, %v5943_v22  ;;  %4982 = vmatmul.msk.f32.gmra.mxu1 %vm257_vm1, %v6001_v6 }
  0xe2   : > { %v558_v36 = vpop.f32.mrf.mxu2 }
  0xe3   : > { %v680_v0 = vpop.f32.mrf.mxu3 }
  0xe4   : > { %v6003_v7 = vadd.f32 %v680_v0, %v558_v36  ;;  %v6046_v36 = vld [vmem:[#allocation2 + $0x99] sm:$0xff] }
  0xe6   : > { %8275 = vst [vmem:[#allocation8_spill] sm:$0xff] %v6003_v7  ;;  %v6007_v10 = vpop.f32.mrf.mxu0  ;;  %v6012_v40 = vpop.f32.mrf.mxu1 }
  0xe7   : > { %4881 = vmatmul.msk.f32.gmra.mxu2 %vm257_vm1, %v5777_v44 }
  0xe8   : > { %4914 = vmatmul.msk.f32.gmra.mxu3 %vm257_vm1, %v878_v12 }
  0xe9   : > { %4948 = vmatmul.msk.f32.gmra.mxu0 %vm257_vm1, %v5959_v34  ;;  %4983 = vmatmul.msk.f32.gmra.mxu1 %vm257_vm1, %v6016_v24 }
  0xea   : > { %v561_v11 = vpop.f32.mrf.mxu2 }
  0xeb   : > { %v683_v20 = vpop.f32.mrf.mxu3 }
  0xec   : > { %v6018_v25 = vadd.f32 %v683_v20, %v561_v11 }
  0xee   : > { %8276 = vst [vmem:[#allocation9_spill] sm:$0xff] %v6018_v25  ;;  %v6022_v37 = vpop.f32.mrf.mxu0  ;;  %v6030_v12 = vpop.f32.mrf.mxu1 }
  0xef   : > { %4882 = vmatmul.msk.f32.gmra.mxu2 %vm257_vm1, %v5793_v48 }
  0xf0   : > { %4915 = vmatmul.msk.f32.gmra.mxu3 %vm257_vm1, %v5930_v18 }
  0xf1   : > { %4949 = vmatmul.msk.f32.gmra.mxu0 %vm257_vm1, %v5971_v45  ;;  %4984 = vmatmul.msk.f32.gmra.mxu1 %vm257_vm1, %v6032_v42 }
  0xf2   : > { %v564_v44 = vpop.f32.mrf.mxu2 }
  0xf3   : > { %v686_v30 = vpop.f32.mrf.mxu3 }
  0xf4   : > { %v6034_v32 = vadd.f32 %v686_v30, %v564_v44  ;;  %v6062_v44 = vld [vmem:[#allocation2 + $0xa9] sm:$0xff] }
  0xf6   : > { %8277 = vst [vmem:[#allocation10_spill] sm:$0xff] %v6034_v32  ;;  %v6038_v53 = vpop.f32.mrf.mxu0  ;;  %v6050_v11 = vpop.f32.mrf.mxu1  ;;  %v6124_v32 = vld [vmem:[#allocation2 + $0xd9] sm:$0xff] }
  0xf7   : > { %4883 = vmatmul.msk.f32.gmra.mxu2 %vm257_vm1, %v5809_v52 }
  0xf8   : > { %4916 = vmatmul.msk.f32.gmra.mxu3 %vm257_vm1, %v5943_v22 }
  0xf9   : > { %4950 = vmatmul.msk.f32.gmra.mxu0 %vm257_vm1, %v5986_v54  ;;  %4985 = vmatmul.msk.f32.gmra.mxu1 %vm257_vm1, %v6046_v36 }
  0xfa   : > { %v567_v48 = vpop.f32.mrf.mxu2 }
  0xfb   : > { %v689_v18 = vpop.f32.mrf.mxu3 }
  0xfc   : > { %v6048_v0 = vadd.f32 %v689_v18, %v567_v48 }
  0xfe   : > { %8278 = vst [vmem:[#allocation11_spill] sm:$0xff] %v6048_v0  ;;  %v6054_v20 = vpop.f32.mrf.mxu0  ;;  %v6070_v18 = vpop.f32.mrf.mxu1 }
  0xff   : > { %4884 = vmatmul.msk.f32.gmra.mxu2 %vm257_vm1, %v5825_v56 }
 0x100   : > { %4917 = vmatmul.msk.f32.gmra.mxu3 %vm257_vm1, %v5959_v34 }
 0x101   : > { %4951 = vmatmul.msk.f32.gmra.mxu0 %vm257_vm1, %v6001_v6  ;;  %4986 = vmatmul.msk.f32.gmra.mxu1 %vm257_vm1, %v6062_v44 }
 0x102   : > { %v570_v52 = vpop.f32.mrf.mxu2 }
 0x103   : > { %v692_v22 = vpop.f32.mrf.mxu3 }
 0x104   : > { %v6064_v30 = vadd.f32 %v692_v22, %v570_v52  ;;  %v6078_v52 = vld [vmem:[#allocation2 + $0xb1] sm:$0xff] }
 0x106   : > { %8279 = vst [vmem:[#allocation12_spill] sm:$0xff] %v6064_v30  ;;  %v6068_v48 = vpop.f32.mrf.mxu0 }
 0x107   : > { %4885 = vmatmul.msk.f32.gmra.mxu2 %vm257_vm1, %v5841_v60  ;;  %v6090_v60 = vpop.f32.mrf.mxu1 }
 0x108   : > { %4918 = vmatmul.msk.f32.gmra.mxu3 %vm257_vm1, %v5971_v45 }
 0x109   : > { %4952 = vmatmul.msk.f32.gmra.mxu0 %vm257_vm1, %v6016_v24  ;;  %4987 = vmatmul.msk.f32.gmra.mxu1 %vm257_vm1, %v6078_v52 }
 0x10a   : > { %v573_v56 = vpop.f32.mrf.mxu2 }
 0x10b   : > { %v695_v34 = vpop.f32.mrf.mxu3 }
 0x10c   : > { %v6080_v22 = vadd.f32 %v695_v34, %v573_v56  ;;  %v6094_v56 = vld [vmem:[#allocation2 + $0xc1] sm:$0xff] }
 0x10e   : > { %8280 = vst [vmem:[#allocation13_spill] sm:$0xff] %v6080_v22  ;;  %v6084_v2 = vpop.f32.mrf.mxu0 }
 0x10f   : > { %4886 = vmatmul.msk.f32.gmra.mxu2 %vm257_vm1, %v5855_v63 }
 0x110   : > { %4919 = vmatmul.msk.f32.gmra.mxu3 %vm257_vm1, %v5986_v54  ;;  %v6108_v54 = vpop.f32.mrf.mxu1 }
 0x111   : > { %4953 = vmatmul.msk.f32.gmra.mxu0 %vm257_vm1, %v6032_v42  ;;  %4988 = vmatmul.msk.f32.gmra.mxu1 %vm257_vm1, %v6094_v56 }
 0x112   : > { %v576_v45 = vpop.f32.mrf.mxu2 }
 0x113   : > { %v698_v30 = vpop.f32.mrf.mxu3 }
 0x114   : > { %v6096_v34 = vadd.f32 %v698_v30, %v576_v45  ;;  %v6110_v30 = vld [vmem:[#allocation2 + $0xc9] sm:$0xff] }
 0x116   : > { %8281 = vst [vmem:[#allocation14_spill] sm:$0xff] %v6096_v34  ;;  %v6100_v22 = vpop.f32.mrf.mxu0 }
 0x117   : > { %4887 = vmatmul.msk.f32.gmra.mxu2 %vm257_vm1, %v5869_v3 }
 0x118   : > { %4920 = vmatmul.msk.f32.gmra.mxu3 %vm257_vm1, %v6001_v6 }
 0x119   : > { %4954 = vmatmul.msk.f32.gmra.mxu0 %vm257_vm1, %v6046_v36  ;;  %4989 = vmatmul.msk.f32.gmra.mxu1 %vm257_vm1, %v6110_v30 }
 0x11a   : > { %v579_v63 = vpop.f32.mrf.mxu2 }
 0x11b   : > { %v701_v0 = vpop.f32.mrf.mxu3 }
 0x11c   : > { %v6112_v45 = vadd.f32 %v701_v0, %v579_v63  ;;  %v6128_v63 = vpop.f32.mrf.mxu1 }
 0x11e   : > { %8282 = vst [vmem:[#allocation15_spill] sm:$0xff] %v6112_v45  ;;  %v6116_v34 = vpop.f32.mrf.mxu0 }
 0x11f   : > { %4888 = vmatmul.msk.f32.gmra.mxu2 %vm257_vm1, %v5881_v5 }
 0x120   : > { %4921 = vmatmul.msk.f32.gmra.mxu3 %vm257_vm1, %v6016_v24 }
 0x121   : > { %4955 = vmatmul.msk.f32.gmra.mxu0 %vm257_vm1, %v6062_v44  ;;  %4990 = vmatmul.msk.f32.gmra.mxu1 %vm257_vm1, %v6124_v32 }
 0x122   : > { %v582_v3 = vpop.f32.mrf.mxu2 }
 0x123   : > { %v704_v6 = vpop.f32.mrf.mxu3 }
 0x124   : > { %v6126_v0 = vadd.f32 %v704_v6, %v582_v3  ;;  %v6140_v3 = vld [vmem:[#allocation2 + $0xe1] sm:$0xff]  ;;  %v6148_v25 = vpop.f32.mrf.mxu1 }
 0x126   : > { %8283 = vst [vmem:[#allocation16_spill] sm:$0xff] %v6126_v0  ;;  %v6132_v45 = vpop.f32.mrf.mxu0 }
 0x127   : > { %4889 = vmatmul.msk.f32.gmra.mxu2 %vm257_vm1, %v5655_v14 }
 0x128   : > { %4922 = vmatmul.msk.f32.gmra.mxu3 %vm257_vm1, %v6032_v42 }
 0x129   : > { %4956 = vmatmul.msk.f32.gmra.mxu0 %vm257_vm1, %v6078_v52  ;;  %4991 = vmatmul.msk.f32.gmra.mxu1 %vm257_vm1, %v6140_v3 }
 0x12a   : > { %v585_v5 = vpop.f32.mrf.mxu2 }
 0x12b   : > { %v707_v24 = vpop.f32.mrf.mxu3 }
 0x12c   : > { %v6142_v6 = vadd.f32 %v707_v24, %v585_v5  ;;  %v6156_v5 = vld [vmem:[#allocation2 + $0xf1] sm:$0xff] }
 0x12e   : > { %8284 = vst [vmem:[#allocation17_spill] sm:$0xff] %v6142_v6  ;;  %v6146_v0 = vpop.f32.mrf.mxu0 }
 0x12f   : > { %4890 = vmatmul.msk.f32.gmra.mxu2 %vm257_vm1, %v5711_v27  ;;  %v6168_v27 = vpop.f32.mrf.mxu1 }
 0x130   : > { %4923 = vmatmul.msk.f32.gmra.mxu3 %vm257_vm1, %v6046_v36 }
 0x131   : > { %4957 = vmatmul.msk.f32.gmra.mxu0 %vm257_vm1, %v6094_v56  ;;  %4992 = vmatmul.msk.f32.gmra.mxu1 %vm257_vm1, %v6156_v5 }
 0x132   : > { %v588_v14 = vpop.f32.mrf.mxu2 }
 0x133   : > { %v710_v42 = vpop.f32.mrf.mxu3 }
 0x134   : > { %v6158_v24 = vadd.f32 %v710_v42, %v588_v14  ;;  %v6172_v14 = vld [vmem:[#allocation2 + $0xf9] sm:$0xff] }
 0x136   : > { %8285 = vst [vmem:[#allocation18_spill] sm:$0xff] %v6158_v24  ;;  %v6162_v6 = vpop.f32.mrf.mxu0 }
 0x137   : > { %4891 = vmatmul.msk.f32.gmra.mxu2 %vm257_vm1, %v5648_v13  ;;  %v2314_v13 = vld [vmem:[%s8266_s3 + $0x18] sm:$0xff] }
 0x138   : > { %4924 = vmatmul.msk.f32.gmra.mxu3 %vm257_vm1, %v6062_v44  ;;  %2426 = vmatpush.msra.mxu1 %v2314_v13  ;;  %v1337_v44 = vpop.f32.mrf.mxu1 }
 0x139   : > { %4958 = vmatmul.msk.f32.gmra.mxu0 %vm257_vm1, %v6110_v30  ;;  %4993 = vmatmul.msk.f32.gmra.mxu1 %vm257_vm1, %v6172_v14 }
 0x13a   : > { %v591_v36 = vpop.f32.mrf.mxu2 }
 0x13b   : > { %v713_v7 = vpop.f32.mrf.mxu3 }
 0x13c   : > { %v6174_v42 = vadd.f32 %v713_v7, %v591_v36 }
 0x13e   : > { %8286 = vst [vmem:[#allocation19_spill] sm:$0xff] %v6174_v42  ;;  %v1182_v24 = vpop.f32.mrf.mxu0  ;;  %v6187_v42 = vld [vmem:[#allocation2 + $0x109] sm:$0xff] }
 0x13f   : > { %4892 = vmatmul.msk.f32.gmra.mxu2 %vm257_vm1, %v5706_v26  ;;  %v624_v26 = vadd.f32 %v5901_v9, %v5928_v17  ;;  %v627_v9 = vadd.f32 %v5920_v16, %v5945_v23  ;;  %v630_v23 = vadd.f32 %v5936_v21, %v5963_v38  ;;  %v633_v38 = vadd.f32 %v5949_v28, %v5977_v49 }
 0x140   : > { %4925 = vmatmul.msk.f32.gmra.mxu3 %vm257_vm1, %v6078_v52  ;;  %v1340_v46 = vpop.f32.mrf.mxu1  ;;  %v636_v49 = vadd.f32 %v5965_v41, %v5992_v58  ;;  %v639_v41 = vadd.f32 %v5979_v50, %v6007_v10  ;;  %v642_v10 = vadd.f32 %v5994_v61, %v6022_v37  ;;  %v645_v37 = vadd.f32 %v6012_v40, %v6038_v53 }
 0x141   : > { %4959 = vmatmul.msk.f32.gmra.mxu0 %vm257_vm1, %v6124_v32  ;;  %4994 = vmatmul.msk.f32.gmra.mxu1 %vm257_vm1, %v6187_v42  ;;  %v648_v40 = vadd.f32 %v6030_v12, %v6054_v20  ;;  %v651_v12 = vadd.f32 %v6050_v11, %v6068_v48  ;;  %v654_v11 = vadd.f32 %v6070_v18, %v6084_v2 }
 0x142   : > { %v594_v7 = vpop.f32.mrf.mxu2  ;;  %v657_v2 = vadd.f32 %v6090_v60, %v6100_v22  ;;  %v660_v22 = vadd.f32 %v6108_v54, %v6116_v34  ;;  %v663_v34 = vadd.f32 %v6128_v63, %v6132_v45 }
 0x143   : > { %v716_v36 = vpop.f32.mrf.mxu3 }
 0x144   : > { %v6189_v57 = vadd.f32 %v716_v36, %v594_v7 }
 0x146   : > { %8287 = vst [vmem:[#allocation20_spill] sm:$0xff] %v6189_v57  ;;  %v1185_v13 = vpop.f32.mrf.mxu0  ;;  %v6201_v57 = vld [vmem:[#allocation2 + $0x111] sm:$0xff] }
 0x147   : > { %4893 = vmatmul.msk.f32.gmra.mxu2 %vm257_vm1, %v5727_v31 }
 0x148   : > { %4926 = vmatmul.msk.f32.gmra.mxu3 %vm257_vm1, %v6094_v56 }
 0x149   : > { %4960 = vmatmul.msk.f32.gmra.mxu0 %vm257_vm1, %v6140_v3  ;;  %4995 = vmatmul.msk.f32.gmra.mxu1 %vm257_vm1, %v6201_v57 }
 0x14a   : > { %v746_v52 = vpop.f32.mrf.mxu2 }
 0x14b   : > { %v842_v7 = vadd.f32 %v746_v52, %v624_v26  ;;  %v1027_v36 = vpop.f32.mrf.mxu3 }
 0x14d   : > { %v1123_v33 = vadd.f32 %v1027_v36, %v842_v7  ;;  %v6215_v7 = vld [vmem:[#allocation2 + $0x121] sm:$0xff]  ;;  %v1343_v36 = vpop.f32.mrf.mxu1 }
 0x14e   : > { %v1188_v31 = vpop.f32.mrf.mxu0 }
 0x14f   : > { %4894 = vmatmul.msk.f32.gmra.mxu2 %vm257_vm1, %v5743_v35  ;;  %v1278_v56 = vadd.f32 %v1182_v24, %v1123_v33 }
 0x150   : > { %4927 = vmatmul.msk.f32.gmra.mxu3 %vm257_vm1, %v6110_v30 }
 0x151   : > { %v6211_v17 = vadd.f32 %v1337_v44, %v1278_v56  ;;  %4961 = vmatmul.msk.f32.gmra.mxu0 %vm257_vm1, %v6156_v5  ;;  %4996 = vmatmul.msk.f32.gmra.mxu1 %vm257_vm1, %v6215_v7 }
 0x152   : > { %v749_v26 = vpop.f32.mrf.mxu2 }
 0x153   : > { %v843_v52 = vadd.f32 %v749_v26, %v627_v9  ;;  %v1030_v29 = vpop.f32.mrf.mxu3 }
 0x155   : > { %v1124_v35 = vadd.f32 %v1030_v29, %v843_v52  ;;  %v6229_v29 = vld [vmem:[#allocation2 + $0x129] sm:$0xff]  ;;  %v1346_v9 = vpop.f32.mrf.mxu1 }
 0x156   : > { %v1191_v33 = vpop.f32.mrf.mxu0 }
 0x157   : > { %4895 = vmatmul.msk.f32.gmra.mxu2 %vm257_vm1, %v5759_v39  ;;  %v1279_v16 = vadd.f32 %v1185_v13, %v1124_v35  ;;  %v6243_v35 = vld [vmem:[#allocation2 + $0x139] sm:$0xff] }
 0x158   : > { %4928 = vmatmul.msk.f32.gmra.mxu3 %vm257_vm1, %v6124_v32 }
 0x159   : > { %v6225_v30 = vadd.f32 %v1340_v46, %v1279_v16  ;;  %4962 = vmatmul.msk.f32.gmra.mxu0 %vm257_vm1, %v6172_v14  ;;  %4997 = vmatmul.msk.f32.gmra.mxu1 %vm257_vm1, %v6229_v29 }
 0x15a   : > { %v752_v24 = vpop.f32.mrf.mxu2 }
 0x15b   : > { %v844_v44 = vadd.f32 %v752_v24, %v630_v23  ;;  %v1033_v56 = vpop.f32.mrf.mxu3 }
 0x15d   : > { %v1125_v39 = vadd.f32 %v1033_v56, %v844_v44  ;;  %v1349_v28 = vpop.f32.mrf.mxu1  ;;  %v6257_v44 = vld [vmem:[#allocation2 + $0x141] sm:$0xff] }
 0x15e   : > { %v1194_v13 = vpop.f32.mrf.mxu0 }
 0x15f   : > { %4896 = vmatmul.msk.f32.gmra.mxu2 %vm257_vm1, %v5775_v43  ;;  %v1280_v21 = vadd.f32 %v1188_v31, %v1125_v39 }
 0x160   : > { %4929 = vmatmul.msk.f32.gmra.mxu3 %vm257_vm1, %v6140_v3 }
 0x161   : > { %v6239_v46 = vadd.f32 %v1343_v36, %v1280_v21  ;;  %4963 = vmatmul.msk.f32.gmra.mxu0 %vm257_vm1, %v6187_v42  ;;  %4998 = vmatmul.msk.f32.gmra.mxu1 %vm257_vm1, %v6243_v35 }
 0x162   : > { %v755_v32 = vpop.f32.mrf.mxu2 }
 0x163   : > { %v845_v26 = vadd.f32 %v755_v32, %v633_v38  ;;  %v1036_v52 = vpop.f32.mrf.mxu3  ;;  %v6271_v38 = vld [vmem:[#allocation2 + $0x151] sm:$0xff] }
 0x165   : > { %v1126_v43 = vadd.f32 %v1036_v52, %v845_v26  ;;  %v1352_v39 = vpop.f32.mrf.mxu1 }
 0x166   : > { %v1197_v31 = vpop.f32.mrf.mxu0 }
 0x167   : > { %4897 = vmatmul.msk.f32.gmra.mxu2 %vm257_vm1, %v5791_v47  ;;  %v1281_v3 = vadd.f32 %v1191_v33, %v1126_v43  ;;  %v6285_v43 = vld [vmem:[#allocation2 + $0x159] sm:$0xff] }
 0x168   : > { %4930 = vmatmul.msk.f32.gmra.mxu3 %vm257_vm1, %v6156_v5 }
 0x169   : > { %v6253_v36 = vadd.f32 %v1346_v9, %v1281_v3  ;;  %4964 = vmatmul.msk.f32.gmra.mxu0 %vm257_vm1, %v6201_v57  ;;  %4999 = vmatmul.msk.f32.gmra.mxu1 %vm257_vm1, %v6257_v44 }
 0x16a   : > { %v758_v16 = vpop.f32.mrf.mxu2 }
 0x16b   : > { %v846_v23 = vadd.f32 %v758_v16, %v636_v49  ;;  %v1039_v24 = vpop.f32.mrf.mxu3 }
 0x16d   : > { %v1127_v47 = vadd.f32 %v1039_v24, %v846_v23  ;;  %v1355_v3 = vpop.f32.mrf.mxu1  ;;  %v6299_v23 = vld [vmem:[#allocation2 + $0x169] sm:$0xff] }
 0x16e   : > { %v1200_v33 = vpop.f32.mrf.mxu0 }
 0x16f   : > { %4898 = vmatmul.msk.f32.gmra.mxu2 %vm257_vm1, %v5807_v51  ;;  %v1282_v5 = vadd.f32 %v1194_v13, %v1127_v47 }
 0x170   : > { %4931 = vmatmul.msk.f32.gmra.mxu3 %vm257_vm1, %v6172_v14 }
 0x171   : > { %v6267_v58 = vadd.f32 %v1349_v28, %v1282_v5  ;;  %4965 = vmatmul.msk.f32.gmra.mxu0 %vm257_vm1, %v6215_v7  ;;  %5000 = vmatmul.msk.f32.gmra.mxu1 %vm257_vm1, %v6271_v38 }
 0x172   : > { %v761_v56 = vpop.f32.mrf.mxu2 }
 0x173   : > { %v847_v9 = vadd.f32 %v761_v56, %v639_v41  ;;  %v1042_v21 = vpop.f32.mrf.mxu3  ;;  %v6313_v56 = vld [vmem:[#allocation2 + $0x171] sm:$0xff] }
 0x175   : > { %v1128_v51 = vadd.f32 %v1042_v21, %v847_v9  ;;  %v1358_v24 = vpop.f32.mrf.mxu1 }
 0x176   : > { %v1203_v13 = vpop.f32.mrf.mxu0 }
 0x177   : > { %4899 = vmatmul.msk.f32.gmra.mxu2 %vm257_vm1, %v5823_v55  ;;  %v1283_v50 = vadd.f32 %v1197_v31, %v1128_v51  ;;  %v906_v51 = vld [vmem:[#allocation2 + $0x181] sm:$0xff] }
 0x178   : > { %4932 = vmatmul.msk.f32.gmra.mxu3 %vm257_vm1, %v6187_v42 }
 0x179   : > { %v6281_v14 = vadd.f32 %v1352_v39, %v1283_v50  ;;  %4966 = vmatmul.msk.f32.gmra.mxu0 %vm257_vm1, %v6229_v29  ;;  %5001 = vmatmul.msk.f32.gmra.mxu1 %vm257_vm1, %v6285_v43 }
 0x17a   : > { %v764_v32 = vpop.f32.mrf.mxu2 }
 0x17b   : > { %v848_v26 = vadd.f32 %v764_v32, %v642_v10  ;;  %v1045_v52 = vpop.f32.mrf.mxu3  ;;  %v907_v32 = vld [vmem:[#allocation2 + $0x189] sm:$0xff] }
 0x17d   : > { %v1129_v55 = vadd.f32 %v1045_v52, %v848_v26 }
 0x17e   : > { %v1206_v31 = vpop.f32.mrf.mxu0 }
 0x17f   : > { %4900 = vmatmul.msk.f32.gmra.mxu2 %vm257_vm1, %v5839_v59  ;;  %v1284_v61 = vadd.f32 %v1200_v33, %v1129_v55  ;;  %v908_v55 = vld [vmem:[#allocation2 + $0x199] sm:$0xff] }
 0x180   : > { %4933 = vmatmul.msk.f32.gmra.mxu3 %vm257_vm1, %v6201_v57 }
 0x181   : > { %v6295_v42 = vadd.f32 %v1355_v3, %v1284_v61  ;;  %4967 = vmatmul.msk.f32.gmra.mxu0 %vm257_vm1, %v6243_v35  ;;  %5002 = vmatmul.msk.f32.gmra.mxu1 %vm257_vm1, %v6299_v23 }
 0x182   : > { %v767_v28 = vpop.f32.mrf.mxu2 }
 0x183   : > { %v849_v49 = vadd.f32 %v767_v28, %v645_v37  ;;  %v1048_v16 = vpop.f32.mrf.mxu3  ;;  %v909_v28 = vld [vmem:[#allocation2 + $0x1a1] sm:$0xff] }
 0x185   : > { %v1130_v59 = vadd.f32 %v1048_v16, %v849_v49 }
 0x186   : > { %v1209_v47 = vpop.f32.mrf.mxu0 }
 0x187   : > { %4901 = vmatmul.msk.f32.gmra.mxu2 %vm257_vm1, %v5853_v62  ;;  %v1285_v57 = vadd.f32 %v1203_v13, %v1130_v59 }
 0x188   : > { %4934 = vmatmul.msk.f32.gmra.mxu3 %vm257_vm1, %v6215_v7 }
 0x189   : > { %v6309_v53 = vadd.f32 %v1358_v24, %v1285_v57  ;;  %4968 = vmatmul.msk.f32.gmra.mxu0 %vm257_vm1, %v6257_v44  ;;  %5003 = vmatmul.msk.f32.gmra.mxu1 %vm257_vm1, %v6313_v56  ;;  %v380_v24 = vld [vmem:[#allocation2 + $0x198] sm:$0xff] }
 0x18a   : > { %v770_v33 = vpop.f32.mrf.mxu2 }
 0x18b   : > { %v850_v5 = vadd.f32 %v770_v33, %v648_v40  ;;  %v1051_v41 = vpop.f32.mrf.mxu3  ;;  %v381_v33 = vld [vmem:[#allocation2 + $0x1a0] sm:$0xff] }
 0x18d   : > { %v1131_v62 = vadd.f32 %v1051_v41, %v850_v5 }
 0x18e   : > { %v1212_v39 = vpop.f32.mrf.mxu0 }
 0x18f   : > { %4902 = vmatmul.msk.f32.gmra.mxu2 %vm257_vm1, %v5867_v1  ;;  %v6319_v7 = vadd.f32 %v1206_v31, %v1131_v62  ;;  %v1469_v62 = vld [vmem:[#allocation2 + $0x32] sm:$0xff] }
 0x190   : > { %4935 = vmatmul.msk.f32.gmra.mxu3 %vm257_vm1, %v6229_v29 }
 0x191   : > { %4969 = vmatmul.msk.f32.gmra.mxu0 %vm257_vm1, %v6271_v38  ;;  %5004 = vmatmul.msk.f32.gmra.mxu1 %vm257_vm1, %v906_v51 }
 0x192   : > { %v773_v20 = vpop.f32.mrf.mxu2 }
 0x193   : > { %v851_v9 = vadd.f32 %v773_v20, %v651_v12  ;;  %v1054_v21 = vpop.f32.mrf.mxu3  ;;  %v1465_v20 = vld [vmem:[#allocation2 + $0x2] sm:$0xff] }
 0x195   : > { %v1132_v13 = vadd.f32 %v1054_v21, %v851_v9  ;;  %v1467_v21 = vld [vmem:[#allocation2 + $0x1a] sm:$0xff] }
 0x196   : > { %v1215_v50 = vpop.f32.mrf.mxu0 }
 0x197   : > { %4903 = vmatmul.msk.f32.gmra.mxu2 %vm257_vm1, %v5879_v4  ;;  %v6330_v1 = vadd.f32 %v1209_v47, %v1132_v13  ;;  %v1470_v13 = vld [vmem:[#allocation2 + $0x3a] sm:$0xff] }
 0x198   : > { %4936 = vmatmul.msk.f32.gmra.mxu3 %vm257_vm1, %v6243_v35 }
 0x199   : > { %4970 = vmatmul.msk.f32.gmra.mxu0 %vm257_vm1, %v6285_v43  ;;  %5005 = vmatmul.msk.f32.gmra.mxu1 %vm257_vm1, %v907_v32 }
 0x19a   : > { %v776_v48 = vpop.f32.mrf.mxu2 }
 0x19b   : > { %v852_v29 = vadd.f32 %v776_v48, %v654_v11  ;;  %v1057_v10 = vpop.f32.mrf.mxu3  ;;  %v8289_v11 = vld [vmem:[#allocation5_spill] sm:$0xff] }
 0x19d   : > { %v1133_v26 = vadd.f32 %v1057_v10, %v852_v29  ;;  %v1466_v10 = vld [vmem:[#allocation2 + $0xa] sm:$0xff] }
 0x19e   : > { %v1218_v52 = vpop.f32.mrf.mxu0 }
 0x19f   : > { %4904 = vmatmul.msk.f32.gmra.mxu2 %vm257_vm1, %v5899_v8  ;;  %v6341_v4 = vadd.f32 %v1212_v39, %v1133_v26  ;;  %v1468_v26 = vld [vmem:[#allocation2 + $0x22] sm:$0xff] }
 0x1a0   : > { %4937 = vmatmul.msk.f32.gmra.mxu3 %vm257_vm1, %v6257_v44 }
 0x1a1   : > { %4971 = vmatmul.msk.f32.gmra.mxu0 %vm257_vm1, %v6299_v23  ;;  %5006 = vmatmul.msk.f32.gmra.mxu1 %vm257_vm1, %v908_v55 }
 0x1a2   : > { %v779_v18 = vpop.f32.mrf.mxu2 }
 0x1a3   : > { %v853_v35 = vadd.f32 %v779_v18, %v657_v2  ;;  %v1060_v3 = vpop.f32.mrf.mxu3  ;;  %v1471_v2 = vld [vmem:[#allocation2 + $0x4a] sm:$0xff] }
 0x1a5   : > { %v1134_v31 = vadd.f32 %v1060_v3, %v853_v35  ;;  %v8290_v3 = vld [vmem:[#allocation6_spill] sm:$0xff] }
 0x1a6   : > { %v1221_v61 = vpop.f32.mrf.mxu0 }
 0x1a7   : > { %4905 = vmatmul.msk.f32.gmra.mxu2 %vm257_vm1, %v5917_v15  ;;  %v6352_v8 = vadd.f32 %v1215_v50, %v1134_v31 }
 0x1a8   : > { %4938 = vmatmul.msk.f32.gmra.mxu3 %vm257_vm1, %v6271_v38 }
 0x1a9   : > { %4972 = vmatmul.msk.f32.gmra.mxu0 %vm257_vm1, %v6313_v56  ;;  %5007 = vmatmul.msk.f32.gmra.mxu1 %vm257_vm1, %v909_v28  ;;  %v8291_v28 = vld [vmem:[#allocation7_spill] sm:$0xff] }
 0x1aa   : > { %v782_v60 = vpop.f32.mrf.mxu2 }
 0x1ab   : > { %v854_v44 = vadd.f32 %v782_v60, %v660_v22  ;;  %v1063_v37 = vpop.f32.mrf.mxu3  ;;  %v1472_v60 = vld [vmem:[#allocation2 + $0x52] sm:$0xff] }
 0x1ad   : > { %v1135_v49 = vadd.f32 %v1063_v37, %v854_v44 }
 0x1ae   : > { %v1224_v16 = vpop.f32.mrf.mxu0 }
 0x1af   : > { %4906 = vmatmul.msk.f32.gmra.mxu2 %vm257_vm1, %v5932_v19  ;;  %v6363_v15 = vadd.f32 %v1218_v52, %v1135_v49  ;;  %v666_v19 = vadd.f32 %v6148_v25, %v6146_v0 }
 0x1b0   : > { %4939 = vmatmul.msk.f32.gmra.mxu3 %vm257_vm1, %v6285_v43 }
 0x1b1   : > { %4973 = vmatmul.msk.f32.gmra.mxu0 %vm257_vm1, %v906_v51 }
 0x1b2   : > { %v785_v54 = vpop.f32.mrf.mxu2 }
 0x1b3   : > { %v855_v38 = vadd.f32 %v785_v54, %v663_v34  ;;  %v1066_v59 = vpop.f32.mrf.mxu3 }
 0x1b5   : > { %v1136_v47 = vadd.f32 %v1066_v59, %v855_v38  ;;  %v1473_v38 = vld [vmem:[#allocation2 + $0x62] sm:$0xff] }
 0x1b6   : > { %v1227_v57 = vpop.f32.mrf.mxu0 }
 0x1b7   : > { %4907 = vmatmul.msk.f32.gmra.mxu2 %vm257_vm1, %v380_v24  ;;  %v6371_v40 = vadd.f32 %v1221_v61, %v1136_v47  ;;  %v8292_v47 = vld [vmem:[#allocation8_spill] sm:$0xff] }
 0x1b8   : > { %4940 = vmatmul.msk.f32.gmra.mxu3 %vm257_vm1, %v6299_v23  ;;  %v669_v23 = vadd.f32 %v6168_v27, %v6162_v6 }
 0x1b9   : > { %4974 = vmatmul.msk.f32.gmra.mxu0 %vm257_vm1, %v907_v32 }
 0x1ba   : > { %v788_v45 = vpop.f32.mrf.mxu2 }
 0x1bb   : > { %v856_v63 = vadd.f32 %v788_v45, %v666_v19  ;;  %v1069_v43 = vpop.f32.mrf.mxu3 }
 0x1bd   : > { %v1137_v5 = vadd.f32 %v1069_v43, %v856_v63  ;;  %v1474_v43 = vld [vmem:[#allocation2 + $0x6a] sm:$0xff] }
 0x1be   : > { %v1230_v41 = vpop.f32.mrf.mxu0 }
 0x1bf   : > { %4908 = vmatmul.msk.f32.gmra.mxu2 %vm257_vm1, %v381_v33  ;;  %v6379_v39 = vadd.f32 %v1224_v16, %v1137_v5 }
 0x1c0   : > { %4941 = vmatmul.msk.f32.gmra.mxu3 %vm257_vm1, %v6313_v56  ;;  %v8288_v56 = vld [vmem:[#allocation4_spill] sm:$0xff] }
 0x1c1   : > { %5075 = vmatmul.msk.f32.vlgmr.msra.gmra.mxu0 %vm257_vm1, %v1469_v62  ;;  %v672_v48 = vadd.f32 %v8289_v11, %v8288_v56 }
 0x1c2   : > { %v791_v25 = vpop.f32.mrf.mxu2 }
 0x1c3   : > { %v857_v0 = vadd.f32 %v791_v25, %v669_v23  ;;  %v1072_v12 = vpop.f32.mrf.mxu3 }
 0x1c5   : > { %v1138_v9 = vadd.f32 %v1072_v12, %v857_v0 }
 0x1c6   : > { %v1233_v51 = vpop.f32.mrf.mxu0 }
 0x1c7   : > { %5009 = vmatmul.msk.f32.vlgmr.msra.gmra.mxu2 %vm257_vm1, %v1465_v20  ;;  %v6387_v50 = vadd.f32 %v1227_v57, %v1138_v9  ;;  %v1475_v20 = vld [vmem:[#allocation2 + $0x7a] sm:$0xff] }
 0x1c8   : > { %5042 = vmatmul.msk.f32.vlgmr.msra.gmra.mxu3 %vm257_vm1, %v1467_v21 }
 0x1c9   : > { %5076 = vmatmul.msk.f32.gmra.mxu0 %vm257_vm1, %v1470_v13 }
 0x1ca   : > { %v794_v6 = vpop.f32.mrf.mxu2 }
 0x1cb   : > { %v858_v27 = vadd.f32 %v794_v6, %v672_v48  ;;  %v1075_v29 = vpop.f32.mrf.mxu3 }
 0x1cd   : > { %v1139_v32 = vadd.f32 %v1075_v29, %v858_v27  ;;  %v1476_v27 = vld [vmem:[#allocation2 + $0x82] sm:$0xff] }
 0x1ce   : > { %v1236_v52 = vpop.f32.mrf.mxu0 }
 0x1cf   : > { %5010 = vmatmul.msk.f32.gmra.mxu2 %vm257_vm1, %v1466_v10  ;;  %v6394_v18 = vadd.f32 %v1230_v41, %v1139_v32  ;;  %v8293_v41 = vld [vmem:[#allocation9_spill] sm:$0xff]  ;;  %v8295_v32 = vld [vmem:[#allocation11_spill] sm:$0xff] }
 0x1d0   : > { %5043 = vmatmul.msk.f32.gmra.mxu3 %vm257_vm1, %v1468_v26 }
 0x1d1   : > { %5077 = vmatmul.msk.f32.gmra.mxu0 %vm257_vm1, %v1471_v2 }
 0x1d2   : > { %v797_v35 = vpop.f32.mrf.mxu2 }
 0x1d3   : > { %v859_v55 = vadd.f32 %v797_v35, %v8290_v3  ;;  %v1078_v31 = vpop.f32.mrf.mxu3 }
 0x1d5   : > { %v1140_v61 = vadd.f32 %v1078_v31, %v859_v55  ;;  %v1477_v55 = vld [vmem:[#allocation2 + $0x92] sm:$0xff] }
 0x1d6   : > { %v1239_v22 = vpop.f32.mrf.mxu0 }
 0x1d7   : > { %5011 = vmatmul.msk.f32.gmra.mxu2 %vm257_vm1, %v1467_v21  ;;  %v6400_v44 = vadd.f32 %v1233_v51, %v1140_v61  ;;  %v8294_v51 = vld [vmem:[#allocation10_spill] sm:$0xff]  ;;  %v8296_v61 = vld [vmem:[#allocation12_spill] sm:$0xff] }
 0x1d8   : > { %5044 = vmatmul.msk.f32.gmra.mxu3 %vm257_vm1, %v1469_v62 }
 0x1d9   : > { %5078 = vmatmul.msk.f32.gmra.mxu0 %vm257_vm1, %v1472_v60 }
 0x1da   : > { %v800_v37 = vpop.f32.mrf.mxu2 }
 0x1db   : > { %v860_v49 = vadd.f32 %v800_v37, %v8291_v28  ;;  %v1081_v16 = vpop.f32.mrf.mxu3 }
 0x1dd   : > { %v1141_v34 = vadd.f32 %v1081_v16, %v860_v49 }
 0x1de   : > { %v1242_v54 = vpop.f32.mrf.mxu0 }
 0x1df   : > { %5012 = vmatmul.msk.f32.gmra.mxu2 %vm257_vm1, %v1468_v26  ;;  %v6406_v59 = vadd.f32 %v1236_v52, %v1141_v34  ;;  %v1478_v34 = vld [vmem:[#allocation2 + $0x9a] sm:$0xff] }
 0x1e0   : > { %5045 = vmatmul.msk.f32.gmra.mxu3 %vm257_vm1, %v1470_v13 }
 0x1e1   : > { %5079 = vmatmul.msk.f32.gmra.mxu0 %vm257_vm1, %v1473_v38 }
 0x1e2   : > { %v803_v24 = vpop.f32.mrf.mxu2 }
 0x1e3   : > { %v861_v57 = vadd.f32 %v803_v24, %v8292_v47  ;;  %v1084_v19 = vpop.f32.mrf.mxu3  ;;  %v8297_v24 = vld [vmem:[#allocation13_spill] sm:$0xff] }
 0x1e5   : > { %v1142_v45 = vadd.f32 %v1084_v19, %v861_v57 }
 0x1e6   : > { %v1245_v63 = vpop.f32.mrf.mxu0 }
 0x1e7   : > { %5013 = vmatmul.msk.f32.gmra.mxu2 %vm257_vm1, %v1469_v62  ;;  %v6412_v33 = vadd.f32 %v1239_v22, %v1142_v45  ;;  %v6421_v62 = vpop.f32.mrf.mxu1 }
 0x1e8   : > { %5046 = vmatmul.msk.f32.gmra.mxu3 %vm257_vm1, %v1471_v2 }
 0x1e9   : > { %5080 = vmatmul.msk.f32.gmra.mxu0 %vm257_vm1, %v1474_v43 }
 0x1ea   : > { %v806_v5 = vpop.f32.mrf.mxu2 }
 0x1eb   : > { %v862_v23 = vadd.f32 %v806_v5, %v8293_v41  ;;  %v1087_v25 = vpop.f32.mrf.mxu3 }
 0x1ed   : > { %v1143_v0 = vadd.f32 %v1087_v25, %v862_v23  ;;  %v8298_v23 = vld [vmem:[#allocation14_spill] sm:$0xff] }
 0x1ee   : > { %v1248_v12 = vpop.f32.mrf.mxu0 }
 0x1ef   : > { %5014 = vmatmul.msk.f32.gmra.mxu2 %vm257_vm1, %v1470_v13  ;;  %v6418_v9 = vadd.f32 %v1242_v54, %v1143_v0  ;;  %v6430_v10 = vpop.f32.mrf.mxu1 }
 0x1f0   : > { %5047 = vmatmul.msk.f32.gmra.mxu3 %vm257_vm1, %v1472_v60 }
 0x1f1   : > { %5081 = vmatmul.msk.f32.gmra.mxu0 %vm257_vm1, %v1475_v20 }
 0x1f2   : > { %v809_v21 = vpop.f32.mrf.mxu2 }
 0x1f3   : > { %v863_v56 = vadd.f32 %v809_v21, %v8294_v51  ;;  %v1090_v11 = vpop.f32.mrf.mxu3  ;;  %v6455_v51 = vld [vmem:[#allocation2 + $0xb2] sm:$0xff] }
 0x1f5   : > { %v1144_v48 = vadd.f32 %v1090_v11, %v863_v56 }
 0x1f6   : > { %v1251_v6 = vpop.f32.mrf.mxu0 }
 0x1f7   : > { %5015 = vmatmul.msk.f32.gmra.mxu2 %vm257_vm1, %v1471_v2  ;;  %v6426_v29 = vadd.f32 %v1245_v63, %v1144_v48  ;;  %v6439_v28 = vpop.f32.mrf.mxu1  ;;  %v1479_v63 = vld [vmem:[#allocation2 + $0xaa] sm:$0xff]  ;;  %v8299_v48 = vld [vmem:[#allocation15_spill] sm:$0xff] }
 0x1f8   : > { %5048 = vmatmul.msk.f32.gmra.mxu3 %vm257_vm1, %v1473_v38 }
 0x1f9   : > { %5082 = vmatmul.msk.f32.gmra.mxu0 %vm257_vm1, %v1476_v27 }
 0x1fa   : > { %v812_v13 = vpop.f32.mrf.mxu2 }
 0x1fb   : > { %v864_v26 = vadd.f32 %v812_v13, %v8295_v32  ;;  %v1093_v52 = vpop.f32.mrf.mxu3 }
 0x1fd   : > { %v1145_v35 = vadd.f32 %v1093_v52, %v864_v26  ;;  %v6466_v52 = vld [vmem:[#allocation2 + $0xc2] sm:$0xff] }
 0x1fe   : > { %v1254_v3 = vpop.f32.mrf.mxu0 }
 0x1ff   : > { %5016 = vmatmul.msk.f32.gmra.mxu2 %vm257_vm1, %v1472_v60  ;;  %v6434_v31 = vadd.f32 %v1248_v12, %v1145_v35  ;;  %v6447_v5 = vpop.f32.mrf.mxu1 }
 0x200   : > { %5049 = vmatmul.msk.f32.gmra.mxu3 %vm257_vm1, %v1474_v43 }
 0x201   : > { %5083 = vmatmul.msk.f32.gmra.mxu0 %vm257_vm1, %v1477_v55 }
 0x202   : > { %v815_v2 = vpop.f32.mrf.mxu2 }
 0x203   : > { %v865_v22 = vadd.f32 %v815_v2, %v8296_v61  ;;  %v1096_v37 = vpop.f32.mrf.mxu3  ;;  %v8300_v2 = vld [vmem:[#allocation16_spill] sm:$0xff] }
 0x205   : > { %v1146_v49 = vadd.f32 %v1096_v37, %v865_v22 }
 0x206   : > { %v1257_v16 = vpop.f32.mrf.mxu0 }
 0x207   : > { %5017 = vmatmul.msk.f32.gmra.mxu2 %vm257_vm1, %v1473_v38  ;;  %v6442_v54 = vadd.f32 %v1251_v6, %v1146_v49 }
 0x208   : > { %5050 = vmatmul.msk.f32.gmra.mxu3 %vm257_vm1, %v1475_v20 }
 0x209   : > { %5084 = vmatmul.msk.f32.gmra.mxu0 %vm257_vm1, %v1478_v34 }
 0x20a   : > { %v818_v60 = vpop.f32.mrf.mxu2 }
 0x20b   : > { %v866_v47 = vadd.f32 %v818_v60, %v8297_v24  ;;  %v1099_v57 = vpop.f32.mrf.mxu3  ;;  %v8301_v24 = vld [vmem:[#allocation17_spill] sm:$0xff] }
 0x20d   : > { %v1147_v19 = vadd.f32 %v1099_v57, %v866_v47 }
 0x20e   : > { %v1260_v45 = vpop.f32.mrf.mxu0 }
 0x20f   : > { %5018 = vmatmul.msk.f32.gmra.mxu2 %vm257_vm1, %v1474_v43  ;;  %v6450_v41 = vadd.f32 %v1254_v3, %v1147_v19  ;;  %v6461_v43 = vpop.f32.mrf.mxu1 }
 0x210   : > { %5051 = vmatmul.msk.f32.gmra.mxu3 %vm257_vm1, %v1476_v27 }
 0x211   : > { %5085 = vmatmul.msk.f32.gmra.mxu0 %vm257_vm1, %v1479_v63 }
 0x212   : > { %v821_v38 = vpop.f32.mrf.mxu2 }
 0x213   : > { %v867_v25 = vadd.f32 %v821_v38, %v8298_v23  ;;  %v1102_v0 = vpop.f32.mrf.mxu3  ;;  %v6488_v23 = vld [vmem:[#allocation2 + $0xda] sm:$0xff] }
 0x215   : > { %v1148_v12 = vadd.f32 %v1102_v0, %v867_v25  ;;  %v8302_v0 = vld [vmem:[#allocation18_spill] sm:$0xff] }
 0x216   : > { %v1263_v21 = vpop.f32.mrf.mxu0 }
 0x217   : > { %5019 = vmatmul.msk.f32.gmra.mxu2 %vm257_vm1, %v1475_v20  ;;  %v6458_v56 = vadd.f32 %v1257_v16, %v1148_v12  ;;  %v6474_v3 = vpop.f32.mrf.mxu1  ;;  %v6477_v16 = vld [vmem:[#allocation2 + $0xca] sm:$0xff] }
 0x218   : > { %5052 = vmatmul.msk.f32.gmra.mxu3 %vm257_vm1, %v1477_v55 }
 0x219   : > { %5086 = vmatmul.msk.f32.gmra.mxu0 %vm257_vm1, %v6455_v51 }
 0x21a   : > { %v824_v11 = vpop.f32.mrf.mxu2 }
 0x21b   : > { %v868_v6 = vadd.f32 %v824_v11, %v8299_v48  ;;  %v1105_v13 = vpop.f32.mrf.mxu3 }
 0x21d   : > { %v1149_v32 = vadd.f32 %v1105_v13, %v868_v6  ;;  %v6498_v6 = vld [vmem:[#allocation2 + $0xe2] sm:$0xff]  ;;  %v8303_v13 = vmov 0.0  }
 0x21e   : > { %v1266_v26 = vpop.f32.mrf.mxu0  ;;  %2193 = vst.msk [vmem:[#allocation3 + $0x18] sm:$0xff] %vm2188_vm3, %v8303_v13 }
 0x21f   : > { %5020 = vmatmul.msk.f32.gmra.mxu2 %vm257_vm1, %v1476_v27  ;;  %v6469_v20 = vadd.f32 %v1260_v45, %v1149_v32  ;;  %v6486_v19 = vpop.f32.mrf.mxu1  ;;  %2194 = vst.msk [vmem:[#allocation3 + $0x20] sm:$0xff] %vm2188_vm3, %v8303_v13 }
 0x220   : > { %5053 = vmatmul.msk.f32.gmra.mxu3 %vm257_vm1, %v1478_v34  ;;  %2189 = vst.msk [vmem:[#allocation3] sm:$0xff] %vm2188_vm3, %v8303_v13 }
 0x221   : > { %5087 = vmatmul.msk.f32.gmra.mxu0 %vm257_vm1, %v6466_v52  ;;  %2190 = vst.msk [vmem:[#allocation3 + $0x8] sm:$0xff] %vm2188_vm3, %v8303_v13 }
 0x222   : > { %v827_v35 = vpop.f32.mrf.mxu2  ;;  %2196 = vst.msk [vmem:[#allocation3 + $0x30] sm:$0xff] %vm2188_vm3, %v8303_v13 }
 0x223   : > { %v869_v61 = vadd.f32 %v827_v35, %v8300_v2  ;;  %v1108_v22 = vpop.f32.mrf.mxu3  ;;  %2197 = vst.msk [vmem:[#allocation3 + $0x38] sm:$0xff] %vm2188_vm3, %v8303_v13 }
 0x224   : > { %2199 = vst.msk [vmem:[#allocation3 + $0x48] sm:$0xff] %vm2188_vm3, %v8303_v13 }
 0x225   : > { %v1150_v37 = vadd.f32 %v1108_v22, %v869_v61  ;;  %2200 = vst.msk [vmem:[#allocation3 + $0x50] sm:$0xff] %vm2188_vm3, %v8303_v13 }
 0x226   : > { %v1269_v49 = vpop.f32.mrf.mxu0  ;;  %2202 = vst.msk [vmem:[#allocation3 + $0x60] sm:$0xff] %vm2188_vm3, %v8303_v13 }
 0x227   : > { %5021 = vmatmul.msk.f32.gmra.mxu2 %vm257_vm1, %v1477_v55  ;;  %v6480_v27 = vadd.f32 %v1263_v21, %v1150_v37  ;;  %v6526_v37 = vld [vmem:[#allocation2 + $0xf2] sm:$0xff]  ;;  %2203 = vst.msk [vmem:[#allocation3 + $0x68] sm:$0xff] %vm2188_vm3, %v8303_v13 }
 0x228   : > { %5054 = vmatmul.msk.f32.gmra.mxu3 %vm257_vm1, %v1479_v63  ;;  %2205 = vst.msk [vmem:[#allocation3 + $0x78] sm:$0xff] %vm2188_vm3, %v8303_v13 }
 0x229   : > { %5088 = vmatmul.msk.f32.gmra.mxu0 %vm257_vm1, %v6477_v16  ;;  %2206 = vst.msk [vmem:[#allocation3 + $0x80] sm:$0xff] %vm2188_vm3, %v8303_v13 }
 0x22a   : > { %v830_v60 = vpop.f32.mrf.mxu2  ;;  %2208 = vst.msk [vmem:[#allocation3 + $0x90] sm:$0xff] %vm2188_vm3, %v8303_v13 }
 0x22b   : > { %v870_v47 = vadd.f32 %v830_v60, %v8301_v24  ;;  %v1111_v57 = vpop.f32.mrf.mxu3  ;;  %v8305_v24 = vld [vmem:[#allocation20_spill] sm:$0xff]  ;;  %2209 = vst.msk [vmem:[#allocation3 + $0x98] sm:$0xff] %vm2188_vm3, %v8303_v13 }
 0x22c   : > { %2211 = vst.msk [vmem:[#allocation3 + $0xa8] sm:$0xff] %vm2188_vm3, %v8303_v13 }
 0x22d   : > { %v1151_v45 = vadd.f32 %v1111_v57, %v870_v47  ;;  %2212 = vst.msk [vmem:[#allocation3 + $0xb0] sm:$0xff] %vm2188_vm3, %v8303_v13 }
 0x22e   : > { %v1272_v38 = vpop.f32.mrf.mxu0  ;;  %2214 = vst.msk [vmem:[#allocation3 + $0xc0] sm:$0xff] %vm2188_vm3, %v8303_v13 }
 0x22f   : > { %5022 = vmatmul.msk.f32.gmra.mxu2 %vm257_vm1, %v1478_v34  ;;  %v6491_v55 = vadd.f32 %v1266_v26, %v1151_v45  ;;  %v6502_v34 = vpop.f32.mrf.mxu1  ;;  %2215 = vst.msk [vmem:[#allocation3 + $0xc8] sm:$0xff] %vm2188_vm3, %v8303_v13 }
 0x230   : > { %5055 = vmatmul.msk.f32.gmra.mxu3 %vm257_vm1, %v6455_v51  ;;  %2217 = vst.msk [vmem:[#allocation3 + $0xd8] sm:$0xff] %vm2188_vm3, %v8303_v13 }
 0x231   : > { %5089 = vmatmul.msk.f32.gmra.mxu0 %vm257_vm1, %v6488_v23  ;;  %2218 = vst.msk [vmem:[#allocation3 + $0xe0] sm:$0xff] %vm2188_vm3, %v8303_v13 }
 0x232   : > { %v833_v25 = vpop.f32.mrf.mxu2  ;;  %2220 = vst.msk [vmem:[#allocation3 + $0xf0] sm:$0xff] %vm2188_vm3, %v8303_v13 }
 0x233   : > { %v871_v12 = vadd.f32 %v833_v25, %v8302_v0  ;;  %v1114_v21 = vpop.f32.mrf.mxu3  ;;  %v6557_v25 = vld [vmem:[#allocation2 + $0xfa] sm:$0xff]  ;;  %2221 = vst.msk [vmem:[#allocation3 + $0xf8] sm:$0xff] %vm2188_vm3, %v8303_v13 }
 0x234   : > { %2223 = vst.msk [vmem:[#allocation3 + $0x108] sm:$0xff] %vm2188_vm3, %v8303_v13 }
 0x235   : > { %v1152_v11 = vadd.f32 %v1114_v21, %v871_v12  ;;  %2224 = vst.msk [vmem:[#allocation3 + $0x110] sm:$0xff] %vm2188_vm3, %v8303_v13 }
 0x236   : > { %v1275_v48 = vpop.f32.mrf.mxu0  ;;  %2226 = vst.msk [vmem:[#allocation3 + $0x120] sm:$0xff] %vm2188_vm3, %v8303_v13 }
 0x237   : > { %5023 = vmatmul.msk.f32.gmra.mxu2 %vm257_vm1, %v1479_v63  ;;  %v6505_v32 = vadd.f32 %v1269_v49, %v1152_v11  ;;  %v8304_v63 = vld [vmem:[#allocation19_spill] sm:$0xff]  ;;  %v6540_v60 = vpop.f32.mrf.mxu1  ;;  %2227 = vst.msk [vmem:[#allocation3 + $0x128] sm:$0xff] %vm2188_vm3, %v8303_v13 }
 0x238   : > { %5056 = vmatmul.msk.f32.gmra.mxu3 %vm257_vm1, %v6466_v52  ;;  %2229 = vst.msk [vmem:[#allocation3 + $0x138] sm:$0xff] %vm2188_vm3, %v8303_v13 }
 0x239   : > { %5090 = vmatmul.msk.f32.gmra.mxu0 %vm257_vm1, %v6498_v6  ;;  %2230 = vst.msk [vmem:[#allocation3 + $0x140] sm:$0xff] %vm2188_vm3, %v8303_v13 }
 0x23a   : > { %v836_v26 = vpop.f32.mrf.mxu2  ;;  %2232 = vst.msk [vmem:[#allocation3 + $0x150] sm:$0xff] %vm2188_vm3, %v8303_v13 }
 0x23b   : > { %v872_v35 = vadd.f32 %v836_v26, %v8304_v63  ;;  %v1117_v2 = vpop.f32.mrf.mxu3  ;;  %v6585_v26 = vld [vmem:[%s8265_s2] ss:$0 sm:$0xff]  ;;  %v2643_v63 = vld [vmem:[%s8266_s3 + $0x30] sm:$0xff]  ;;  %2233 = vst.msk [vmem:[#allocation3 + $0x158] sm:$0xff] %vm2188_vm3, %v8303_v13 }
 0x23c   : > { %2665 = vmatpush.msrb.mxu3 %v2643_v63  ;;  %2235 = vst.msk [vmem:[#allocation3 + $0x168] sm:$0xff] %vm2188_vm3, %v8303_v13 }
 0x23d   : > { %v1153_v61 = vadd.f32 %v1117_v2, %v872_v35  ;;  %v6597_v2 = vld [vmem:[#allocation2 + $0x10a] sm:$0xff]  ;;  %2236 = vst.msk [vmem:[#allocation3 + $0x170] sm:$0xff] %vm2188_vm3, %v8303_v13 }
 0x23e   : > { %v1928_v22 = vpop.f32.mrf.mxu0  ;;  %2238 = vst.msk [vmem:[#allocation3 + $0x180] sm:$0xff] %vm2188_vm3, %v8303_v13 }
 0x23f   : > { %5024 = vmatmul.msk.f32.gmra.mxu2 %vm257_vm1, %v6455_v51  ;;  %v6532_v49 = vadd.f32 %v1272_v38, %v1153_v61  ;;  %v2831_v61 = vld [vmem:[%s8266_s3 + $0x8] sm:$0xff]  ;;  %2239 = vst.msk [vmem:[#allocation3 + $0x188] sm:$0xff] %vm2188_vm3, %v8303_v13 }
 0x240   : > { %5057 = vmatmul.msk.f32.gmra.mxu3 %vm257_vm1, %v6477_v16  ;;  %2943 = vmatpush.msrb.mxu0 %v2831_v61  ;;  %2241 = vst.msk [vmem:[#allocation3 + $0x198] sm:$0xff] %vm2188_vm3, %v8303_v13 }
 0x241   : > { %5091 = vmatmul.msk.f32.gmra.mxu0 %vm257_vm1, %v6526_v37  ;;  %2242 = vst.msk [vmem:[#allocation3 + $0x1a0] sm:$0xff] %vm2188_vm3, %v8303_v13 }
 0x242   : > { %v839_v51 = vpop.f32.mrf.mxu2  ;;  %2195 = vst.msk [vmem:[#allocation3 + $0x28] sm:$0x3] %vm2191_vm5, %v8303_v13 }
 0x243   : > { %v873_v47 = vadd.f32 %v839_v51, %v8305_v24  ;;  %v1120_v57 = vpop.f32.mrf.mxu3  ;;  %v3073_v51 = vld [vmem:[%s8266_s3 + $0x20] sm:$0xff]  ;;  %2192 = vst.msk [vmem:[#allocation3 + $0x10] sm:$0x3] %vm2191_vm5, %v8303_v13 }
 0x244   : > { %3095 = vmatpush.msrb.mxu1 %v3073_v51  ;;  %2198 = vst.msk [vmem:[#allocation3 + $0x40] sm:$0x3] %vm2191_vm5, %v8303_v13 }
 0x245   : > { %v1154_v45 = vadd.f32 %v1120_v57, %v873_v47  ;;  %2201 = vst.msk [vmem:[#allocation3 + $0x58] sm:$0x3] %vm2191_vm5, %v8303_v13 }
 0x246   : > { %v1931_v38 = vpop.f32.mrf.mxu0  ;;  %2204 = vst.msk [vmem:[#allocation3 + $0x70] sm:$0x3] %vm2191_vm5, %v8303_v13 }
 0x247   : > { %5025 = vmatmul.msk.f32.gmra.mxu2 %vm257_vm1, %v6466_v52  ;;  %v6561_v0 = vadd.f32 %v1275_v48, %v1154_v45  ;;  %v6575_v52 = vpop.f32.mrf.mxu1  ;;  %2207 = vst.msk [vmem:[#allocation3 + $0x88] sm:$0x3] %vm2191_vm5, %v8303_v13 }
 0x248   : > { %5058 = vmatmul.msk.f32.gmra.mxu3 %vm257_vm1, %v6488_v23  ;;  %2210 = vst.msk [vmem:[#allocation3 + $0xa0] sm:$0x3] %vm2191_vm5, %v8303_v13 }
 0x249   : > { %5092 = vmatmul.msk.f32.gmra.mxu0 %vm257_vm1, %v6557_v25  ;;  %2213 = vst.msk [vmem:[#allocation3 + $0xb8] sm:$0x3] %vm2191_vm5, %v8303_v13 }
 0x24a   : > { %v1618_v12 = vpop.f32.mrf.mxu2  ;;  %2216 = vst.msk [vmem:[#allocation3 + $0xd0] sm:$0x3] %vm2191_vm5, %v8303_v13 }
 0x24b   : > { %v1714_v21 = vadd.f32 %v1618_v12, %v6211_v17  ;;  %v1773_v11 = vpop.f32.mrf.mxu3  ;;  %v2313_v17 = vld [vmem:[%s8266_s3] sm:$0xff]  ;;  %2219 = vst.msk [vmem:[#allocation3 + $0xe8] sm:$0x3] %vm2191_vm5, %v8303_v13 }
 0x24c   : > { %2545 = vmatpush.msrb.mxu2 %v2313_v17  ;;  %v6630_v17 = vld [vmem:[#allocation2 + $0x112] sm:$0xff]  ;;  %2222 = vst.msk [vmem:[#allocation3 + $0x100] sm:$0x3] %vm2191_vm5, %v8303_v13 }
 0x24d   : > { %v1869_v48 = vadd.f32 %v1773_v11, %v1714_v21  ;;  %2225 = vst.msk [vmem:[#allocation3 + $0x118] sm:$0x3] %vm2191_vm5, %v8303_v13 }
 0x24e   : > { %v1934_v35 = vpop.f32.mrf.mxu0  ;;  %2228 = vst.msk [vmem:[#allocation3 + $0x130] sm:$0x3] %vm2191_vm5, %v8303_v13 }
 0x24f   : > { %v2024_v24 = vadd.f32 %v1928_v22, %v1869_v48  ;;  %5026 = vmatmul.msk.f32.gmra.mxu2 %vm257_vm1, %v6477_v16  ;;  %v6625_v12 = vpop.f32.mrf.mxu1  ;;  %2231 = vst.msk [vmem:[#allocation3 + $0x148] sm:$0x3] %vm2191_vm5, %v8303_v13 }
 0x250   : > { %5059 = vmatmul.msk.f32.gmra.mxu3 %vm257_vm1, %v6498_v6  ;;  %2234 = vst.msk [vmem:[#allocation3 + $0x160] sm:$0x3] %vm2191_vm5, %v8303_v13 }
 0x251   : > { %v2060_v47 = vadd.f32 %v6585_v26, %v2024_v24  ;;  %5093 = vmatmul.msk.f32.gmra.mxu0 %vm257_vm1, %v6597_v2  ;;  %2237 = vst.msk [vmem:[#allocation3 + $0x178] sm:$0x3] %vm2191_vm5, %v8303_v13 }
 0x252   : > { %v1621_v16 = vpop.f32.mrf.mxu2  ;;  %2240 = vst.msk [vmem:[#allocation3 + $0x190] sm:$0x3] %vm2191_vm5, %v8303_v13 }
 0x253   : > { %vm2092_vm4 = vcmp.gt.f32.partialorder %v2060_v47, 0.0  ;;  %v2124_v22 = vmul.f32 0.2, %v2060_v47  ;;  %v1715_v57 = vadd.f32 %v1621_v16, %v6225_v30  ;;  %v1776_v45 = vpop.f32.mrf.mxu3  ;;  %2243 = vst.msk [vmem:[#allocation3 + $0x1a8] sm:$0x3] %vm2191_vm5, %v8303_v13 }
 0x255   : > { %v2156_v21 = vsel %vm2092_vm4, %v2060_v47, %v2124_v22  ;;  %v1870_v11 = vadd.f32 %v1776_v45, %v1715_v57  ;;  %v6659_v57 = vld [vmem:[#allocation2 + $0x122] sm:$0xff] }
 0x256   : > { %2245 = vst.msk [vmem:[#allocation3 + $0x19] sm:$0xff] %vm2188_vm3, %v2156_v21  ;;  %v1937_v48 = vpop.f32.mrf.mxu0 }
 0x257   : > { %v2025_v30 = vadd.f32 %v1931_v38, %v1870_v11  ;;  %5027 = vmatmul.msk.f32.gmra.mxu2 %vm257_vm1, %v6488_v23 }
 0x258   : > { %5060 = vmatmul.msk.f32.gmra.mxu3 %vm257_vm1, %v6526_v37 }
 0x259   : > { %v2061_v63 = vadd.f32 %v6585_v26, %v2025_v30  ;;  %5094 = vmatmul.msk.f32.gmra.mxu0 %vm257_vm1, %v6630_v17 }
 0x25a   : > { %v1624_v38 = vpop.f32.mrf.mxu2 }
 0x25b   : > { %vm2093_vm6 = vcmp.gt.f32.partialorder %v2061_v63, 0.0  ;;  %v2125_v23 = vmul.f32 0.2, %v2061_v63  ;;  %v1716_v61 = vadd.f32 %v1624_v38, %v6239_v46  ;;  %v1779_v51 = vpop.f32.mrf.mxu3  ;;  %v6661_v46 = vpop.f32.mrf.mxu1 }
 0x25d   : > { %v2157_v24 = vsel %vm2093_vm6, %v2061_v63, %v2125_v23  ;;  %v1871_v47 = vadd.f32 %v1779_v51, %v1716_v61  ;;  %v6654_v16 = vld [vmem:[#allocation3 + $0x18] sm:$0xff] }
 0x25e   : > { %2246 = vst.msk [vmem:[#allocation3 + $0x21] sm:$0xff] %vm2188_vm3, %v2157_v24  ;;  %5107 = vmatmul.msk.f32.vlgmr.msra.gmra.mxu1 %vm2188_vm3, %v6654_v16  ;;  %v1940_v22 = vpop.f32.mrf.mxu0  ;;  %v6691_v23 = vld [vmem:[#allocation2 + $0x12a] sm:$0xff] }
 0x25f   : > { %v2026_v45 = vadd.f32 %v1934_v35, %v1871_v47  ;;  %5028 = vmatmul.msk.f32.gmra.mxu2 %vm257_vm1, %v6498_v6 }
 0x260   : > { %5061 = vmatmul.msk.f32.gmra.mxu3 %vm257_vm1, %v6557_v25 }
 0x261   : > { %5095 = vmatmul.msk.f32.gmra.mxu0 %vm257_vm1, %v6659_v57  ;;  %v2062_v6 = vadd.f32 %v6585_v26, %v2026_v45 }
 0x262   : > { %v1627_v21 = vpop.f32.mrf.mxu2 }
 0x263   : > { %v1717_v35 = vadd.f32 %v1627_v21, %v6253_v36  ;;  %v1782_v11 = vpop.f32.mrf.mxu3  ;;  %v2126_v36 = vmul.f32 0.2, %v2062_v6  ;;  %vm2094_vm7 = vcmp.gt.f32.partialorder %v2062_v6, 0.0  ;;  %v6701_v51 = vpop.f32.mrf.mxu1 }
 0x265   : > { %v1872_v30 = vadd.f32 %v1782_v11, %v1717_v35  ;;  %v6685_v63 = vld [vmem:[#allocation3 + $0x20] sm:$0xff] }
 0x266   : > { %5108 = vmatmul.msk.f32.gmra.mxu1 %vm2188_vm3, %v6685_v63  ;;  %v1943_v38 = vpop.f32.mrf.mxu0 }
 0x267   : > { %v2027_v61 = vadd.f32 %v1937_v48, %v1872_v30  ;;  %5029 = vmatmul.msk.f32.gmra.mxu2 %vm257_vm1, %v6526_v37  ;;  %v2158_v48 = vsel %vm2094_vm7, %v2062_v6, %v2126_v36 }
 0x268   : > { %5062 = vmatmul.msk.f32.gmra.mxu3 %vm257_vm1, %v6597_v2  ;;  %2247 = vst.msk [vmem:[#allocation3 + $0x31] sm:$0xff] %vm2188_vm3, %v2158_v48 }
 0x269   : > { %v2063_v24 = vadd.f32 %v6585_v26, %v2027_v61  ;;  %5096 = vmatmul.msk.f32.gmra.mxu0 %vm257_vm1, %v6691_v23  ;;  %v6718_v61 = vld [vmem:[#allocation2 + $0x13a] sm:$0xff] }
 0x26a   : > { %v1630_v37 = vpop.f32.mrf.mxu2 }
 0x26b   : > { %vm2095_vm8 = vcmp.gt.f32.partialorder %v2063_v24, 0.0  ;;  %v2127_v47 = vmul.f32 0.2, %v2063_v24  ;;  %v1718_v45 = vadd.f32 %v1630_v37, %v6267_v58  ;;  %v1785_v21 = vpop.f32.mrf.mxu3  ;;  %v6728_v36 = vpop.f32.mrf.mxu1 }
 0x26d   : > { %v2159_v35 = vsel %vm2095_vm8, %v2063_v24, %v2127_v47  ;;  %v1873_v11 = vadd.f32 %v1785_v21, %v1718_v45  ;;  %v6736_v21 = vld [vmem:[#allocation2 + $0x142] sm:$0xff] }
 0x26e   : > { %v1946_v30 = vpop.f32.mrf.mxu0  ;;  %2248 = vst.msk [vmem:[#allocation3 + $0x39] sm:$0xff] %vm2188_vm3, %v2159_v35 }
 0x26f   : > { %v2028_v6 = vadd.f32 %v1940_v22, %v1873_v11  ;;  %5030 = vmatmul.msk.f32.gmra.mxu2 %vm257_vm1, %v6557_v25  ;;  %v6731_v47 = vld [vmem:[#allocation3 + $0x30] sm:$0xff] }
 0x270   : > { %5063 = vmatmul.msk.f32.gmra.mxu3 %vm257_vm1, %v6630_v17  ;;  %5109 = vmatmul.msk.f32.gmra.mxu1 %vm2188_vm3, %v6731_v47 }
 0x271   : > { %v2064_v58 = vadd.f32 %v6585_v26, %v2028_v6  ;;  %5097 = vmatmul.msk.f32.gmra.mxu0 %vm257_vm1, %v6718_v61 }
 0x272   : > { %v1633_v13 = vpop.f32.mrf.mxu2 }
 0x273   : > { %vm2096_vm9 = vcmp.gt.f32.partialorder %v2064_v58, 0.0  ;;  %v2128_v24 = vmul.f32 0.2, %v2064_v58  ;;  %v1719_v37 = vadd.f32 %v1633_v13, %v6281_v14  ;;  %v1788_v48 = vpop.f32.mrf.mxu3 }
 0x275   : > { %v2160_v22 = vsel %vm2096_vm9, %v2064_v58, %v2128_v24  ;;  %v1874_v25 = vadd.f32 %v1788_v48, %v1719_v37  ;;  %v6745_v58 = vld [vmem:[#allocation3 + $0x38] sm:$0xff] }
 0x276   : > { %2249 = vst.msk [vmem:[#allocation3 + $0x49] sm:$0xff] %vm2188_vm3, %v2160_v22  ;;  %v1949_v45 = vpop.f32.mrf.mxu0  ;;  %v6753_v22 = vld [vmem:[#allocation2 + $0x152] sm:$0xff] }
 0x277   : > { %v2029_v35 = vadd.f32 %v1943_v38, %v1874_v25  ;;  %5031 = vmatmul.msk.f32.gmra.mxu2 %vm257_vm1, %v6597_v2  ;;  %v6748_v38 = vpop.f32.mrf.mxu1 }
 0x278   : > { %5064 = vmatmul.msk.f32.gmra.mxu3 %vm257_vm1, %v6659_v57  ;;  %5110 = vmatmul.msk.f32.gmra.mxu1 %vm2188_vm3, %v6745_v58 }
 0x279   : > { %v2065_v14 = vadd.f32 %v6585_v26, %v2029_v35  ;;  %5098 = vmatmul.msk.f32.gmra.mxu0 %vm257_vm1, %v6736_v21 }
 0x27a   : > { %v1636_v11 = vpop.f32.mrf.mxu2 }
 0x27b   : > { %vm2097_vm10 = vcmp.gt.f32.partialorder %v2065_v14, 0.0  ;;  %v2129_v6 = vmul.f32 0.2, %v2065_v14  ;;  %v1720_v13 = vadd.f32 %v1636_v11, %v6295_v42  ;;  %v1791_v24 = vpop.f32.mrf.mxu3 }
 0x27d   : > { %v2161_v37 = vsel %vm2097_vm10, %v2065_v14, %v2129_v6  ;;  %v1875_v2 = vadd.f32 %v1791_v24, %v1720_v13  ;;  %v6762_v11 = vld [vmem:[#allocation3 + $0x48] sm:$0xff] }
 0x27e   : > { %2250 = vst.msk [vmem:[#allocation3 + $0x51] sm:$0xff] %vm2188_vm3, %v2161_v37  ;;  %v1952_v48 = vpop.f32.mrf.mxu0  ;;  %v6768_v37 = vld [vmem:[#allocation2 + $0x15a] sm:$0xff] }
 0x27f   : > { %v2030_v25 = vadd.f32 %v1946_v30, %v1875_v2  ;;  %5032 = vmatmul.msk.f32.gmra.mxu2 %vm257_vm1, %v6630_v17  ;;  %v6770_v2 = vpop.f32.mrf.mxu1 }
 0x280   : > { %5065 = vmatmul.msk.f32.gmra.mxu3 %vm257_vm1, %v6691_v23  ;;  %5111 = vmatmul.msk.f32.gmra.mxu1 %vm2188_vm3, %v6762_v11 }
 0x281   : > { %v2066_v42 = vadd.f32 %v6585_v26, %v2030_v25  ;;  %5099 = vmatmul.msk.f32.gmra.mxu0 %vm257_vm1, %v6753_v22 }
 0x282   : > { %v1639_v35 = vpop.f32.mrf.mxu2 }
 0x283   : > { %vm2098_vm11 = vcmp.gt.f32.partialorder %v2066_v42, 0.0  ;;  %v2130_v14 = vmul.f32 0.2, %v2066_v42  ;;  %v1721_v6 = vadd.f32 %v1639_v35, %v6309_v53  ;;  %v1794_v13 = vpop.f32.mrf.mxu3  ;;  %v1441_v53 = vadd.f32 %v6421_v62, %v6319_v7  ;;  %v6786_v62 = vld [vmem:[#allocation2 + $0x16a] sm:$0xff] }
 0x285   : > { %v2162_v30 = vsel %vm2098_vm11, %v2066_v42, %v2130_v14  ;;  %v1876_v24 = vadd.f32 %v1794_v13, %v1721_v6  ;;  %v6781_v6 = vld [vmem:[#allocation3 + $0x50] sm:$0xff] }
 0x286   : > { %2251 = vst.msk [vmem:[#allocation3 + $0x61] sm:$0xff] %vm2188_vm3, %v2162_v30  ;;  %v1955_v17 = vpop.f32.mrf.mxu0 }
 0x287   : > { %v2031_v25 = vadd.f32 %v1949_v45, %v1876_v24  ;;  %5033 = vmatmul.msk.f32.gmra.mxu2 %vm257_vm1, %v6659_v57 }
 0x288   : > { %5066 = vmatmul.msk.f32.gmra.mxu3 %vm257_vm1, %v6718_v61  ;;  %5112 = vmatmul.msk.f32.gmra.mxu1 %vm2188_vm3, %v6781_v6 }
 0x289   : > { %v2067_v42 = vadd.f32 %v6585_v26, %v2031_v25  ;;  %5100 = vmatmul.msk.f32.gmra.mxu0 %vm257_vm1, %v6768_v37  ;;  %v1442_v25 = vadd.f32 %v6430_v10, %v6330_v1  ;;  %v6804_v10 = vld [vmem:[#allocation2 + $0x172] sm:$0xff] }
 0x28a   : > { %v1642_v35 = vpop.f32.mrf.mxu2 }
 0x28b   : > { %vm2099_vm12 = vcmp.gt.f32.partialorder %v2067_v42, 0.0  ;;  %v2131_v14 = vmul.f32 0.2, %v2067_v42  ;;  %v1722_v45 = vadd.f32 %v1642_v35, %v1441_v53  ;;  %v1797_v13 = vpop.f32.mrf.mxu3  ;;  %v6794_v53 = vpop.f32.mrf.mxu1 }
 0x28d   : > { %v2163_v30 = vsel %vm2099_vm12, %v2067_v42, %v2131_v14  ;;  %v1877_v57 = vadd.f32 %v1797_v13, %v1722_v45 }
 0x28e   : > { %2252 = vst.msk [vmem:[#allocation3 + $0x69] sm:$0xff] %vm2188_vm3, %v2163_v30  ;;  %v1958_v7 = vpop.f32.mrf.mxu0 }
 0x28f   : > { %v2032_v24 = vadd.f32 %v1952_v48, %v1877_v57  ;;  %5034 = vmatmul.msk.f32.gmra.mxu2 %vm257_vm1, %v6691_v23  ;;  %v6799_v48 = vld [vmem:[#allocation3 + $0x60] sm:$0xff] }
 0x290   : > { %5067 = vmatmul.msk.f32.gmra.mxu3 %vm257_vm1, %v6736_v21  ;;  %5113 = vmatmul.msk.f32.gmra.mxu1 %vm2188_vm3, %v6799_v48 }
 0x291   : > { %v2068_v42 = vadd.f32 %v6585_v26, %v2032_v24  ;;  %5101 = vmatmul.msk.f32.gmra.mxu0 %vm257_vm1, %v6786_v62  ;;  %v1443_v24 = vadd.f32 %v6439_v28, %v6341_v4  ;;  %v1497_v28 = vld [vmem:[#allocation2 + $0x182] sm:$0xff] }
 0x292   : > { %v1645_v35 = vpop.f32.mrf.mxu2 }
 0x293   : > { %vm2100_vm13 = vcmp.gt.f32.partialorder %v2068_v42, 0.0  ;;  %v2132_v14 = vmul.f32 0.2, %v2068_v42  ;;  %v1723_v45 = vadd.f32 %v1645_v35, %v1442_v25  ;;  %v1800_v23 = vpop.f32.mrf.mxu3  ;;  %v6815_v35 = vpop.f32.mrf.mxu1 }
 0x295   : > { %v2164_v13 = vsel %vm2100_vm13, %v2068_v42, %v2132_v14  ;;  %v1878_v30 = vadd.f32 %v1800_v23, %v1723_v45 }
 0x296   : > { %2253 = vst.msk [vmem:[#allocation3 + $0x79] sm:$0xff] %vm2188_vm3, %v2164_v13  ;;  %v1961_v1 = vpop.f32.mrf.mxu0 }
 0x297   : > { %v2033_v57 = vadd.f32 %v1955_v17, %v1878_v30  ;;  %5035 = vmatmul.msk.f32.gmra.mxu2 %vm257_vm1, %v6718_v61  ;;  %v6817_v17 = vld [vmem:[#allocation3 + $0x68] sm:$0xff] }
 0x298   : > { %5068 = vmatmul.msk.f32.gmra.mxu3 %vm257_vm1, %v6753_v22  ;;  %5114 = vmatmul.msk.f32.gmra.mxu1 %vm2188_vm3, %v6817_v17 }
 0x299   : > { %v2069_v25 = vadd.f32 %v6585_v26, %v2033_v57  ;;  %5102 = vmatmul.msk.f32.gmra.mxu0 %vm257_vm1, %v6804_v10  ;;  %v1444_v57 = vadd.f32 %v6447_v5, %v6352_v8  ;;  %v1498_v5 = vld [vmem:[#allocation2 + $0x18a] sm:$0xff] }
 0x29a   : > { %v1648_v42 = vpop.f32.mrf.mxu2 }
 0x29b   : > { %vm2101_vm14 = vcmp.gt.f32.partialorder %v2069_v25, 0.0  ;;  %v2133_v14 = vmul.f32 0.2, %v2069_v25  ;;  %v1724_v45 = vadd.f32 %v1648_v42, %v1443_v24  ;;  %v1803_v61 = vpop.f32.mrf.mxu3 }
 0x29d   : > { %v2165_v23 = vsel %vm2101_vm14, %v2069_v25, %v2133_v14  ;;  %v1879_v13 = vadd.f32 %v1803_v61, %v1724_v45  ;;  %v6830_v14 = vld [vmem:[#allocation3 + $0x78] sm:$0xff]  ;;  %v6832_v61 = vpop.f32.mrf.mxu1 }
 0x29e   : > { %2254 = vst.msk [vmem:[#allocation3 + $0x81] sm:$0xff] %vm2188_vm3, %v2165_v23  ;;  %v1964_v4 = vpop.f32.mrf.mxu0 }
 0x29f   : > { %v2034_v30 = vadd.f32 %v1958_v7, %v1879_v13  ;;  %5036 = vmatmul.msk.f32.gmra.mxu2 %vm257_vm1, %v6736_v21 }
 0x2a0   : > { %5069 = vmatmul.msk.f32.gmra.mxu3 %vm257_vm1, %v6768_v37  ;;  %5115 = vmatmul.msk.f32.gmra.mxu1 %vm2188_vm3, %v6830_v14 }
 0x2a1   : > { %v2070_v24 = vadd.f32 %v6585_v26, %v2034_v30  ;;  %5103 = vmatmul.msk.f32.gmra.mxu0 %vm257_vm1, %v1497_v28  ;;  %v1445_v30 = vadd.f32 %v6461_v43, %v6363_v15  ;;  %v1499_v15 = vld [vmem:[#allocation2 + $0x19a] sm:$0xff] }
 0x2a2   : > { %v1651_v25 = vpop.f32.mrf.mxu2 }
 0x2a3   : > { %vm2102_vm15 = vcmp.gt.f32.partialorder %v2070_v24, 0.0  ;;  %v2134_v42 = vmul.f32 0.2, %v2070_v24  ;;  %v1725_v45 = vadd.f32 %v1651_v25, %v1444_v57  ;;  %v1806_v7 = vpop.f32.mrf.mxu3 }
 0x2a5   : > { %v2166_v21 = vsel %vm2102_vm15, %v2070_v24, %v2134_v42  ;;  %v1880_v23 = vadd.f32 %v1806_v7, %v1725_v45  ;;  %v6845_v42 = vld [vmem:[#allocation3 + $0x80] sm:$0xff]  ;;  %v6850_v43 = vpop.f32.mrf.mxu1 }
 0x2a6   : > { %2255 = vst.msk [vmem:[#allocation3 + $0x91] sm:$0xff] %vm2188_vm3, %v2166_v21  ;;  %v1967_v8 = vpop.f32.mrf.mxu0 }
 0x2a7   : > { %v2035_v13 = vadd.f32 %v1961_v1, %v1880_v23  ;;  %5037 = vmatmul.msk.f32.gmra.mxu2 %vm257_vm1, %v6753_v22 }
 0x2a8   : > { %5070 = vmatmul.msk.f32.gmra.mxu3 %vm257_vm1, %v6786_v62  ;;  %5116 = vmatmul.msk.f32.gmra.mxu1 %vm2188_vm3, %v6845_v42 }
 0x2a9   : > { %v2071_v57 = vadd.f32 %v6585_v26, %v2035_v13  ;;  %5104 = vmatmul.msk.f32.gmra.mxu0 %vm257_vm1, %v1498_v5  ;;  %v1446_v13 = vadd.f32 %v6474_v3, %v6371_v40  ;;  %v1500_v40 = vld [vmem:[#allocation2 + $0x1a2] sm:$0xff] }
 0x2aa   : > { %v1654_v24 = vpop.f32.mrf.mxu2 }
 0x2ab   : > { %vm2103_vm0 = vcmp.gt.f32.partialorder %v2071_v57, 0.0  ;;  %v2135_v25 = vmul.f32 0.2, %v2071_v57  ;;  %v1726_v45 = vadd.f32 %v1654_v24, %v1445_v30  ;;  %v1809_v1 = vpop.f32.mrf.mxu3 }
 0x2ad   : > { %v2167_v7 = vsel %vm2103_vm0, %v2071_v57, %v2135_v25  ;;  %v1881_v21 = vadd.f32 %v1809_v1, %v1726_v45  ;;  %v6860_v25 = vld [vmem:[#allocation3 + $0x90] sm:$0xff] }
 0x2ae   : > { %2256 = vst.msk [vmem:[#allocation3 + $0x99] sm:$0xff] %vm2188_vm3, %v2167_v7  ;;  %v1970_v22 = vpop.f32.mrf.mxu0 }
 0x2af   : > { %v2036_v23 = vadd.f32 %v1964_v4, %v1881_v21  ;;  %5038 = vmatmul.msk.f32.gmra.mxu2 %vm257_vm1, %v6768_v37  ;;  %v1447_v21 = vadd.f32 %v6486_v19, %v6379_v39  ;;  %v2795_v19 = vld [vmem:[#allocation3 + $0x1] sm:$0xff] }
 0x2b0   : > { %5071 = vmatmul.msk.f32.gmra.mxu3 %vm257_vm1, %v6804_v10  ;;  %5117 = vmatmul.msk.f32.gmra.mxu1 %vm2188_vm3, %v6860_v25 }
 0x2b1   : > { %v2072_v30 = vadd.f32 %v6585_v26, %v2036_v23  ;;  %5105 = vmatmul.msk.f32.gmra.mxu0 %vm257_vm1, %v1499_v15  ;;  %v6870_v15 = vpop.f32.mrf.mxu1 }
 0x2b2   : > { %v1657_v57 = vpop.f32.mrf.mxu2 }
 0x2b3   : > { %vm2104_vm2 = vcmp.gt.f32.partialorder %v2072_v30, 0.0  ;;  %v2136_v24 = vmul.f32 0.2, %v2072_v30  ;;  %v1727_v45 = vadd.f32 %v1657_v57, %v1446_v13  ;;  %v1812_v4 = vpop.f32.mrf.mxu3 }
 0x2b5   : > { %v2168_v1 = vsel %vm2104_vm2, %v2072_v30, %v2136_v24  ;;  %v1882_v7 = vadd.f32 %v1812_v4, %v1727_v45  ;;  %v6874_v57 = vld [vmem:[#allocation3 + $0x98] sm:$0xff]  ;;  %v1448_v4 = vadd.f32 %v6502_v34, %v6387_v50  ;;  %v2796_v34 = vld [vmem:[#allocation3 + $0x9] sm:$0xff] }
 0x2b6   : > { %2257 = vst.msk [vmem:[#allocation3 + $0xa9] sm:$0xff] %vm2188_vm3, %v2168_v1  ;;  %v1973_v37 = vpop.f32.mrf.mxu0 }
 0x2b7   : > { %v2037_v3 = vadd.f32 %v1967_v8, %v1882_v7  ;;  %5039 = vmatmul.msk.f32.gmra.mxu2 %vm257_vm1, %v6786_v62 }
 0x2b8   : > { %5072 = vmatmul.msk.f32.gmra.mxu3 %vm257_vm1, %v1497_v28  ;;  %5118 = vmatmul.msk.f32.gmra.mxu1 %vm2188_vm3, %v6874_v57 }
 0x2b9   : > { %v2073_v23 = vadd.f32 %v6585_v26, %v2037_v3  ;;  %5106 = vmatmul.msk.f32.gmra.mxu0 %vm257_vm1, %v1500_v40  ;;  %v6886_v40 = vpop.f32.mrf.mxu1 }
 0x2ba   : > { %v1660_v13 = vpop.f32.mrf.mxu2 }
 0x2bb   : > { %vm2105_vm4 = vcmp.gt.f32.partialorder %v2073_v23, 0.0  ;;  %v2137_v30 = vmul.f32 0.2, %v2073_v23  ;;  %v1728_v8 = vadd.f32 %v1660_v13, %v1447_v21  ;;  %v1815_v24 = vpop.f32.mrf.mxu3  ;;  %v2277_v13 = vld [vmem:[#allocation3] sm:$0xff] }
 0x2bd   : > { %v2169_v45 = vsel %vm2105_vm4, %v2073_v23, %v2137_v30  ;;  %v1883_v62 = vadd.f32 %v1815_v24, %v1728_v8  ;;  %v6888_v21 = vld [vmem:[#allocation3 + $0xa8] sm:$0xff]  ;;  %v1449_v8 = vadd.f32 %v6540_v60, %v6394_v18 }
 0x2be   : > { %2258 = vst.msk [vmem:[#allocation3 + $0xb1] sm:$0xff] %vm2188_vm3, %v2169_v45  ;;  %v1976_v39 = vpop.f32.mrf.mxu0 }
 0x2bf   : > { %v2038_v28 = vadd.f32 %v1970_v22, %v1883_v62  ;;  %5040 = vmatmul.msk.f32.gmra.mxu2 %vm257_vm1, %v6804_v10 }
 0x2c0   : > { %5073 = vmatmul.msk.f32.gmra.mxu3 %vm257_vm1, %v1498_v5  ;;  %5119 = vmatmul.msk.f32.gmra.mxu1 %vm2188_vm3, %v6888_v21 }
 0x2c1   : > { %v2074_v1 = vadd.f32 %v6585_v26, %v2038_v28  ;;  %5203 = vmatmul.msk.f32.vlgmr.msrb.gmra.mxu0 %vm2188_vm3, %v2795_v19 }
 0x2c2   : > { %v1663_v7 = vpop.f32.mrf.mxu2 }
 0x2c3   : > { %vm2106_vm5 = vcmp.gt.f32.partialorder %v2074_v1, 0.0  ;;  %v2138_v3 = vmul.f32 0.2, %v2074_v1  ;;  %v1729_v22 = vadd.f32 %v1663_v7, %v1448_v4  ;;  %v1818_v23 = vpop.f32.mrf.mxu3 }
 0x2c5   : > { %v2170_v10 = vsel %vm2106_vm5, %v2074_v1, %v2138_v3  ;;  %v1884_v30 = vadd.f32 %v1818_v23, %v1729_v22  ;;  %v6900_v19 = vld [vmem:[#allocation3 + $0xb0] sm:$0xff]  ;;  %v6902_v1 = vpop.f32.mrf.mxu1  ;;  %v6910_v22 = vld [vmem:[#allocation3 + $0x19] sm:$0xff]  ;;  %v1450_v23 = vadd.f32 %v6575_v52, %v6400_v44 }
 0x2c6   : > { %2259 = vst.msk [vmem:[#allocation3 + $0xc1] sm:$0xff] %vm2188_vm3, %v2170_v10  ;;  %v1979_v50 = vpop.f32.mrf.mxu0 }
 0x2c7   : > { %v2039_v5 = vadd.f32 %v1973_v37, %v1884_v30  ;;  %5139 = vmatmul.msk.f32.vlgmr.msrb.gmra.mxu2 %vm2188_vm3, %v2277_v13  ;;  %v2278_v37 = vld [vmem:[#allocation3 + $0x8] sm:$0xff] }
 0x2c8   : > { %5171 = vmatmul.msk.f32.vlgmr.msrb.gmra.mxu3 %vm2188_vm3, %v6731_v47  ;;  %5120 = vmatmul.msk.f32.gmra.mxu1 %vm2188_vm3, %v6900_v19 }
 0x2c9   : > { %v2075_v24 = vadd.f32 %v6585_v26, %v2039_v5  ;;  %5204 = vmatmul.msk.f32.gmra.mxu0 %vm2188_vm3, %v2796_v34 }
 0x2ca   : > { %v1666_v45 = vpop.f32.mrf.mxu2 }
 0x2cb   : > { %vm2107_vm1 = vcmp.gt.f32.partialorder %v2075_v24, 0.0  ;;  %v2139_v62 = vmul.f32 0.2, %v2075_v24  ;;  %v1730_v28 = vadd.f32 %v1666_v45, %v1449_v8  ;;  %v1821_v4 = vpop.f32.mrf.mxu3 }
 0x2cd   : > { %v2171_v7 = vsel %vm2107_vm1, %v2075_v24, %v2139_v62  ;;  %v1885_v3 = vadd.f32 %v1821_v4, %v1730_v28  ;;  %v6917_v34 = vld [vmem:[#allocation3 + $0xc0] sm:$0xff]  ;;  %v6922_v52 = vpop.f32.mrf.mxu1  ;;  %v1451_v28 = vadd.f32 %v6625_v12, %v6406_v59 }
 0x2ce   : > { %2260 = vst.msk [vmem:[#allocation3 + $0xc9] sm:$0xff] %vm2188_vm3, %v2171_v7  ;;  %v1982_v18 = vpop.f32.mrf.mxu0  ;;  %v6928_v62 = vld [vmem:[#allocation3 + $0x21] sm:$0xff] }
 0x2cf   : > { %v2040_v60 = vadd.f32 %v1976_v39, %v1885_v3  ;;  %5140 = vmatmul.msk.f32.gmra.mxu2 %vm2188_vm3, %v2278_v37 }
 0x2d0   : > { %5172 = vmatmul.msk.f32.gmra.mxu3 %vm2188_vm3, %v6745_v58  ;;  %5121 = vmatmul.msk.f32.gmra.mxu1 %vm2188_vm3, %v6917_v34 }
 0x2d1   : > { %v2076_v13 = vadd.f32 %v6585_v26, %v2040_v60  ;;  %5205 = vmatmul.msk.f32.gmra.mxu0 %vm2188_vm3, %v6910_v22 }
 0x2d2   : > { %v1669_v10 = vpop.f32.mrf.mxu2 }
 0x2d3   : > { %vm2108_vm6 = vcmp.gt.f32.partialorder %v2076_v13, 0.0  ;;  %v2140_v30 = vmul.f32 0.2, %v2076_v13  ;;  %v1731_v39 = vadd.f32 %v1669_v10, %v1450_v23  ;;  %v1824_v5 = vpop.f32.mrf.mxu3  ;;  %v6946_v10 = vld [vmem:[#allocation3 + $0x31] sm:$0xff] }
 0x2d5   : > { %v2172_v8 = vsel %vm2108_vm6, %v2076_v13, %v2140_v30  ;;  %v1886_v24 = vadd.f32 %v1824_v5, %v1731_v39  ;;  %v1452_v30 = vadd.f32 %v6661_v46, %v6412_v33 }
 0x2d6   : > { %2261 = vst.msk [vmem:[#allocation3 + $0xd9] sm:$0xff] %vm2188_vm3, %v2172_v8  ;;  %v1985_v44 = vpop.f32.mrf.mxu0 }
 0x2d7   : > { %v2041_v45 = vadd.f32 %v1979_v50, %v1886_v24  ;;  %5141 = vmatmul.msk.f32.gmra.mxu2 %vm2188_vm3, %v6654_v16  ;;  %v6935_v50 = vld [vmem:[#allocation3 + $0xc8] sm:$0xff] }
 0x2d8   : > { %5173 = vmatmul.msk.f32.gmra.mxu3 %vm2188_vm3, %v6762_v11  ;;  %5122 = vmatmul.msk.f32.gmra.mxu1 %vm2188_vm3, %v6935_v50 }
 0x2d9   : > { %v2077_v4 = vadd.f32 %v6585_v26, %v2041_v45  ;;  %5206 = vmatmul.msk.f32.gmra.mxu0 %vm2188_vm3, %v6928_v62 }
 0x2da   : > { %v1672_v37 = vpop.f32.mrf.mxu2 }
 0x2db   : > { %vm2109_vm7 = vcmp.gt.f32.partialorder %v2077_v4, 0.0  ;;  %v2141_v7 = vmul.f32 0.2, %v2077_v4  ;;  %v1732_v3 = vadd.f32 %v1672_v37, %v1451_v28  ;;  %v1827_v16 = vpop.f32.mrf.mxu3  ;;  %v6940_v13 = vpop.f32.mrf.mxu1  ;;  %v1453_v37 = vadd.f32 %v6701_v51, %v6418_v9 }
 0x2dd   : > { %v2173_v60 = vsel %vm2109_vm7, %v2077_v4, %v2141_v7  ;;  %v1887_v23 = vadd.f32 %v1827_v16, %v1732_v3  ;;  %v6953_v8 = vld [vmem:[#allocation3 + $0xd8] sm:$0xff] }
 0x2de   : > { %2262 = vst.msk [vmem:[#allocation3 + $0xe1] sm:$0xff] %vm2188_vm3, %v2173_v60  ;;  %v1988_v59 = vpop.f32.mrf.mxu0  ;;  %v6962_v4 = vld [vmem:[#allocation3 + $0x39] sm:$0xff] }
 0x2df   : > { %v2042_v12 = vadd.f32 %v1982_v18, %v1887_v23  ;;  %5142 = vmatmul.msk.f32.gmra.mxu2 %vm2188_vm3, %v6685_v63 }
 0x2e0   : > { %5174 = vmatmul.msk.f32.gmra.mxu3 %vm2188_vm3, %v6781_v6  ;;  %5123 = vmatmul.msk.f32.gmra.mxu1 %vm2188_vm3, %v6953_v8 }
 0x2e1   : > { %v2078_v39 = vadd.f32 %v6585_v26, %v2042_v12  ;;  %5207 = vmatmul.msk.f32.gmra.mxu0 %vm2188_vm3, %v6946_v10 }
 0x2e2   : > { %v1675_v5 = vpop.f32.mrf.mxu2 }
 0x2e3   : > { %vm2110_vm8 = vcmp.gt.f32.partialorder %v2078_v39, 0.0  ;;  %v2142_v18 = vmul.f32 0.2, %v2078_v39  ;;  %v1733_v24 = vadd.f32 %v1675_v5, %v1452_v30  ;;  %v1830_v63 = vpop.f32.mrf.mxu3  ;;  %v6967_v3 = vpop.f32.mrf.mxu1  ;;  %v1454_v5 = vadd.f32 %v6728_v36, %v6426_v29 }
 0x2e5   : > { %v2174_v45 = vsel %vm2110_vm8, %v2078_v39, %v2142_v18  ;;  %v1888_v28 = vadd.f32 %v1830_v63, %v1733_v24  ;;  %v6971_v60 = vld [vmem:[#allocation3 + $0xe0] sm:$0xff]  ;;  %v6980_v39 = vld [vmem:[#allocation3 + $0x49] sm:$0xff] }
 0x2e6   : > { %2263 = vst.msk [vmem:[#allocation3 + $0xf1] sm:$0xff] %vm2188_vm3, %v2174_v45  ;;  %v1991_v33 = vpop.f32.mrf.mxu0 }
 0x2e7   : > { %v2043_v46 = vadd.f32 %v1985_v44, %v1888_v28  ;;  %5143 = vmatmul.msk.f32.gmra.mxu2 %vm2188_vm3, %v6731_v47 }
 0x2e8   : > { %5175 = vmatmul.msk.f32.gmra.mxu3 %vm2188_vm3, %v6799_v48  ;;  %5124 = vmatmul.msk.f32.gmra.mxu1 %vm2188_vm3, %v6971_v60 }
 0x2e9   : > { %v2079_v7 = vadd.f32 %v6585_v26, %v2043_v46  ;;  %5208 = vmatmul.msk.f32.gmra.mxu0 %vm2188_vm3, %v6962_v4 }
 0x2ea   : > { %v1678_v16 = vpop.f32.mrf.mxu2 }
 0x2eb   : > { %vm2111_vm9 = vcmp.gt.f32.partialorder %v2079_v7, 0.0  ;;  %v2143_v44 = vmul.f32 0.2, %v2079_v7  ;;  %v1734_v47 = vadd.f32 %v1678_v16, %v1453_v37  ;;  %v1833_v23 = vpop.f32.mrf.mxu3  ;;  %v1455_v16 = vadd.f32 %v6748_v38, %v6434_v31 }
 0x2ed   : > { %v2175_v12 = vsel %vm2111_vm9, %v2079_v7, %v2143_v44  ;;  %v1889_v30 = vadd.f32 %v1833_v23, %v1734_v47  ;;  %v6989_v45 = vld [vmem:[#allocation3 + $0xf0] sm:$0xff] }
 0x2ee   : > { %2264 = vst.msk [vmem:[#allocation3 + $0xf9] sm:$0xff] %vm2188_vm3, %v2175_v12  ;;  %v1994_v9 = vpop.f32.mrf.mxu0  ;;  %v6998_v7 = vld [vmem:[#allocation3 + $0x51] sm:$0xff] }
 0x2ef   : > { %v2044_v51 = vadd.f32 %v1988_v59, %v1889_v30  ;;  %5144 = vmatmul.msk.f32.gmra.mxu2 %vm2188_vm3, %v6745_v58  ;;  %v6987_v59 = vpop.f32.mrf.mxu1 }
 0x2f0   : > { %5176 = vmatmul.msk.f32.gmra.mxu3 %vm2188_vm3, %v6817_v17  ;;  %5125 = vmatmul.msk.f32.gmra.mxu1 %vm2188_vm3, %v6989_v45 }
 0x2f1   : > { %v2080_v18 = vadd.f32 %v6585_v26, %v2044_v51  ;;  %5209 = vmatmul.msk.f32.gmra.mxu0 %vm2188_vm3, %v6980_v39 }
 0x2f2   : > { %v1681_v24 = vpop.f32.mrf.mxu2 }
 0x2f3   : > { %vm2112_vm10 = vcmp.gt.f32.partialorder %v2080_v18, 0.0  ;;  %v2144_v63 = vmul.f32 0.2, %v2080_v18  ;;  %v1735_v58 = vadd.f32 %v1681_v24, %v1454_v5  ;;  %v1836_v28 = vpop.f32.mrf.mxu3  ;;  %v1456_v24 = vadd.f32 %v6770_v2, %v6442_v54 }
 0x2f5   : > { %v2176_v46 = vsel %vm2112_vm10, %v2080_v18, %v2144_v63  ;;  %v1890_v37 = vadd.f32 %v1836_v28, %v1735_v58  ;;  %v7007_v12 = vld [vmem:[#allocation3 + $0xf8] sm:$0xff]  ;;  %v7016_v18 = vld [vmem:[#allocation3 + $0x61] sm:$0xff] }
 0x2f6   : > { %2265 = vst.msk [vmem:[#allocation3 + $0x109] sm:$0xff] %vm2188_vm3, %v2176_v46  ;;  %v1997_v29 = vpop.f32.mrf.mxu0 }
 0x2f7   : > { %v2045_v36 = vadd.f32 %v1991_v33, %v1890_v37  ;;  %5145 = vmatmul.msk.f32.gmra.mxu2 %vm2188_vm3, %v6762_v11  ;;  %v7005_v33 = vpop.f32.mrf.mxu1 }
 0x2f8   : > { %5177 = vmatmul.msk.f32.gmra.mxu3 %vm2188_vm3, %v6830_v14  ;;  %5126 = vmatmul.msk.f32.gmra.mxu1 %vm2188_vm3, %v7007_v12 }
 0x2f9   : > { %v2081_v44 = vadd.f32 %v6585_v26, %v2045_v36  ;;  %5210 = vmatmul.msk.f32.gmra.mxu0 %vm2188_vm3, %v6998_v7 }
 0x2fa   : > { %v1684_v47 = vpop.f32.mrf.mxu2 }
 0x2fb   : > { %vm2113_vm11 = vcmp.gt.f32.partialorder %v2081_v44, 0.0  ;;  %v2145_v23 = vmul.f32 0.2, %v2081_v44  ;;  %v1736_v11 = vadd.f32 %v1684_v47, %v1455_v16  ;;  %v1839_v30 = vpop.f32.mrf.mxu3  ;;  %v1457_v47 = vadd.f32 %v6794_v53, %v6450_v41 }
 0x2fd   : > { %v2177_v51 = vsel %vm2113_vm11, %v2081_v44, %v2145_v23  ;;  %v1891_v5 = vadd.f32 %v1839_v30, %v1736_v11  ;;  %v7025_v46 = vld [vmem:[#allocation3 + $0x108] sm:$0xff]  ;;  %vm4667_vm11 = vcmask 1041409  }
 0x2fe   : > { %2266 = vst.msk [vmem:[#allocation3 + $0x111] sm:$0xff] %vm2188_vm3, %v2177_v51  ;;  %v2000_v31 = vpop.f32.mrf.mxu0  ;;  %v7034_v44 = vld [vmem:[#allocation3 + $0x69] sm:$0xff] }
 0x2ff   : > { %v2046_v38 = vadd.f32 %v1994_v9, %v1891_v5  ;;  %5146 = vmatmul.msk.f32.gmra.mxu2 %vm2188_vm3, %v6781_v6  ;;  %v7023_v9 = vpop.f32.mrf.mxu1 }
 0x300   : > { %5178 = vmatmul.msk.f32.gmra.mxu3 %vm2188_vm3, %v6845_v42  ;;  %5127 = vmatmul.msk.f32.gmra.mxu1 %vm2188_vm3, %v7025_v46 }
 0x301   : > { %v2082_v63 = vadd.f32 %v6585_v26, %v2046_v38  ;;  %5211 = vmatmul.msk.f32.gmra.mxu0 %vm2188_vm3, %v7016_v18 }
 0x302   : > { %v1687_v58 = vpop.f32.mrf.mxu2 }
 0x303   : > { %vm2114_vm12 = vcmp.gt.f32.partialorder %v2082_v63, 0.0  ;;  %v2146_v28 = vmul.f32 0.2, %v2082_v63  ;;  %v1737_v6 = vadd.f32 %v1687_v58, %v1456_v24  ;;  %v1842_v37 = vpop.f32.mrf.mxu3  ;;  %v1458_v58 = vadd.f32 %v6815_v35, %v6458_v56 }
 0x305   : > { %v2178_v36 = vsel %vm2114_vm12, %v2082_v63, %v2146_v28  ;;  %v1892_v16 = vadd.f32 %v1842_v37, %v1737_v6  ;;  %v7043_v51 = vld [vmem:[#allocation3 + $0x110] sm:$0xff]  ;;  %v7052_v63 = vld [vmem:[#allocation3 + $0x79] sm:$0xff]  ;;  %vm4669_vm12 = vcmask 1042434  }
 0x306   : > { %2267 = vst.msk [vmem:[#allocation3 + $0x121] sm:$0xff] %vm2188_vm3, %v2178_v36  ;;  %v2003_v54 = vpop.f32.mrf.mxu0 }
 0x307   : > { %v2047_v2 = vadd.f32 %v1997_v29, %v1892_v16  ;;  %5147 = vmatmul.msk.f32.gmra.mxu2 %vm2188_vm3, %v6799_v48  ;;  %v7041_v29 = vpop.f32.mrf.mxu1 }
 0x308   : > { %5179 = vmatmul.msk.f32.gmra.mxu3 %vm2188_vm3, %v6860_v25  ;;  %5128 = vmatmul.msk.f32.gmra.mxu1 %vm2188_vm3, %v7043_v51 }
 0x309   : > { %v2083_v23 = vadd.f32 %v6585_v26, %v2047_v2  ;;  %5212 = vmatmul.msk.f32.gmra.mxu0 %vm2188_vm3, %v7034_v44 }
 0x30a   : > { %v1690_v11 = vpop.f32.mrf.mxu2 }
 0x30b   : > { %vm2115_vm13 = vcmp.gt.f32.partialorder %v2083_v23, 0.0  ;;  %v2147_v30 = vmul.f32 0.2, %v2083_v23  ;;  %v1738_v48 = vadd.f32 %v1690_v11, %v1457_v47  ;;  %v1845_v5 = vpop.f32.mrf.mxu3  ;;  %v1459_v11 = vadd.f32 %v6832_v61, %v6469_v20  ;;  %v7088_v61 = vld [vmem:[#allocation3 + $0x91] sm:$0xff] }
 0x30d   : > { %v2179_v38 = vsel %vm2115_vm13, %v2083_v23, %v2147_v30  ;;  %v1893_v24 = vadd.f32 %v1845_v5, %v1738_v48  ;;  %v7061_v36 = vld [vmem:[#allocation3 + $0x120] sm:$0xff]  ;;  %vm4671_vm13 = vcmask 1043459  }
 0x30e   : > { %2268 = vst.msk [vmem:[#allocation3 + $0x129] sm:$0xff] %vm2188_vm3, %v2179_v38  ;;  %v2006_v41 = vpop.f32.mrf.mxu0  ;;  %v7070_v23 = vld [vmem:[#allocation3 + $0x81] sm:$0xff] }
 0x30f   : > { %v2048_v53 = vadd.f32 %v2000_v31, %v1893_v24  ;;  %5148 = vmatmul.msk.f32.gmra.mxu2 %vm2188_vm3, %v6817_v17  ;;  %v7059_v31 = vpop.f32.mrf.mxu1 }
 0x310   : > { %5180 = vmatmul.msk.f32.gmra.mxu3 %vm2188_vm3, %v6874_v57  ;;  %5129 = vmatmul.msk.f32.gmra.mxu1 %vm2188_vm3, %v7061_v36 }
 0x311   : > { %v2084_v28 = vadd.f32 %v6585_v26, %v2048_v53  ;;  %5213 = vmatmul.msk.f32.gmra.mxu0 %vm2188_vm3, %v7052_v63 }
 0x312   : > { %v1693_v6 = vpop.f32.mrf.mxu2 }
 0x313   : > { %vm2116_vm14 = vcmp.gt.f32.partialorder %v2084_v28, 0.0  ;;  %v2148_v37 = vmul.f32 0.2, %v2084_v28  ;;  %v1739_v17 = vadd.f32 %v1693_v6, %v1458_v58  ;;  %v1848_v16 = vpop.f32.mrf.mxu3  ;;  %v7095_v6 = vld [vmem:[%s8265_s2] ss:$0 sm:$0xff] }
 0x315   : > { %v2180_v2 = vsel %vm2116_vm14, %v2084_v28, %v2148_v37  ;;  %v1894_v47 = vadd.f32 %v1848_v16, %v1739_v17  ;;  %v7079_v38 = vld [vmem:[#allocation3 + $0x128] sm:$0xff]  ;;  %v1460_v28 = vadd.f32 %v6850_v43, %v6480_v27  ;;  %vm4673_vm14 = vcmask 1044484  }
 0x316   : > { %2269 = vst.msk [vmem:[#allocation3 + $0x139] sm:$0xff] %vm2188_vm3, %v2180_v2  ;;  %v2009_v56 = vpop.f32.mrf.mxu0 }
 0x317   : > { %v2049_v35 = vadd.f32 %v2003_v54, %v1894_v47  ;;  %5149 = vmatmul.msk.f32.gmra.mxu2 %vm2188_vm3, %v6830_v14  ;;  %v7077_v54 = vpop.f32.mrf.mxu1 }
 0x318   : > { %5181 = vmatmul.msk.f32.gmra.mxu3 %vm2188_vm3, %v6888_v21  ;;  %5130 = vmatmul.msk.f32.gmra.mxu1 %vm2188_vm3, %v7079_v38 }
 0x319   : > { %v2085_v30 = vadd.f32 %v6585_v26, %v2049_v35  ;;  %5214 = vmatmul.msk.f32.gmra.mxu0 %vm2188_vm3, %v7070_v23 }
 0x31a   : > { %v1696_v48 = vpop.f32.mrf.mxu2 }
 0x31b   : > { %vm2117_vm15 = vcmp.gt.f32.partialorder %v2085_v30, 0.0  ;;  %v2149_v5 = vmul.f32 0.2, %v2085_v30  ;;  %v1740_v14 = vadd.f32 %v1696_v48, %v1459_v11  ;;  %v1851_v24 = vpop.f32.mrf.mxu3  ;;  %v1461_v48 = vadd.f32 %v6870_v15, %v6491_v55 }
 0x31d   : > { %v2181_v53 = vsel %vm2117_vm15, %v2085_v30, %v2149_v5  ;;  %v1895_v58 = vadd.f32 %v1851_v24, %v1740_v14  ;;  %v7102_v16 = vld [vmem:[#allocation3 + $0x138] sm:$0xff]  ;;  %vm4675_vm15 = vcmask 1045509  }
 0x31e   : > { %2270 = vst.msk [vmem:[#allocation3 + $0x141] sm:$0xff] %vm2188_vm3, %v2181_v53  ;;  %v2012_v20 = vpop.f32.mrf.mxu0  ;;  %v7111_v30 = vld [vmem:[#allocation3 + $0x99] sm:$0xff] }
 0x31f   : > { %v2050_v26 = vadd.f32 %v2006_v41, %v1895_v58  ;;  %5150 = vmatmul.msk.f32.gmra.mxu2 %vm2188_vm3, %v6845_v42  ;;  %v7100_v17 = vpop.f32.mrf.mxu1 }
 0x320   : > { %5182 = vmatmul.msk.f32.gmra.mxu3 %vm2188_vm3, %v6900_v19  ;;  %5131 = vmatmul.msk.f32.gmra.mxu1 %vm2188_vm3, %v7102_v16 }
 0x321   : > { %v2086_v37 = vadd.f32 %v7095_v6, %v2050_v26  ;;  %5215 = vmatmul.msk.f32.gmra.mxu0 %vm2188_vm3, %v7088_v61 }
 0x322   : > { %v1699_v41 = vpop.f32.mrf.mxu2 }
 0x323   : > { %vm2118_vm0 = vcmp.gt.f32.partialorder %v2086_v37, 0.0  ;;  %v2150_v42 = vmul.f32 0.2, %v2086_v37  ;;  %v1741_v2 = vadd.f32 %v1699_v41, %v1460_v28  ;;  %v1854_v47 = vpop.f32.mrf.mxu3  ;;  %v1462_v41 = vadd.f32 %v6886_v40, %v6505_v32  ;;  %v3225_v40 = vld [vmem:[%s8266_s3 + $0x38] sm:$0xff] }
 0x324   : > { %3247 = vmatpush.msra.mxu2 %v3225_v40 }
 0x325   : > { %v2182_v27 = vsel %vm2118_vm0, %v2086_v37, %v2150_v42  ;;  %v1896_v43 = vadd.f32 %v1854_v47, %v1741_v2  ;;  %v7120_v53 = vld [vmem:[#allocation3 + $0x140] sm:$0xff]  ;;  %v7129_v37 = vld [vmem:[#allocation3 + $0xa9] sm:$0xff]  ;;  %vm4677_vm0 = vcmask 1046534  }
 0x326   : > { %2271 = vst.msk [vmem:[#allocation3 + $0x151] sm:$0xff] %vm2188_vm3, %v2182_v27  ;;  %v2015_v35 = vpop.f32.mrf.mxu0 }
 0x327   : > { %v2051_v11 = vadd.f32 %v2009_v56, %v1896_v43  ;;  %5151 = vmatmul.msk.f32.gmra.mxu2 %vm2188_vm3, %v6860_v25  ;;  %v7118_v56 = vpop.f32.mrf.mxu1 }
 0x328   : > { %5183 = vmatmul.msk.f32.gmra.mxu3 %vm2188_vm3, %v6917_v34  ;;  %5132 = vmatmul.msk.f32.gmra.mxu1 %vm2188_vm3, %v7120_v53 }
 0x329   : > { %v2087_v5 = vadd.f32 %v7095_v6, %v2051_v11  ;;  %5216 = vmatmul.msk.f32.gmra.mxu0 %vm2188_vm3, %v7111_v30 }
 0x32a   : > { %v1702_v14 = vpop.f32.mrf.mxu2 }
 0x32b   : > { %vm2119_vm2 = vcmp.gt.f32.partialorder %v2087_v5, 0.0  ;;  %v2151_v24 = vmul.f32 0.2, %v2087_v5  ;;  %v1742_v25 = vadd.f32 %v1702_v14, %v1461_v48  ;;  %v1857_v58 = vpop.f32.mrf.mxu3  ;;  %v7150_v14 = vld [vmem:[#allocation3 + $0xb1] sm:$0xff] }
 0x32d   : > { %v2183_v26 = vsel %vm2119_vm2, %v2087_v5, %v2151_v24  ;;  %v1897_v28 = vadd.f32 %v1857_v58, %v1742_v25  ;;  %v7138_v27 = vld [vmem:[#allocation3 + $0x150] sm:$0xff]  ;;  %v1463_v24 = vadd.f32 %v6902_v1, %v6532_v49  ;;  %vm4679_vm2 = vcmask 1047559  }
 0x32e   : > { %2272 = vst.msk [vmem:[#allocation3 + $0x159] sm:$0xff] %vm2188_vm3, %v2183_v26  ;;  %v2018_v55 = vpop.f32.mrf.mxu0 }
 0x32f   : > { %v2052_v15 = vadd.f32 %v2012_v20, %v1897_v28  ;;  %5152 = vmatmul.msk.f32.gmra.mxu2 %vm2188_vm3, %v6874_v57  ;;  %v7136_v20 = vpop.f32.mrf.mxu1 }
 0x330   : > { %5184 = vmatmul.msk.f32.gmra.mxu3 %vm2188_vm3, %v6935_v50  ;;  %5133 = vmatmul.msk.f32.gmra.mxu1 %vm2188_vm3, %v7138_v27 }
 0x331   : > { %v2088_v42 = vadd.f32 %v7095_v6, %v2052_v15  ;;  %5217 = vmatmul.msk.f32.gmra.mxu0 %vm2188_vm3, %v7129_v37 }
 0x332   : > { %v1705_v2 = vpop.f32.mrf.mxu2 }
 0x333   : > { %vm2120_vm4 = vcmp.gt.f32.partialorder %v2088_v42, 0.0  ;;  %v2152_v47 = vmul.f32 0.2, %v2088_v42  ;;  %v1743_v57 = vadd.f32 %v1705_v2, %v1462_v41  ;;  %v1860_v43 = vpop.f32.mrf.mxu3  ;;  %v3413_v41 = vld [vmem:[%s8266_s3 + $0x10] sm:$0xff] }
 0x334   : > { %3525 = vmatpush.msra.mxu3 %v3413_v41 }
 0x335   : > { %v2184_v11 = vsel %vm2120_vm4, %v2088_v42, %v2152_v47  ;;  %v1898_v48 = vadd.f32 %v1860_v43, %v1743_v57  ;;  %v7171_v47 = vld [vmem:[#allocation3 + $0xc1] sm:$0xff]  ;;  %v1464_v57 = vadd.f32 %v6922_v52, %v6561_v0 }
 0x336   : > { %2273 = vst.msk [vmem:[#allocation3 + $0x169] sm:$0xff] %vm2188_vm3, %v2184_v11  ;;  %v2021_v32 = vpop.f32.mrf.mxu0 }
 0x337   : > { %v2053_v5 = vadd.f32 %v2015_v35, %v1898_v48  ;;  %5153 = vmatmul.msk.f32.gmra.mxu2 %vm2188_vm3, %v6888_v21  ;;  %v7157_v26 = vpop.f32.mrf.mxu1  ;;  %v7159_v21 = vld [vmem:[#allocation3 + $0x158] sm:$0xff] }
 0x338   : > { %5185 = vmatmul.msk.f32.gmra.mxu3 %vm2188_vm3, %v6953_v8  ;;  %5134 = vmatmul.msk.f32.gmra.mxu1 %vm2188_vm3, %v7159_v21 }
 0x339   : > { %v2089_v25 = vadd.f32 %v7095_v6, %v2053_v5  ;;  %5218 = vmatmul.msk.f32.gmra.mxu0 %vm2188_vm3, %v7150_v14 }
 0x33a   : > { %v1708_v58 = vpop.f32.mrf.mxu2 }
 0x33b   : > { %vm2121_vm5 = vcmp.gt.f32.partialorder %v2089_v25, 0.0  ;;  %v2153_v35 = vmul.f32 0.2, %v2089_v25  ;;  %v1744_v28 = vadd.f32 %v1708_v58, %v1463_v24  ;;  %v1863_v15 = vpop.f32.mrf.mxu3  ;;  %v3655_v24 = vld [vmem:[%s8266_s3 + $0x28] sm:$0xff]  ;;  %v3807_v58 = vld [vmem:[%s8266_s3 + $0x40] sm:$0xff] }
 0x33c   : > { %3677 = vmatpush.msra.mxu0 %v3655_v24  ;;  %3829 = vmatpush.msra.mxu1 %v3807_v58  ;;  %v7231_v58 = vld [vmem:[#allocation3 + $0xe1] sm:$0xff] }
 0x33d   : > { %v2185_v49 = vsel %vm2121_vm5, %v2089_v25, %v2153_v35  ;;  %v1899_v1 = vadd.f32 %v1863_v15, %v1744_v28  ;;  %v7180_v40 = vld [vmem:[#allocation3 + $0x168] sm:$0xff] }
 0x33e   : > { %2274 = vst.msk [vmem:[#allocation3 + $0x171] sm:$0xff] %vm2188_vm3, %v2185_v49  ;;  %v2945_v42 = vpop.f32.mrf.mxu0  ;;  %v7195_v28 = vld [vmem:[#allocation3 + $0xc9] sm:$0xff] }
 0x33f   : > { %v2054_v2 = vadd.f32 %v2018_v55, %v1899_v1  ;;  %5154 = vmatmul.msk.f32.gmra.mxu2 %vm2188_vm3, %v6900_v19  ;;  %v7178_v55 = vpop.f32.mrf.mxu1 }
 0x340   : > { %5186 = vmatmul.msk.f32.gmra.mxu3 %vm2188_vm3, %v6971_v60  ;;  %5135 = vmatmul.msk.f32.gmra.mxu1 %vm2188_vm3, %v7180_v40 }
 0x341   : > { %v2090_v43 = vadd.f32 %v7095_v6, %v2054_v2  ;;  %5219 = vmatmul.msk.f32.gmra.mxu0 %vm2188_vm3, %v7171_v47 }
 0x342   : > { %v1711_v11 = vpop.f32.mrf.mxu2 }
 0x343   : > { %vm2122_vm1 = vcmp.gt.f32.partialorder %v2090_v43, 0.0  ;;  %v2154_v48 = vmul.f32 0.2, %v2090_v43  ;;  %v1745_v19 = vadd.f32 %v1711_v11, %v1464_v57  ;;  %v1866_v5 = vpop.f32.mrf.mxu3 }
 0x345   : > { %v2186_v0 = vsel %vm2122_vm1, %v2090_v43, %v2154_v48  ;;  %v1900_v52 = vadd.f32 %v1866_v5, %v1745_v19  ;;  %v7214_v48 = vld [vmem:[#allocation3 + $0xd9] sm:$0xff] }
 0x346   : > { %2275 = vst.msk [vmem:[#allocation3 + $0x181] sm:$0xff] %vm2188_vm3, %v2186_v0  ;;  %v2948_v25 = vpop.f32.mrf.mxu0 }
 0x347   : > { %v2055_v35 = vadd.f32 %v2021_v32, %v1900_v52  ;;  %5155 = vmatmul.msk.f32.gmra.mxu2 %vm2188_vm3, %v6917_v34  ;;  %v7200_v1 = vpop.f32.mrf.mxu1  ;;  %v7202_v32 = vld [vmem:[#allocation3 + $0x170] sm:$0xff] }
 0x348   : > { %5187 = vmatmul.msk.f32.gmra.mxu3 %vm2188_vm3, %v6989_v45  ;;  %5136 = vmatmul.msk.f32.gmra.mxu1 %vm2188_vm3, %v7202_v32 }
 0x349   : > { %v2091_v15 = vadd.f32 %v7095_v6, %v2055_v35  ;;  %5220 = vmatmul.msk.f32.gmra.mxu0 %vm2188_vm3, %v7195_v28 }
 0x34a   : > { %v2547_v41 = vpop.f32.mrf.mxu2 }
 0x34b   : > { %vm2123_vm6 = vcmp.gt.f32.partialorder %v2091_v15, 0.0  ;;  %v2155_v49 = vmul.f32 0.2, %v2091_v15  ;;  %v2548_v34 = vadd.f32 %v2547_v41, %v6940_v13  ;;  %v2667_v2 = vpop.f32.mrf.mxu3 }
 0x34d   : > { %v2187_v57 = vsel %vm2123_vm6, %v2091_v15, %v2155_v49  ;;  %v2763_v43 = vadd.f32 %v2667_v2, %v2548_v34  ;;  %v7220_v5 = vld [vmem:[#allocation3 + $0x180] sm:$0xff]  ;;  %v7248_v2 = vld [vmem:[#allocation3 + $0xf1] sm:$0xff] }
 0x34e   : > { %2276 = vst.msk [vmem:[#allocation3 + $0x189] sm:$0xff] %vm2188_vm3, %v2187_v57  ;;  %v2951_v6 = vpop.f32.mrf.mxu0 }
 0x34f   : > { %5156 = vmatmul.msk.f32.gmra.mxu2 %vm2188_vm3, %v6935_v50  ;;  %v7210_v11 = vadd.f32 %v2945_v42, %v2763_v43  ;;  %v7218_v19 = vpop.f32.mrf.mxu1 }
 0x350   : > { %5188 = vmatmul.msk.f32.gmra.mxu3 %vm2188_vm3, %v7007_v12  ;;  %5137 = vmatmul.msk.f32.gmra.mxu1 %vm2188_vm3, %v7220_v5 }
 0x351   : > { %5221 = vmatmul.msk.f32.gmra.mxu0 %vm2188_vm3, %v7214_v48 }
 0x352   : > { %v2550_v13 = vpop.f32.mrf.mxu2 }
 0x353   : > { %v2551_v24 = vadd.f32 %v2550_v13, %v6967_v3  ;;  %v2670_v0 = vpop.f32.mrf.mxu3 }
 0x355   : > { %v2764_v52 = vadd.f32 %v2670_v0, %v2551_v24  ;;  %v7237_v15 = vld [vmem:[#allocation3 + $0x188] sm:$0xff]  ;;  %v7263_v0 = vld [vmem:[#allocation3 + $0xf9] sm:$0xff] }
 0x356   : > { %v2954_v50 = vpop.f32.mrf.mxu0 }
 0x357   : > { %5157 = vmatmul.msk.f32.gmra.mxu2 %vm2188_vm3, %v6953_v8  ;;  %v7227_v42 = vadd.f32 %v2948_v25, %v2764_v52  ;;  %v7235_v35 = vpop.f32.mrf.mxu1 }
 0x358   : > { %5189 = vmatmul.msk.f32.gmra.mxu3 %vm2188_vm3, %v7025_v46  ;;  %5138 = vmatmul.msk.f32.gmra.mxu1 %vm2188_vm3, %v7237_v15 }
 0x359   : > { %5222 = vmatmul.msk.f32.gmra.mxu0 %vm2188_vm3, %v7231_v58 }
 0x35a   : > { %v2553_v3 = vpop.f32.mrf.mxu2 }
 0x35b   : > { %v2554_v41 = vadd.f32 %v2553_v3, %v6987_v59  ;;  %v2673_v49 = vpop.f32.mrf.mxu3 }
 0x35d   : > { %v2765_v34 = vadd.f32 %v2673_v49, %v2554_v41  ;;  %v7278_v49 = vld [vmem:[#allocation3 + $0x109] sm:$0xff] }
 0x35e   : > { %v2957_v8 = vpop.f32.mrf.mxu0 }
 0x35f   : > { %5158 = vmatmul.msk.f32.gmra.mxu2 %vm2188_vm3, %v6971_v60  ;;  %v7244_v25 = vadd.f32 %v2951_v6, %v2765_v34  ;;  %v7252_v57 = vpop.f32.mrf.mxu1 }
 0x360   : > { %5190 = vmatmul.msk.f32.gmra.mxu3 %vm2188_vm3, %v7043_v51  ;;  %5235 = vmatmul.msk.f32.vlgmr.msrb.gmra.mxu1 %vm2188_vm3, %v6910_v22 }
 0x361   : > { %5223 = vmatmul.msk.f32.gmra.mxu0 %vm2188_vm3, %v7248_v2 }
 0x362   : > { %v2556_v59 = vpop.f32.mrf.mxu2 }
 0x363   : > { %v2557_v43 = vadd.f32 %v2556_v59, %v7005_v33  ;;  %v2676_v13 = vpop.f32.mrf.mxu3 }
 0x365   : > { %v2766_v24 = vadd.f32 %v2676_v13, %v2557_v43  ;;  %v7293_v13 = vld [vmem:[#allocation3 + $0x111] sm:$0xff] }
 0x366   : > { %v2960_v60 = vpop.f32.mrf.mxu0 }
 0x367   : > { %5159 = vmatmul.msk.f32.gmra.mxu2 %vm2188_vm3, %v6989_v45  ;;  %v7259_v6 = vadd.f32 %v2954_v50, %v2766_v24  ;;  %v7267_v52 = vpop.f32.mrf.mxu1 }
 0x368   : > { %5191 = vmatmul.msk.f32.gmra.mxu3 %vm2188_vm3, %v7061_v36  ;;  %5236 = vmatmul.msk.f32.gmra.mxu1 %vm2188_vm3, %v6928_v62 }
 0x369   : > { %5224 = vmatmul.msk.f32.gmra.mxu0 %vm2188_vm3, %v7263_v0 }
 0x36a   : > { %v2559_v33 = vpop.f32.mrf.mxu2 }
 0x36b   : > { %v2560_v3 = vadd.f32 %v2559_v33, %v7023_v9  ;;  %v2679_v22 = vpop.f32.mrf.mxu3 }
 0x36d   : > { %v2767_v41 = vadd.f32 %v2679_v22, %v2560_v3 }
 0x36e   : > { %v2963_v45 = vpop.f32.mrf.mxu0 }
 0x36f   : > { %5160 = vmatmul.msk.f32.gmra.mxu2 %vm2188_vm3, %v7007_v12  ;;  %v7274_v50 = vadd.f32 %v2957_v8, %v2767_v41  ;;  %v7282_v34 = vpop.f32.mrf.mxu1  ;;  %v7308_v41 = vld [vmem:[#allocation3 + $0x121] sm:$0xff] }
 0x370   : > { %5192 = vmatmul.msk.f32.gmra.mxu3 %vm2188_vm3, %v7079_v38  ;;  %5237 = vmatmul.msk.f32.gmra.mxu1 %vm2188_vm3, %v6946_v10 }
 0x371   : > { %5225 = vmatmul.msk.f32.gmra.mxu0 %vm2188_vm3, %v7278_v49 }
 0x372   : > { %v2562_v9 = vpop.f32.mrf.mxu2 }
 0x373   : > { %v2563_v59 = vadd.f32 %v2562_v9, %v7041_v29  ;;  %v2682_v62 = vpop.f32.mrf.mxu3 }
 0x375   : > { %v2768_v43 = vadd.f32 %v2682_v62, %v2563_v59 }
 0x376   : > { %v2966_v12 = vpop.f32.mrf.mxu0 }
 0x377   : > { %5161 = vmatmul.msk.f32.gmra.mxu2 %vm2188_vm3, %v7025_v46  ;;  %v7289_v8 = vadd.f32 %v2960_v60, %v2768_v43  ;;  %v7297_v24 = vpop.f32.mrf.mxu1 }
 0x378   : > { %5193 = vmatmul.msk.f32.gmra.mxu3 %vm2188_vm3, %v7102_v16  ;;  %5238 = vmatmul.msk.f32.gmra.mxu1 %vm2188_vm3, %v6962_v4 }
 0x379   : > { %5226 = vmatmul.msk.f32.gmra.mxu0 %vm2188_vm3, %v7293_v13 }
 0x37a   : > { %v2565_v29 = vpop.f32.mrf.mxu2 }
 0x37b   : > { %v2566_v33 = vadd.f32 %v2565_v29, %v7059_v31  ;;  %v2685_v3 = vpop.f32.mrf.mxu3  ;;  %v7323_v29 = vld [vmem:[#allocation3 + $0x129] sm:$0xff] }
 0x37d   : > { %v2769_v22 = vadd.f32 %v2685_v3, %v2566_v33 }
 0x37e   : > { %v2969_v46 = vpop.f32.mrf.mxu0 }
 0x37f   : > { %5162 = vmatmul.msk.f32.gmra.mxu2 %vm2188_vm3, %v7043_v51  ;;  %v7304_v60 = vadd.f32 %v2963_v45, %v2769_v22  ;;  %v7312_v9 = vpop.f32.mrf.mxu1 }
 0x380   : > { %5194 = vmatmul.msk.f32.gmra.mxu3 %vm2188_vm3, %v7120_v53  ;;  %5239 = vmatmul.msk.f32.gmra.mxu1 %vm2188_vm3, %v6980_v39 }
 0x381   : > { %5227 = vmatmul.msk.f32.gmra.mxu0 %vm2188_vm3, %v7308_v41 }
 0x382   : > { %v2568_v31 = vpop.f32.mrf.mxu2 }
 0x383   : > { %v2569_v59 = vadd.f32 %v2568_v31, %v7077_v54  ;;  %v2688_v62 = vpop.f32.mrf.mxu3 }
 0x385   : > { %v2770_v43 = vadd.f32 %v2688_v62, %v2569_v59  ;;  %v7338_v59 = vld [vmem:[#allocation3 + $0x139] sm:$0xff] }
 0x386   : > { %v2972_v51 = vpop.f32.mrf.mxu0 }
 0x387   : > { %5163 = vmatmul.msk.f32.gmra.mxu2 %vm2188_vm3, %v7061_v36  ;;  %v7319_v45 = vadd.f32 %v2966_v12, %v2770_v43  ;;  %v7327_v33 = vpop.f32.mrf.mxu1 }
 0x388   : > { %5195 = vmatmul.msk.f32.gmra.mxu3 %vm2188_vm3, %v7138_v27  ;;  %5240 = vmatmul.msk.f32.gmra.mxu1 %vm2188_vm3, %v6998_v7 }
 0x389   : > { %5228 = vmatmul.msk.f32.gmra.mxu0 %vm2188_vm3, %v7323_v29 }
 0x38a   : > { %v2571_v54 = vpop.f32.mrf.mxu2 }
 0x38b   : > { %v2572_v3 = vadd.f32 %v2571_v54, %v7100_v17  ;;  %v2691_v22 = vpop.f32.mrf.mxu3 }
 0x38d   : > { %v2771_v31 = vadd.f32 %v2691_v22, %v2572_v3  ;;  %v7353_v22 = vld [vmem:[#allocation3 + $0x141] sm:$0xff] }
 0x38e   : > { %v2975_v36 = vpop.f32.mrf.mxu0 }
 0x38f   : > { %5164 = vmatmul.msk.f32.gmra.mxu2 %vm2188_vm3, %v7079_v38  ;;  %v7334_v12 = vadd.f32 %v2969_v46, %v2771_v31  ;;  %v7342_v62 = vpop.f32.mrf.mxu1 }
 0x390   : > { %5196 = vmatmul.msk.f32.gmra.mxu3 %vm2188_vm3, %v7159_v21  ;;  %5241 = vmatmul.msk.f32.gmra.mxu1 %vm2188_vm3, %v7016_v18 }
 0x391   : > { %8306 = vst [vmem:[#allocation4_spill] sm:$0xff] %v7334_v12  ;;  %5229 = vmatmul.msk.f32.gmra.mxu0 %vm2188_vm3, %v7338_v59 }
 0x392   : > { %v2574_v17 = vpop.f32.mrf.mxu2 }
 0x393   : > { %v2575_v43 = vadd.f32 %v2574_v17, %v7118_v56  ;;  %v2694_v54 = vpop.f32.mrf.mxu3 }
 0x395   : > { %v2772_v3 = vadd.f32 %v2694_v54, %v2575_v43 }
 0x396   : > { %v2978_v38 = vpop.f32.mrf.mxu0 }
 0x397   : > { %5165 = vmatmul.msk.f32.gmra.mxu2 %vm2188_vm3, %v7102_v16  ;;  %v7349_v46 = vadd.f32 %v2972_v51, %v2772_v3  ;;  %v7357_v31 = vpop.f32.mrf.mxu1  ;;  %v7368_v3 = vld [vmem:[#allocation3 + $0x151] sm:$0xff] }
 0x398   : > { %5197 = vmatmul.msk.f32.gmra.mxu3 %vm2188_vm3, %v7180_v40  ;;  %5242 = vmatmul.msk.f32.gmra.mxu1 %vm2188_vm3, %v7034_v44 }
 0x399   : > { %8307 = vst [vmem:[#allocation5_spill] sm:$0xff] %v7349_v46  ;;  %5230 = vmatmul.msk.f32.gmra.mxu0 %vm2188_vm3, %v7353_v22 }
 0x39a   : > { %v2577_v56 = vpop.f32.mrf.mxu2 }
 0x39b   : > { %v2578_v17 = vadd.f32 %v2577_v56, %v7136_v20  ;;  %v2697_v43 = vpop.f32.mrf.mxu3 }
 0x39d   : > { %v2773_v54 = vadd.f32 %v2697_v43, %v2578_v17 }
 0x39e   : > { %v2981_v16 = vpop.f32.mrf.mxu0 }
 0x39f   : > { %5166 = vmatmul.msk.f32.gmra.mxu2 %vm2188_vm3, %v7120_v53  ;;  %v7364_v51 = vadd.f32 %v2975_v36, %v2773_v54  ;;  %v7372_v56 = vpop.f32.mrf.mxu1  ;;  %v7383_v54 = vld [vmem:[#allocation3 + $0x159] sm:$0xff] }
 0x3a0   : > { %5198 = vmatmul.msk.f32.gmra.mxu3 %vm2188_vm3, %v7202_v32  ;;  %5243 = vmatmul.msk.f32.gmra.mxu1 %vm2188_vm3, %v7052_v63 }
 0x3a1   : > { %8308 = vst [vmem:[#allocation6_spill] sm:$0xff] %v7364_v51  ;;  %5231 = vmatmul.msk.f32.gmra.mxu0 %vm2188_vm3, %v7368_v3 }
 0x3a2   : > { %v2580_v20 = vpop.f32.mrf.mxu2 }
 0x3a3   : > { %v2581_v17 = vadd.f32 %v2580_v20, %v7157_v26  ;;  %v2700_v43 = vpop.f32.mrf.mxu3 }
 0x3a5   : > { %v2774_v46 = vadd.f32 %v2700_v43, %v2581_v17 }
 0x3a6   : > { %v2984_v53 = vpop.f32.mrf.mxu0 }
 0x3a7   : > { %5167 = vmatmul.msk.f32.gmra.mxu2 %vm2188_vm3, %v7138_v27  ;;  %v7379_v36 = vadd.f32 %v2978_v38, %v2774_v46  ;;  %v7387_v20 = vpop.f32.mrf.mxu1  ;;  %v7398_v38 = vld [vmem:[#allocation3 + $0x169] sm:$0xff] }
 0x3a8   : > { %5199 = vmatmul.msk.f32.gmra.mxu3 %vm2188_vm3, %v7220_v5  ;;  %5244 = vmatmul.msk.f32.gmra.mxu1 %vm2188_vm3, %v7070_v23 }
 0x3a9   : > { %8309 = vst [vmem:[#allocation7_spill] sm:$0xff] %v7379_v36  ;;  %5232 = vmatmul.msk.f32.gmra.mxu0 %vm2188_vm3, %v7383_v54  ;;  %v2311_v36 = vld [vmem:[#allocation3 + $0x198] sm:$0xff] }
 0x3aa   : > { %v2583_v26 = vpop.f32.mrf.mxu2 }
 0x3ab   : > { %v2584_v17 = vadd.f32 %v2583_v26, %v7178_v55  ;;  %v2703_v43 = vpop.f32.mrf.mxu3 }
 0x3ad   : > { %v2775_v51 = vadd.f32 %v2703_v43, %v2584_v17 }
 0x3ae   : > { %v2987_v27 = vpop.f32.mrf.mxu0 }
 0x3af   : > { %5168 = vmatmul.msk.f32.gmra.mxu2 %vm2188_vm3, %v7159_v21  ;;  %v7394_v5 = vadd.f32 %v2981_v16, %v2775_v51  ;;  %v7402_v46 = vpop.f32.mrf.mxu1  ;;  %v7412_v16 = vld [vmem:[#allocation3 + $0x171] sm:$0xff] }
 0x3b0   : > { %5200 = vmatmul.msk.f32.gmra.mxu3 %vm2188_vm3, %v7237_v15  ;;  %5245 = vmatmul.msk.f32.gmra.mxu1 %vm2188_vm3, %v7088_v61 }
 0x3b1   : > { %8310 = vst [vmem:[#allocation8_spill] sm:$0xff] %v7394_v5  ;;  %5233 = vmatmul.msk.f32.gmra.mxu0 %vm2188_vm3, %v7398_v38  ;;  %v2312_v5 = vld [vmem:[#allocation3 + $0x1a0] sm:$0xff] }
 0x3b2   : > { %v2586_v55 = vpop.f32.mrf.mxu2 }
 0x3b3   : > { %v2587_v26 = vadd.f32 %v2586_v55, %v7200_v1  ;;  %v2706_v17 = vpop.f32.mrf.mxu3 }
 0x3b5   : > { %v2776_v43 = vadd.f32 %v2706_v17, %v2587_v26 }
 0x3b6   : > { %v2990_v21 = vpop.f32.mrf.mxu0 }
 0x3b7   : > { %5169 = vmatmul.msk.f32.gmra.mxu2 %vm2188_vm3, %v7180_v40  ;;  %v7409_v15 = vadd.f32 %v2984_v53, %v2776_v43  ;;  %v7416_v51 = vpop.f32.mrf.mxu1 }
 0x3b8   : > { %5201 = vmatmul.msk.f32.gmra.mxu3 %vm2188_vm3, %v2311_v36  ;;  %5246 = vmatmul.msk.f32.gmra.mxu1 %vm2188_vm3, %v7111_v30  ;;  %v3379_v36 = vld [vmem:[#allocation3 + $0x1a] sm:$0xff] }
 0x3b9   : > { %8311 = vst [vmem:[#allocation9_spill] sm:$0xff] %v7409_v15  ;;  %5234 = vmatmul.msk.f32.gmra.mxu0 %vm2188_vm3, %v7412_v16 }
 0x3ba   : > { %v2589_v1 = vpop.f32.mrf.mxu2 }
 0x3bb   : > { %v2590_v55 = vadd.f32 %v2589_v1, %v7218_v19  ;;  %v2709_v26 = vpop.f32.mrf.mxu3 }
 0x3bd   : > { %v2777_v17 = vadd.f32 %v2709_v26, %v2590_v55  ;;  %v3377_v26 = vld [vmem:[#allocation3 + $0x2] sm:$0xff] }
 0x3be   : > { %v2993_v40 = vpop.f32.mrf.mxu0 }
 0x3bf   : > { %5170 = vmatmul.msk.f32.gmra.mxu2 %vm2188_vm3, %v7202_v32  ;;  %v7423_v53 = vadd.f32 %v2987_v27, %v2777_v17  ;;  %v7427_v15 = vpop.f32.mrf.mxu1  ;;  %v3380_v27 = vld [vmem:[#allocation3 + $0x22] sm:$0xff] }
 0x3c0   : > { %5202 = vmatmul.msk.f32.gmra.mxu3 %vm2188_vm3, %v2312_v5  ;;  %5247 = vmatmul.msk.f32.gmra.mxu1 %vm2188_vm3, %v7129_v37 }
 0x3c1   : > { %8312 = vst [vmem:[#allocation10_spill] sm:$0xff] %v7423_v53  ;;  %5331 = vmatmul.msk.f32.vlgmr.msra.gmra.mxu0 %vm2188_vm3, %v3379_v36 }
 0x3c2   : > { %v2592_v43 = vpop.f32.mrf.mxu2 }
 0x3c3   : > { %v2593_v19 = vadd.f32 %v2592_v43, %v7235_v35  ;;  %v2712_v1 = vpop.f32.mrf.mxu3 }
 0x3c5   : > { %v2778_v55 = vadd.f32 %v2712_v1, %v2593_v19  ;;  %v3378_v1 = vld [vmem:[#allocation3 + $0xa] sm:$0xff] }
 0x3c6   : > { %v2996_v12 = vpop.f32.mrf.mxu0 }
 0x3c7   : > { %5267 = vmatmul.msk.f32.vlgmr.msra.gmra.mxu2 %vm2188_vm3, %v6946_v10  ;;  %v7434_v32 = vadd.f32 %v2990_v21, %v2778_v55  ;;  %v7438_v17 = vpop.f32.mrf.mxu1  ;;  %v7448_v21 = vld [vmem:[#allocation3 + $0x32] sm:$0xff] }
 0x3c8   : > { %5299 = vmatmul.msk.f32.vlgmr.msra.gmra.mxu3 %vm2188_vm3, %v3377_v26  ;;  %5248 = vmatmul.msk.f32.gmra.mxu1 %vm2188_vm3, %v7150_v14 }
 0x3c9   : > { %5332 = vmatmul.msk.f32.gmra.mxu0 %vm2188_vm3, %v3380_v27 }
 0x3ca   : > { %v2595_v5 = vpop.f32.mrf.mxu2 }
 0x3cb   : > { %v2596_v35 = vadd.f32 %v2595_v5, %v7252_v57  ;;  %v2715_v43 = vpop.f32.mrf.mxu3 }
 0x3cd   : > { %v2779_v19 = vadd.f32 %v2715_v43, %v2596_v35  ;;  %v7462_v43 = vld [vmem:[#allocation3 + $0x3a] sm:$0xff] }
 0x3ce   : > { %v2999_v53 = vpop.f32.mrf.mxu0 }
 0x3cf   : > { %5268 = vmatmul.msk.f32.gmra.mxu2 %vm2188_vm3, %v6962_v4  ;;  %v7445_v10 = vadd.f32 %v2993_v40, %v2779_v19  ;;  %v7452_v55 = vpop.f32.mrf.mxu1 }
 0x3d0   : > { %5300 = vmatmul.msk.f32.gmra.mxu3 %vm2188_vm3, %v3378_v1  ;;  %5249 = vmatmul.msk.f32.gmra.mxu1 %vm2188_vm3, %v7171_v47 }
 0x3d1   : > { %5333 = vmatmul.msk.f32.gmra.mxu0 %vm2188_vm3, %v7448_v21 }
 0x3d2   : > { %v2598_v57 = vpop.f32.mrf.mxu2 }
 0x3d3   : > { %v2599_v26 = vadd.f32 %v2598_v57, %v7267_v52  ;;  %v2718_v5 = vpop.f32.mrf.mxu3 }
 0x3d5   : > { %v2780_v35 = vadd.f32 %v2718_v5, %v2599_v26 }
 0x3d6   : > { %v3002_v4 = vpop.f32.mrf.mxu0 }
 0x3d7   : > { %5269 = vmatmul.msk.f32.gmra.mxu2 %vm2188_vm3, %v6980_v39  ;;  %v7459_v40 = vadd.f32 %v2996_v12, %v2780_v35  ;;  %v7466_v52 = vpop.f32.mrf.mxu1 }
 0x3d8   : > { %5301 = vmatmul.msk.f32.gmra.mxu3 %vm2188_vm3, %v3379_v36  ;;  %5250 = vmatmul.msk.f32.gmra.mxu1 %vm2188_vm3, %v7195_v28  ;;  %v7476_v36 = vld [vmem:[#allocation3 + $0x4a] sm:$0xff] }
 0x3d9   : > { %8313 = vst [vmem:[#allocation11_spill] sm:$0xff] %v7459_v40  ;;  %5334 = vmatmul.msk.f32.gmra.mxu0 %vm2188_vm3, %v7462_v43 }
 0x3da   : > { %v2601_v19 = vpop.f32.mrf.mxu2 }
 0x3db   : > { %v2602_v1 = vadd.f32 %v2601_v19, %v7282_v34  ;;  %v2721_v57 = vpop.f32.mrf.mxu3 }
 0x3dd   : > { %v2781_v26 = vadd.f32 %v2721_v57, %v2602_v1 }
 0x3de   : > { %v3005_v39 = vpop.f32.mrf.mxu0 }
 0x3df   : > { %5270 = vmatmul.msk.f32.gmra.mxu2 %vm2188_vm3, %v6998_v7  ;;  %v7473_v12 = vadd.f32 %v2999_v53, %v2781_v26  ;;  %v7480_v34 = vpop.f32.mrf.mxu1 }
 0x3e0   : > { %5302 = vmatmul.msk.f32.gmra.mxu3 %vm2188_vm3, %v3380_v27  ;;  %5251 = vmatmul.msk.f32.gmra.mxu1 %vm2188_vm3, %v7214_v48  ;;  %v7491_v27 = vld [vmem:[#allocation3 + $0x52] sm:$0xff] }
 0x3e1   : > { %5335 = vmatmul.msk.f32.gmra.mxu0 %vm2188_vm3, %v7476_v36 }
 0x3e2   : > { %v2604_v5 = vpop.f32.mrf.mxu2 }
 0x3e3   : > { %v2605_v35 = vadd.f32 %v2604_v5, %v7297_v24  ;;  %v2724_v19 = vpop.f32.mrf.mxu3 }
 0x3e5   : > { %v2782_v1 = vadd.f32 %v2724_v19, %v2605_v35  ;;  %v7506_v19 = vld [vmem:[#allocation3 + $0x62] sm:$0xff] }
 0x3e6   : > { %v3008_v7 = vpop.f32.mrf.mxu0 }
 0x3e7   : > { %5271 = vmatmul.msk.f32.gmra.mxu2 %vm2188_vm3, %v7016_v18  ;;  %v7487_v53 = vadd.f32 %v3002_v4, %v2782_v1  ;;  %v7495_v57 = vpop.f32.mrf.mxu1 }
 0x3e8   : > { %5303 = vmatmul.msk.f32.gmra.mxu3 %vm2188_vm3, %v7448_v21  ;;  %5252 = vmatmul.msk.f32.gmra.mxu1 %vm2188_vm3, %v7231_v58 }
 0x3e9   : > { %8314 = vst [vmem:[#allocation12_spill] sm:$0xff] %v7487_v53  ;;  %5336 = vmatmul.msk.f32.gmra.mxu0 %vm2188_vm3, %v7491_v27 }
 0x3ea   : > { %v2607_v24 = vpop.f32.mrf.mxu2 }
 0x3eb   : > { %v2608_v26 = vadd.f32 %v2607_v24, %v7312_v9  ;;  %v2727_v5 = vpop.f32.mrf.mxu3 }
 0x3ed   : > { %v2783_v35 = vadd.f32 %v2727_v5, %v2608_v26 }
 0x3ee   : > { %v3011_v18 = vpop.f32.mrf.mxu0 }
 0x3ef   : > { %5272 = vmatmul.msk.f32.gmra.mxu2 %vm2188_vm3, %v7034_v44  ;;  %v7502_v4 = vadd.f32 %v3005_v39, %v2783_v35  ;;  %v7510_v1 = vpop.f32.mrf.mxu1  ;;  %v7521_v35 = vld [vmem:[#allocation3 + $0x6a] sm:$0xff] }
 0x3f0   : > { %5304 = vmatmul.msk.f32.gmra.mxu3 %vm2188_vm3, %v7462_v43  ;;  %5253 = vmatmul.msk.f32.gmra.mxu1 %vm2188_vm3, %v7248_v2 }
 0x3f1   : > { %8315 = vst [vmem:[#allocation13_spill] sm:$0xff] %v7502_v4  ;;  %5337 = vmatmul.msk.f32.gmra.mxu0 %vm2188_vm3, %v7506_v19 }
 0x3f2   : > { %v2610_v9 = vpop.f32.mrf.mxu2 }
 0x3f3   : > { %v2611_v24 = vadd.f32 %v2610_v9, %v7327_v33  ;;  %v2730_v26 = vpop.f32.mrf.mxu3 }
 0x3f5   : > { %v2784_v5 = vadd.f32 %v2730_v26, %v2611_v24 }
 0x3f6   : > { %v3014_v44 = vpop.f32.mrf.mxu0 }
 0x3f7   : > { %5273 = vmatmul.msk.f32.gmra.mxu2 %vm2188_vm3, %v7052_v63  ;;  %v7517_v39 = vadd.f32 %v3008_v7, %v2784_v5  ;;  %v7525_v9 = vpop.f32.mrf.mxu1  ;;  %v7536_v5 = vld [vmem:[#allocation3 + $0x7a] sm:$0xff] }
 0x3f8   : > { %5305 = vmatmul.msk.f32.gmra.mxu3 %vm2188_vm3, %v7476_v36  ;;  %5254 = vmatmul.msk.f32.gmra.mxu1 %vm2188_vm3, %v7263_v0 }
 0x3f9   : > { %8316 = vst [vmem:[#allocation14_spill] sm:$0xff] %v7517_v39  ;;  %5338 = vmatmul.msk.f32.gmra.mxu0 %vm2188_vm3, %v7521_v35 }
 0x3fa   : > { %v2613_v33 = vpop.f32.mrf.mxu2 }
 0x3fb   : > { %v2614_v24 = vadd.f32 %v2613_v33, %v7342_v62  ;;  %v2733_v26 = vpop.f32.mrf.mxu3 }
 0x3fd   : > { %v2785_v4 = vadd.f32 %v2733_v26, %v2614_v24 }
 0x3fe   : > { %v3017_v63 = vpop.f32.mrf.mxu0 }
 0x3ff   : > { %5274 = vmatmul.msk.f32.gmra.mxu2 %vm2188_vm3, %v7070_v23  ;;  %v7532_v7 = vadd.f32 %v3011_v18, %v2785_v4  ;;  %v7540_v33 = vpop.f32.mrf.mxu1  ;;  %v7551_v4 = vld [vmem:[#allocation3 + $0x82] sm:$0xff] }
 0x400   : > { %5306 = vmatmul.msk.f32.gmra.mxu3 %vm2188_vm3, %v7491_v27  ;;  %5255 = vmatmul.msk.f32.gmra.mxu1 %vm2188_vm3, %v7278_v49 }
 0x401   : > { %8317 = vst [vmem:[#allocation15_spill] sm:$0xff] %v7532_v7  ;;  %5339 = vmatmul.msk.f32.gmra.mxu0 %vm2188_vm3, %v7536_v5 }
 0x402   : > { %v2616_v62 = vpop.f32.mrf.mxu2 }
 0x403   : > { %v2617_v24 = vadd.f32 %v2616_v62, %v7357_v31  ;;  %v2736_v26 = vpop.f32.mrf.mxu3 }
 0x405   : > { %v2786_v39 = vadd.f32 %v2736_v26, %v2617_v24 }
 0x406   : > { %v3020_v23 = vpop.f32.mrf.mxu0 }
 0x407   : > { %5275 = vmatmul.msk.f32.gmra.mxu2 %vm2188_vm3, %v7088_v61  ;;  %v7547_v18 = vadd.f32 %v3014_v44, %v2786_v39  ;;  %v7555_v62 = vpop.f32.mrf.mxu1  ;;  %v7566_v39 = vld [vmem:[#allocation3 + $0x92] sm:$0xff] }
 0x408   : > { %5307 = vmatmul.msk.f32.gmra.mxu3 %vm2188_vm3, %v7506_v19  ;;  %5256 = vmatmul.msk.f32.gmra.mxu1 %vm2188_vm3, %v7293_v13 }
 0x409   : > { %8318 = vst [vmem:[#allocation16_spill] sm:$0xff] %v7547_v18  ;;  %5340 = vmatmul.msk.f32.gmra.mxu0 %vm2188_vm3, %v7551_v4 }
 0x40a   : > { %v2619_v31 = vpop.f32.mrf.mxu2 }
 0x40b   : > { %v2620_v24 = vadd.f32 %v2619_v31, %v7372_v56  ;;  %v2739_v26 = vpop.f32.mrf.mxu3 }
 0x40d   : > { %v2787_v7 = vadd.f32 %v2739_v26, %v2620_v24 }
 0x40e   : > { %v3023_v61 = vpop.f32.mrf.mxu0 }
 0x40f   : > { %5276 = vmatmul.msk.f32.gmra.mxu2 %vm2188_vm3, %v7111_v30  ;;  %v7562_v44 = vadd.f32 %v3017_v63, %v2787_v7  ;;  %v7570_v31 = vpop.f32.mrf.mxu1  ;;  %v7581_v7 = vld [vmem:[#allocation3 + $0x9a] sm:$0xff] }
 0x410   : > { %5308 = vmatmul.msk.f32.gmra.mxu3 %vm2188_vm3, %v7521_v35  ;;  %5257 = vmatmul.msk.f32.gmra.mxu1 %vm2188_vm3, %v7308_v41 }
 0x411   : > { %8319 = vst [vmem:[#allocation17_spill] sm:$0xff] %v7562_v44  ;;  %5341 = vmatmul.msk.f32.gmra.mxu0 %vm2188_vm3, %v7566_v39 }
 0x412   : > { %v2622_v56 = vpop.f32.mrf.mxu2 }
 0x413   : > { %v2623_v24 = vadd.f32 %v2622_v56, %v7387_v20  ;;  %v2742_v26 = vpop.f32.mrf.mxu3 }
 0x415   : > { %v2788_v18 = vadd.f32 %v2742_v26, %v2623_v24 }
 0x416   : > { %v3026_v30 = vpop.f32.mrf.mxu0 }
 0x417   : > { %5277 = vmatmul.msk.f32.gmra.mxu2 %vm2188_vm3, %v7129_v37  ;;  %v7577_v63 = vadd.f32 %v3020_v23, %v2788_v18  ;;  %v7585_v56 = vpop.f32.mrf.mxu1  ;;  %v7596_v18 = vld [vmem:[#allocation3 + $0xaa] sm:$0xff] }
 0x418   : > { %5309 = vmatmul.msk.f32.gmra.mxu3 %vm2188_vm3, %v7536_v5  ;;  %5258 = vmatmul.msk.f32.gmra.mxu1 %vm2188_vm3, %v7323_v29 }
 0x419   : > { %8320 = vst [vmem:[#allocation18_spill] sm:$0xff] %v7577_v63  ;;  %5342 = vmatmul.msk.f32.gmra.mxu0 %vm2188_vm3, %v7581_v7 }
 0x41a   : > { %v2625_v20 = vpop.f32.mrf.mxu2 }
 0x41b   : > { %v2626_v24 = vadd.f32 %v2625_v20, %v7402_v46  ;;  %v2745_v26 = vpop.f32.mrf.mxu3 }
 0x41d   : > { %v2789_v44 = vadd.f32 %v2745_v26, %v2626_v24 }
 0x41e   : > { %v3029_v37 = vpop.f32.mrf.mxu0 }
 0x41f   : > { %5278 = vmatmul.msk.f32.gmra.mxu2 %vm2188_vm3, %v7150_v14  ;;  %v7592_v23 = vadd.f32 %v3023_v61, %v2789_v44  ;;  %v7600_v20 = vpop.f32.mrf.mxu1  ;;  %v7611_v44 = vld [vmem:[#allocation3 + $0xb2] sm:$0xff] }
 0x420   : > { %5310 = vmatmul.msk.f32.gmra.mxu3 %vm2188_vm3, %v7551_v4  ;;  %5259 = vmatmul.msk.f32.gmra.mxu1 %vm2188_vm3, %v7338_v59 }
 0x421   : > { %8321 = vst [vmem:[#allocation19_spill] sm:$0xff] %v7592_v23  ;;  %5343 = vmatmul.msk.f32.gmra.mxu0 %vm2188_vm3, %v7596_v18 }
 0x422   : > { %v2628_v46 = vpop.f32.mrf.mxu2 }
 0x423   : > { %v2629_v24 = vadd.f32 %v2628_v46, %v7416_v51  ;;  %v2748_v26 = vpop.f32.mrf.mxu3 }
 0x425   : > { %v2790_v63 = vadd.f32 %v2748_v26, %v2629_v24 }
 0x426   : > { %v3032_v14 = vpop.f32.mrf.mxu0 }
 0x427   : > { %5279 = vmatmul.msk.f32.gmra.mxu2 %vm2188_vm3, %v7171_v47  ;;  %v7607_v61 = vadd.f32 %v3026_v30, %v2790_v63  ;;  %v7615_v46 = vpop.f32.mrf.mxu1  ;;  %v7626_v63 = vld [vmem:[#allocation3 + $0xc2] sm:$0xff] }
 0x428   : > { %5311 = vmatmul.msk.f32.gmra.mxu3 %vm2188_vm3, %v7566_v39  ;;  %5260 = vmatmul.msk.f32.gmra.mxu1 %vm2188_vm3, %v7353_v22 }
 0x429   : > { %8322 = vst [vmem:[#allocation20_spill] sm:$0xff] %v7607_v61  ;;  %5344 = vmatmul.msk.f32.gmra.mxu0 %vm2188_vm3, %v7611_v44 }
 0x42a   : > { %v2631_v51 = vpop.f32.mrf.mxu2 }
 0x42b   : > { %v2632_v24 = vadd.f32 %v2631_v51, %v7427_v15  ;;  %v2751_v26 = vpop.f32.mrf.mxu3 }
 0x42d   : > { %v2791_v23 = vadd.f32 %v2751_v26, %v2632_v24 }
 0x42e   : > { %v3035_v47 = vpop.f32.mrf.mxu0 }
 0x42f   : > { %5280 = vmatmul.msk.f32.gmra.mxu2 %vm2188_vm3, %v7195_v28  ;;  %v7622_v30 = vadd.f32 %v3029_v37, %v2791_v23  ;;  %v7630_v51 = vpop.f32.mrf.mxu1  ;;  %v7641_v23 = vld [vmem:[#allocation3 + $0xca] sm:$0xff] }
 0x430   : > { %5312 = vmatmul.msk.f32.gmra.mxu3 %vm2188_vm3, %v7581_v7  ;;  %5261 = vmatmul.msk.f32.gmra.mxu1 %vm2188_vm3, %v7368_v3 }
 0x431   : > { %8323 = vst [vmem:[#allocation21_spill] sm:$0xff] %v7622_v30  ;;  %5345 = vmatmul.msk.f32.gmra.mxu0 %vm2188_vm3, %v7626_v63 }
 0x432   : > { %v2634_v15 = vpop.f32.mrf.mxu2 }
 0x433   : > { %v2635_v24 = vadd.f32 %v2634_v15, %v7438_v17  ;;  %v2754_v26 = vpop.f32.mrf.mxu3 }
 0x435   : > { %v2792_v61 = vadd.f32 %v2754_v26, %v2635_v24 }
 0x436   : > { %v3038_v28 = vpop.f32.mrf.mxu0 }
 0x437   : > { %5281 = vmatmul.msk.f32.gmra.mxu2 %vm2188_vm3, %v7214_v48  ;;  %v7637_v37 = vadd.f32 %v3032_v14, %v2792_v61  ;;  %v7645_v15 = vpop.f32.mrf.mxu1  ;;  %v7656_v61 = vld [vmem:[#allocation3 + $0xda] sm:$0xff] }
 0x438   : > { %5313 = vmatmul.msk.f32.gmra.mxu3 %vm2188_vm3, %v7596_v18  ;;  %5262 = vmatmul.msk.f32.gmra.mxu1 %vm2188_vm3, %v7383_v54 }
 0x439   : > { %8324 = vst [vmem:[#allocation22_spill] sm:$0xff] %v7637_v37  ;;  %5346 = vmatmul.msk.f32.gmra.mxu0 %vm2188_vm3, %v7641_v23 }
 0x43a   : > { %v2637_v17 = vpop.f32.mrf.mxu2 }
 0x43b   : > { %v2638_v24 = vadd.f32 %v2637_v17, %v7452_v55  ;;  %v2757_v26 = vpop.f32.mrf.mxu3 }
 0x43d   : > { %v2793_v30 = vadd.f32 %v2757_v26, %v2638_v24 }
 0x43e   : > { %v3679_v14 = vpop.f32.mrf.mxu0 }
 0x43f   : > { %5282 = vmatmul.msk.f32.gmra.mxu2 %vm2188_vm3, %v7231_v58  ;;  %v7652_v48 = vadd.f32 %v3035_v47, %v2793_v30  ;;  %v7660_v17 = vpop.f32.mrf.mxu1  ;;  %v7671_v47 = vld [vmem:[#allocation3 + $0xe2] sm:$0xff]  ;;  %v3193_v30 = vadd.f32 %v7480_v34, %v7210_v11  ;;  %v7687_v11 = vld [vmem:[#allocation3 + $0xf2] sm:$0xff]  ;;  %v3194_v34 = vadd.f32 %v7495_v57, %v7227_v42  ;;  %v7705_v42 = vld [vmem:[#allocation3 + $0xfa] sm:$0xff]  ;;  %v3195_v57 = vadd.f32 %v7510_v1, %v7244_v25 }
 0x440   : > { %5314 = vmatmul.msk.f32.gmra.mxu3 %vm2188_vm3, %v7611_v44  ;;  %5263 = vmatmul.msk.f32.gmra.mxu1 %vm2188_vm3, %v7398_v38  ;;  %v7723_v25 = vld [vmem:[#allocation3 + $0x10a] sm:$0xff]  ;;  %v3196_v1 = vadd.f32 %v7525_v9, %v7259_v6  ;;  %v7739_v6 = vld [vmem:[#allocation3 + $0x112] sm:$0xff]  ;;  %v3197_v9 = vadd.f32 %v7540_v33, %v7274_v50  ;;  %v7755_v50 = vld [vmem:[#allocation3 + $0x122] sm:$0xff]  ;;  %v3198_v33 = vadd.f32 %v7555_v62, %v7289_v8 }
 0x441   : > { %8325 = vst [vmem:[#allocation23_spill] sm:$0xff] %v7652_v48  ;;  %5347 = vmatmul.msk.f32.gmra.mxu0 %vm2188_vm3, %v7656_v61  ;;  %v7771_v8 = vld [vmem:[#allocation3 + $0x12a] sm:$0xff]  ;;  %v3199_v62 = vadd.f32 %v7570_v31, %v7304_v60  ;;  %v7787_v60 = vld [vmem:[#allocation3 + $0x13a] sm:$0xff]  ;;  %v3200_v31 = vadd.f32 %v7585_v56, %v7319_v45  ;;  %v7803_v45 = vld [vmem:[#allocation3 + $0x142] sm:$0xff] }
 0x442   : > { %v2640_v55 = vpop.f32.mrf.mxu2 }
 0x443   : > { %v2641_v24 = vadd.f32 %v2640_v55, %v7466_v52  ;;  %v2760_v26 = vpop.f32.mrf.mxu3 }
 0x445   : > { %v2794_v37 = vadd.f32 %v2760_v26, %v2641_v24 }
 0x446   : > { %v3682_v55 = vpop.f32.mrf.mxu0 }
 0x447   : > { %5283 = vmatmul.msk.f32.gmra.mxu2 %vm2188_vm3, %v7248_v2  ;;  %v7667_v58 = vadd.f32 %v3038_v28, %v2794_v37  ;;  %v7677_v24 = vpop.f32.mrf.mxu1 }
 0x448   : > { %5315 = vmatmul.msk.f32.gmra.mxu3 %vm2188_vm3, %v7626_v63  ;;  %5264 = vmatmul.msk.f32.gmra.mxu1 %vm2188_vm3, %v7412_v16 }
 0x449   : > { %8326 = vst [vmem:[#allocation24_spill] sm:$0xff] %v7667_v58  ;;  %5348 = vmatmul.msk.f32.gmra.mxu0 %vm2188_vm3, %v7671_v47  ;;  %v7713_v58 = vld [vmem:[#allocation3 + $0x189] sm:$0xff] }
 0x44a   : > { %v3249_v52 = vpop.f32.mrf.mxu2 }
 0x44b   : > { %v3345_v26 = vadd.f32 %v3249_v52, %v3193_v30  ;;  %v3527_v48 = vpop.f32.mrf.mxu3 }
 0x44d   : > { %v3623_v2 = vadd.f32 %v3527_v48, %v3345_v26 }
 0x44e   : > { %v3685_v26 = vpop.f32.mrf.mxu0 }
 0x44f   : > { %5284 = vmatmul.msk.f32.gmra.mxu2 %vm2188_vm3, %v7263_v0  ;;  %v7683_v28 = vadd.f32 %v3679_v14, %v3623_v2  ;;  %v7693_v48 = vpop.f32.mrf.mxu1  ;;  %v7695_v0 = vld [vmem:[#allocation3 + $0x181] sm:$0xff] }
 0x450   : > { %5316 = vmatmul.msk.f32.gmra.mxu3 %vm2188_vm3, %v7641_v23  ;;  %5265 = vmatmul.msk.f32.gmra.mxu1 %vm2188_vm3, %v7695_v0 }
 0x451   : > { %5349 = vmatmul.msk.f32.gmra.mxu0 %vm2188_vm3, %v7687_v11 }
 0x452   : > { %v3252_v37 = vpop.f32.mrf.mxu2 }
 0x453   : > { %v3346_v30 = vadd.f32 %v3252_v37, %v3194_v34  ;;  %v3530_v52 = vpop.f32.mrf.mxu3 }
 0x455   : > { %v3624_v14 = vadd.f32 %v3530_v52, %v3346_v30 }
 0x457   : > { %5285 = vmatmul.msk.f32.gmra.mxu2 %vm2188_vm3, %v7278_v49  ;;  %v7701_v2 = vadd.f32 %v3682_v55, %v3624_v14  ;;  %v7711_v37 = vpop.f32.mrf.mxu1  ;;  %v3688_v55 = vpop.f32.mrf.mxu0 }
 0x458   : > { %5317 = vmatmul.msk.f32.gmra.mxu3 %vm2188_vm3, %v7656_v61  ;;  %5266 = vmatmul.msk.f32.gmra.mxu1 %vm2188_vm3, %v7713_v58 }
 0x459   : > { %5350 = vmatmul.msk.f32.gmra.mxu0 %vm2188_vm3, %v7705_v42 }
 0x45a   : > { %v3255_v34 = vpop.f32.mrf.mxu2 }
 0x45b   : > { %v3347_v30 = vadd.f32 %v3255_v34, %v3195_v57  ;;  %v3533_v52 = vpop.f32.mrf.mxu3 }
 0x45d   : > { %v3625_v49 = vadd.f32 %v3533_v52, %v3347_v30 }
 0x45f   : > { %5286 = vmatmul.msk.f32.gmra.mxu2 %vm2188_vm3, %v7293_v13  ;;  %v7719_v14 = vadd.f32 %v3685_v26, %v3625_v49  ;;  %v7729_v34 = vpop.f32.mrf.mxu1  ;;  %v3691_v26 = vpop.f32.mrf.mxu0 }
 0x460   : > { %5318 = vmatmul.msk.f32.gmra.mxu3 %vm2188_vm3, %v7671_v47  ;;  %5363 = vmatmul.msk.f32.vlgmr.msra.gmra.mxu1 %vm2188_vm3, %v7448_v21 }
 0x461   : > { %5351 = vmatmul.msk.f32.gmra.mxu0 %vm2188_vm3, %v7723_v25 }
 0x462   : > { %v3258_v57 = vpop.f32.mrf.mxu2 }
 0x463   : > { %v3348_v30 = vadd.f32 %v3258_v57, %v3196_v1  ;;  %v3536_v52 = vpop.f32.mrf.mxu3 }
 0x465   : > { %v3626_v53 = vadd.f32 %v3536_v52, %v3348_v30 }
 0x467   : > { %5287 = vmatmul.msk.f32.gmra.mxu2 %vm2188_vm3, %v7308_v41  ;;  %v7735_v13 = vadd.f32 %v3688_v55, %v3626_v53  ;;  %v7745_v1 = vpop.f32.mrf.mxu1  ;;  %v3694_v55 = vpop.f32.mrf.mxu0 }
 0x468   : > { %5319 = vmatmul.msk.f32.gmra.mxu3 %vm2188_vm3, %v7687_v11  ;;  %8327 = vst [vmem:[#allocation25_spill] sm:$0xff] %v7745_v1  ;;  %5364 = vmatmul.msk.f32.gmra.mxu1 %vm2188_vm3, %v7462_v43 }
 0x469   : > { %5352 = vmatmul.msk.f32.gmra.mxu0 %vm2188_vm3, %v7739_v6 }
 0x46a   : > { %v3261_v49 = vpop.f32.mrf.mxu2 }
 0x46b   : > { %v3349_v21 = vadd.f32 %v3261_v49, %v3197_v9  ;;  %v3539_v57 = vpop.f32.mrf.mxu3 }
 0x46d   : > { %v3627_v41 = vadd.f32 %v3539_v57, %v3349_v21 }
 0x46f   : > { %5288 = vmatmul.msk.f32.gmra.mxu2 %vm2188_vm3, %v7323_v29  ;;  %v7751_v53 = vadd.f32 %v3691_v26, %v3627_v41  ;;  %v7761_v52 = vpop.f32.mrf.mxu1  ;;  %v3697_v41 = vpop.f32.mrf.mxu0 }
 0x470   : > { %5320 = vmatmul.msk.f32.gmra.mxu3 %vm2188_vm3, %v7705_v42  ;;  %8328 = vst [vmem:[#allocation26_spill] sm:$0xff] %v7761_v52  ;;  %5365 = vmatmul.msk.f32.gmra.mxu1 %vm2188_vm3, %v7476_v36 }
 0x471   : > { %5353 = vmatmul.msk.f32.gmra.mxu0 %vm2188_vm3, %v7755_v50 }
 0x472   : > { %v3264_v30 = vpop.f32.mrf.mxu2 }
 0x473   : > { %v3350_v43 = vadd.f32 %v3264_v30, %v3198_v33  ;;  %v3542_v9 = vpop.f32.mrf.mxu3 }
 0x475   : > { %v3628_v29 = vadd.f32 %v3542_v9, %v3350_v43 }
 0x477   : > { %5289 = vmatmul.msk.f32.gmra.mxu2 %vm2188_vm3, %v7338_v59  ;;  %v7767_v26 = vadd.f32 %v3694_v55, %v3628_v29  ;;  %v7777_v21 = vpop.f32.mrf.mxu1 }
 0x478   : > { %5321 = vmatmul.msk.f32.gmra.mxu3 %vm2188_vm3, %v7723_v25  ;;  %8329 = vst [vmem:[#allocation27_spill] sm:$0xff] %v7777_v21  ;;  %5366 = vmatmul.msk.f32.gmra.mxu1 %vm2188_vm3, %v7491_v27 }
 0x479   : > { %5354 = vmatmul.msk.f32.gmra.mxu0 %vm2188_vm3, %v7771_v8 }
 0x47a   : > { %v3267_v49 = vpop.f32.mrf.mxu2 }
 0x47b   : > { %v3351_v36 = vadd.f32 %v3267_v49, %v3199_v62  ;;  %v3545_v57 = vpop.f32.mrf.mxu3  ;;  %v2829_v62 = vld [vmem:[#allocation3 + $0x199] sm:$0xff]  ;;  %v2830_v49 = vld [vmem:[#allocation3 + $0x1a1] sm:$0xff] }
 0x47d   : > { %v3629_v59 = vadd.f32 %v3545_v57, %v3351_v36 }
 0x47f   : > { %5290 = vmatmul.msk.f32.gmra.mxu2 %vm2188_vm3, %v7353_v22  ;;  %v7783_v33 = vadd.f32 %v3697_v41, %v3629_v59  ;;  %v7793_v30 = vpop.f32.mrf.mxu1  ;;  %v3700_v22 = vpop.f32.mrf.mxu0 }
 0x480   : > { %5322 = vmatmul.msk.f32.gmra.mxu3 %vm2188_vm3, %v7739_v6  ;;  %8330 = vst [vmem:[#allocation28_spill] sm:$0xff] %v7793_v30  ;;  %5367 = vmatmul.msk.f32.gmra.mxu1 %vm2188_vm3, %v7506_v19 }
 0x481   : > { %5355 = vmatmul.msk.f32.gmra.mxu0 %vm2188_vm3, %v7787_v60 }
 0x482   : > { %v3270_v55 = vpop.f32.mrf.mxu2 }
 0x483   : > { %v3352_v27 = vadd.f32 %v3270_v55, %v3200_v31  ;;  %v3548_v43 = vpop.f32.mrf.mxu3 }
 0x485   : > { %v3630_v9 = vadd.f32 %v3548_v43, %v3352_v27 }
 0x487   : > { %5291 = vmatmul.msk.f32.gmra.mxu2 %vm2188_vm3, %v7368_v3  ;;  %v7799_v29 = vadd.f32 %v3700_v22, %v3630_v9  ;;  %v7807_v56 = vpop.f32.mrf.mxu1  ;;  %v7815_v3 = vld [vmem:[#allocation3 + $0x152] sm:$0xff] }
 0x488   : > { %5323 = vmatmul.msk.f32.gmra.mxu3 %vm2188_vm3, %v7755_v50  ;;  %8331 = vst [vmem:[#allocation29_spill] sm:$0xff] %v7807_v56  ;;  %5368 = vmatmul.msk.f32.gmra.mxu1 %vm2188_vm3, %v7521_v35 }
 0x489   : > { %5356 = vmatmul.msk.f32.gmra.mxu0 %vm2188_vm3, %v7803_v45 }
 0x48f   : > { %5292 = vmatmul.msk.f32.gmra.mxu2 %vm2188_vm3, %v7383_v54  ;;  %v7819_v19 = vpop.f32.mrf.mxu1  ;;  %v7827_v54 = vld [vmem:[#allocation3 + $0x15a] sm:$0xff] }
 0x490   : > { %5324 = vmatmul.msk.f32.gmra.mxu3 %vm2188_vm3, %v7771_v8  ;;  %8332 = vst [vmem:[#allocation30_spill] sm:$0xff] %v7819_v19  ;;  %5369 = vmatmul.msk.f32.gmra.mxu1 %vm2188_vm3, %v7536_v5 }
 0x491   : > { %5357 = vmatmul.msk.f32.gmra.mxu0 %vm2188_vm3, %v7815_v3 }
 0x497   : > { %5293 = vmatmul.msk.f32.gmra.mxu2 %vm2188_vm3, %v7398_v38  ;;  %v7831_v35 = vpop.f32.mrf.mxu1  ;;  %v7839_v38 = vld [vmem:[#allocation3 + $0x16a] sm:$0xff] }
 0x498   : > { %5325 = vmatmul.msk.f32.gmra.mxu3 %vm2188_vm3, %v7787_v60  ;;  %8333 = vst [vmem:[#allocation31_spill] sm:$0xff] %v7831_v35  ;;  %5370 = vmatmul.msk.f32.gmra.mxu1 %vm2188_vm3, %v7551_v4 }
 0x499   : > { %5358 = vmatmul.msk.f32.gmra.mxu0 %vm2188_vm3, %v7827_v54 }
 0x49f   : > { %5294 = vmatmul.msk.f32.gmra.mxu2 %vm2188_vm3, %v7412_v16  ;;  %v7843_v5 = vpop.f32.mrf.mxu1  ;;  %v7851_v16 = vld [vmem:[#allocation3 + $0x172] sm:$0xff] }
 0x4a0   : > { %5326 = vmatmul.msk.f32.gmra.mxu3 %vm2188_vm3, %v7803_v45  ;;  %8334 = vst [vmem:[#allocation32_spill] sm:$0xff] %v7843_v5  ;;  %5371 = vmatmul.msk.f32.gmra.mxu1 %vm2188_vm3, %v7566_v39  ;;  %v7863_v39 = vld [vmem:[#allocation3 + $0x182] sm:$0xff] }
 0x4a1   : > { %5359 = vmatmul.msk.f32.gmra.mxu0 %vm2188_vm3, %v7839_v38 }
 0x4a7   : > { %5295 = vmatmul.msk.f32.gmra.mxu2 %vm2188_vm3, %v7695_v0  ;;  %v7855_v4 = vpop.f32.mrf.mxu1 }
 0x4a8   : > { %5327 = vmatmul.msk.f32.gmra.mxu3 %vm2188_vm3, %v7815_v3  ;;  %8335 = vst [vmem:[#allocation33_spill] sm:$0xff] %v7855_v4  ;;  %5372 = vmatmul.msk.f32.gmra.mxu1 %vm2188_vm3, %v7581_v7  ;;  %v7874_v7 = vld [vmem:[#allocation3 + $0x18a] sm:$0xff] }
 0x4a9   : > { %5360 = vmatmul.msk.f32.gmra.mxu0 %vm2188_vm3, %v7851_v16 }
 0x4af   : > { %5296 = vmatmul.msk.f32.gmra.mxu2 %vm2188_vm3, %v7713_v58  ;;  %v7867_v0 = vpop.f32.mrf.mxu1 }
 0x4b0   : > { %5328 = vmatmul.msk.f32.gmra.mxu3 %vm2188_vm3, %v7827_v54  ;;  %8336 = vst [vmem:[#allocation34_spill] sm:$0xff] %v7867_v0  ;;  %5373 = vmatmul.msk.f32.gmra.mxu1 %vm2188_vm3, %v7596_v18 }
 0x4b1   : > { %5361 = vmatmul.msk.f32.gmra.mxu0 %vm2188_vm3, %v7863_v39 }
 0x4b7   : > { %5297 = vmatmul.msk.f32.gmra.mxu2 %vm2188_vm3, %v2829_v62  ;;  %v7878_v58 = vpop.f32.mrf.mxu1 }
 0x4b8   : > { %5329 = vmatmul.msk.f32.gmra.mxu3 %vm2188_vm3, %v7839_v38  ;;  %8337 = vst [vmem:[#allocation35_spill] sm:$0xff] %v7878_v58  ;;  %5374 = vmatmul.msk.f32.gmra.mxu1 %vm2188_vm3, %v7611_v44 }
 0x4b9   : > { %5362 = vmatmul.msk.f32.gmra.mxu0 %vm2188_vm3, %v7874_v7 }
 0x4bf   : > { %5298 = vmatmul.msk.f32.gmra.mxu2 %vm2188_vm3, %v2830_v49  ;;  %v7885_v18 = vpop.f32.mrf.mxu1 }
 0x4c0   : > { %5330 = vmatmul.msk.f32.gmra.mxu3 %vm2188_vm3, %v7851_v16  ;;  %8338 = vst [vmem:[#allocation36_spill] sm:$0xff] %v7885_v18  ;;  %5375 = vmatmul.msk.f32.gmra.mxu1 %vm2188_vm3, %v7626_v63  ;;  %v7903_v63 = vpop.f32.mrf.mxu2 }
 0x4c7   : > { %v7889_v36 = vpop.f32.mrf.mxu1 }
 0x4c8   : > { %8339 = vst [vmem:[#allocation37_spill] sm:$0xff] %v7889_v36  ;;  %5376 = vmatmul.msk.f32.gmra.mxu1 %vm2188_vm3, %v7641_v23  ;;  %v7909_v23 = vld [vmem:[%s8267_s4] ss:$0 sm:$0xff] }
 0x4cf   : > { %v7893_v57 = vpop.f32.mrf.mxu1 }
 0x4d0   : > { %8340 = vst [vmem:[#allocation38_spill] sm:$0xff] %v7893_v57  ;;  %5377 = vmatmul.msk.f32.gmra.mxu1 %vm2188_vm3, %v7656_v61  ;;  %v7913_v61 = vpop.f32.mrf.mxu3 }
 0x4d7   : > { %v7897_v44 = vpop.f32.mrf.mxu1 }
 0x4d8   : > { %8341 = vst [vmem:[#allocation39_spill] sm:$0xff] %v7897_v44  ;;  %5378 = vmatmul.msk.f32.gmra.mxu1 %vm2188_vm3, %v7671_v47  ;;  %v7915_v47 = vpop.f32.mrf.mxu0  ;;  %v7925_v62 = vpop.f32.mrf.mxu3 }
 0x4df   : > { %v3831_v41 = vpop.f32.mrf.mxu1 }
 0x4e0   : > { %5379 = vmatmul.msk.f32.gmra.mxu1 %vm2188_vm3, %v7687_v11  ;;  %v3927_v31 = vadd.f32 %v3831_v41, %v7683_v28  ;;  %v7918_v11 = vpop.f32.mrf.mxu2  ;;  %v7936_v4 = vpop.f32.mrf.mxu3 }
 0x4e2   : > { %v3963_v55 = vadd.f32 %v7909_v23, %v3927_v31 }
 0x4e4   : > { %v4027_v28 = vmul.f32 0.2, %v3963_v55  ;;  %vm3995_vm7 = vcmp.gt.f32.partialorder %v3963_v55, 0.0 }
 0x4e6   : > { %v4059_v49 = vsel %vm3995_vm7, %v3963_v55, %v4027_v28 }
 0x4e7   : > { %v3834_v59 = vpop.f32.mrf.mxu1 }
 0x4e8   : > { %5380 = vmatmul.msk.f32.gmra.mxu1 %vm2188_vm3, %v7705_v42  ;;  %v3928_v9 = vadd.f32 %v3834_v59, %v7701_v2  ;;  %v7931_v59 = vpop.f32.mrf.mxu2 }
 0x4ea   : > { %v3964_v41 = vadd.f32 %v7909_v23, %v3928_v9 }
 0x4ec   : > { %v4028_v18 = vmul.f32 0.2, %v3964_v41  ;;  %vm3996_vm9 = vcmp.gt.f32.partialorder %v3964_v41, 0.0 }
 0x4ee   : > { %v4060_v0 = vsel %vm3996_vm9, %v3964_v41, %v4028_v18 }
 0x4ef   : > { %v3837_v27 = vpop.f32.mrf.mxu1 }
 0x4f0   : > { %v3929_v43 = vadd.f32 %v3837_v27, %v7719_v14  ;;  %5381 = vmatmul.msk.f32.gmra.mxu1 %vm2188_vm3, %v7723_v25  ;;  %v7928_v14 = vpop.f32.mrf.mxu0 }
 0x4f2   : > { %v3965_v22 = vadd.f32 %v7909_v23, %v3929_v43 }
 0x4f4   : > { %vm3997_vm8 = vcmp.gt.f32.partialorder %v3965_v22, 0.0  ;;  %v4029_v42 = vmul.f32 0.2, %v3965_v22 }
 0x4f6   : > { %v4061_v31 = vsel %vm3997_vm8, %v3965_v22, %v4029_v42 }
 0x4f7   : > { %v4091_v44 = vadd.f32 %v4061_v31, %v4059_v49  ;;  %v3840_v36 = vpop.f32.mrf.mxu1 }
 0x4f8   : > { %v3930_v2 = vadd.f32 %v3840_v36, %v7735_v13  ;;  %5382 = vmatmul.msk.f32.gmra.mxu1 %vm2188_vm3, %v7739_v6  ;;  %v7938_v21 = vpop.f32.mrf.mxu0 }
 0x4f9   : > { %v4123_v27 = vrot.slane %v4091_v44, 2  ;;  %v4124_v43 = vrot.slane %v4091_v44, 4  ;;  %v4125_v25 = vrot.slane %v4091_v44, 6  ;;  %v5395_v57 = vrot.slane %v4091_v44, 9 }
 0x4fa   : > { %v3966_v58 = vadd.f32 %v7909_v23, %v3930_v2 }
 0x4fb   : > { %v5396_v55 = vrot.slane %v4123_v27, 9  ;;  %v5397_v28 = vrot.slane %v4124_v43, 9  ;;  %v5398_v9 = vrot.slane %v4125_v25, 9  ;;  %v4411_v22 = vadd.f32 %v5395_v57, %v4091_v44 }
 0x4fc   : > { %vm3998_vm10 = vcmp.gt.f32.partialorder %v3966_v58, 0.0  ;;  %v4030_v42 = vmul.f32 0.2, %v3966_v58 }
 0x4fd   : > { %v4412_v13 = vadd.f32 %v5396_v55, %v4123_v27  ;;  %v4413_v36 = vadd.f32 %v5397_v28, %v4124_v43  ;;  %v4475_v49 = vmul.f32 0.25, %v4411_v22  ;;  %v4414_v5 = vadd.f32 %v5398_v9, %v4125_v25 }
 0x4fe   : > { %v4062_v31 = vsel %vm3998_vm10, %v3966_v58, %v4030_v42  ;;  %v7942_v58 = vpop.f32.mrf.mxu2 }
 0x4ff   : > { %v4476_v35 = vmul.f32 0.25, %v4412_v13  ;;  %v4477_v2 = vmul.f32 0.25, %v4413_v36  ;;  %v3843_v56 = vpop.f32.mrf.mxu1  ;;  %v4092_v19 = vadd.f32 %v4062_v31, %v4060_v0  ;;  %v4603_v6 = vperm.slane %v4475_v49, 0 }
 0x500   : > { %5383 = vmatmul.msk.f32.gmra.mxu1 %vm2188_vm3, %v7755_v50  ;;  %v4478_v18 = vmul.f32 0.25, %v4414_v5 }
 0x501   : > { %v4604_v30 = vperm.slane %v4476_v35, 0  ;;  %v4126_v57 = vrot.slane %v4092_v19, 2  ;;  %v4127_v44 = vrot.slane %v4092_v19, 4  ;;  %v4128_v1 = vrot.slane %v4092_v19, 6 }
 0x502   : > { %v5399_v27 = vrot.slane %v4092_v19, 9  ;;  %v4605_v41 = vperm.slane %v4477_v2, 0  ;;  %v4606_v36 = vperm.slane %v4478_v18, 0  ;;  %v7946_v2 = vpop.f32.mrf.mxu3 }
 0x503   : > { %v4668_v43 = vsel %vm4667_vm11, %v4604_v30, %v4603_v6  ;;  %v5400_v0 = vrot.slane %v4126_v57, 9  ;;  %v5401_v25 = vrot.slane %v4127_v44, 9  ;;  %v5402_v35 = vrot.slane %v4128_v1, 9 }
 0x504   : > { %v4415_v55 = vadd.f32 %v5399_v27, %v4092_v19  ;;  %v4670_v42 = vsel %vm4669_vm12, %v4605_v41, %v4668_v43  ;;  %v7954_v27 = vpop.f32.mrf.mxu0 }
 0x505   : > { %v4416_v28 = vadd.f32 %v5400_v0, %v4126_v57  ;;  %v4417_v9 = vadd.f32 %v5401_v25, %v4127_v44  ;;  %v4418_v22 = vadd.f32 %v5402_v35, %v4128_v1  ;;  %v4672_v19 = vsel %vm4671_vm13, %v4606_v36, %v4670_v42 }
 0x506   : > { %v4479_v13 = vmul.f32 0.25, %v4415_v55  ;;  %v3931_v57 = vadd.f32 %v3843_v56, %v7751_v53  ;;  %v7962_v43 = vpop.f32.mrf.mxu2 }
 0x507   : > { %v3846_v50 = vpop.f32.mrf.mxu1  ;;  %v4480_v5 = vmul.f32 0.25, %v4416_v28  ;;  %v4481_v49 = vmul.f32 0.25, %v4417_v9  ;;  %v4482_v31 = vmul.f32 0.25, %v4418_v22 }
 0x508   : > { %v4607_v30 = vperm.slane %v4479_v13, 0  ;;  %5384 = vmatmul.msk.f32.gmra.mxu1 %vm2188_vm3, %v7771_v8  ;;  %v3967_v56 = vadd.f32 %v7909_v23, %v3931_v57  ;;  %v3932_v55 = vadd.f32 %v3846_v50, %v7767_v26 }
 0x509   : > { %v4608_v6 = vperm.slane %v4480_v5, 0  ;;  %v4609_v1 = vperm.slane %v4481_v49, 0  ;;  %v4610_v18 = vperm.slane %v4482_v31, 0 }
 0x50a   : > { %v4674_v44 = vsel %vm4673_vm14, %v4607_v30, %v4672_v19  ;;  %v4031_v35 = vmul.f32 0.2, %v3967_v56  ;;  %v7974_v9 = vpop.f32.mrf.mxu3  ;;  %vm3999_vm4 = vcmp.gt.f32.partialorder %v3967_v56, 0.0  ;;  %v3968_v36 = vadd.f32 %v7909_v23, %v3932_v55 }
 0x50b   : > { %v4676_v41 = vsel %vm4675_vm15, %v4608_v6, %v4674_v44 }
 0x50c   : > { %v4678_v53 = vsel %vm4677_vm0, %v4609_v1, %v4676_v41  ;;  %v7976_v42 = vpop.f32.mrf.mxu0  ;;  %v4063_v13 = vsel %vm3999_vm4, %v3967_v56, %v4031_v35  ;;  %v4032_v6 = vmul.f32 0.2, %v3968_v36  ;;  %vm4000_vm1 = vcmp.gt.f32.partialorder %v3968_v36, 0.0 }
 0x50d   : > { %v4680_v8 = vsel %vm4679_vm2, %v4610_v18, %v4678_v53  ;;  %v8342_v53 = vld [vmem:[#allocation4_spill] sm:$0xff] }
 0x50e   : > { %4738 = vst.msk [vmem:[%s7959_s19] sm:$0xff] %vm2188_vm3, %v4680_v8  ;;  %v3201_v8 = vadd.f32 %v7600_v20, %v8342_v53 }
 0x50f   : > { %v3849_v0 = vpop.f32.mrf.mxu1 }
 0x510   : > { %v3933_v25 = vadd.f32 %v3849_v0, %v7783_v33  ;;  %5385 = vmatmul.msk.f32.gmra.mxu1 %vm2188_vm3, %v7787_v60  ;;  %v7979_v33 = vpop.f32.mrf.mxu2  ;;  %v3353_v55 = vadd.f32 %v7903_v63, %v3201_v8  ;;  %v8343_v63 = vld [vmem:[#allocation6_spill] sm:$0xff]  ;;  %v8344_v8 = vld [vmem:[#allocation5_spill] sm:$0xff] }
 0x512   : > { %v3969_v28 = vadd.f32 %v7909_v23, %v3933_v25  ;;  %v7987_v56 = vpop.f32.mrf.mxu3 }
 0x514   : > { %vm4001_vm5 = vcmp.gt.f32.partialorder %v3969_v28, 0.0  ;;  %v4033_v22 = vmul.f32 0.2, %v3969_v28 }
 0x516   : > { %v4065_v5 = vsel %vm4001_vm5, %v3969_v28, %v4033_v22  ;;  %v4064_v22 = vsel %vm4000_vm1, %v3968_v36, %v4032_v6  ;;  %v3203_v36 = vadd.f32 %v7630_v51, %v8343_v63 }
 0x517   : > { %v4093_v49 = vadd.f32 %v4065_v5, %v4063_v13  ;;  %v3852_v26 = vpop.f32.mrf.mxu1 }
 0x518   : > { %v3934_v50 = vadd.f32 %v3852_v26, %v7799_v29  ;;  %5386 = vmatmul.msk.f32.gmra.mxu1 %vm2188_vm3, %v7803_v45  ;;  %v7992_v20 = vpop.f32.mrf.mxu2 }
 0x519   : > { %v4129_v31 = vrot.slane %v4093_v49, 2  ;;  %v4130_v30 = vrot.slane %v4093_v49, 4  ;;  %v4131_v60 = vrot.slane %v4093_v49, 6  ;;  %v5403_v19 = vrot.slane %v4093_v49, 9 }
 0x51a   : > { %v3970_v1 = vadd.f32 %v7909_v23, %v3934_v50 }
 0x51b   : > { %v5404_v57 = vrot.slane %v4129_v31, 9  ;;  %v5405_v44 = vrot.slane %v4130_v30, 9  ;;  %v5406_v18 = vrot.slane %v4131_v60, 9  ;;  %v4419_v41 = vadd.f32 %v5403_v19, %v4093_v49  ;;  %v7990_v49 = vpop.f32.mrf.mxu0 }
 0x51c   : > { %vm4002_vm6 = vcmp.gt.f32.partialorder %v3970_v1, 0.0  ;;  %v4034_v29 = vmul.f32 0.2, %v3970_v1 }
 0x51d   : > { %v4420_v0 = vadd.f32 %v5404_v57, %v4129_v31  ;;  %v4421_v25 = vadd.f32 %v5405_v44, %v4130_v30  ;;  %v4483_v35 = vmul.f32 0.25, %v4419_v41  ;;  %v4422_v45 = vadd.f32 %v5406_v18, %v4131_v60 }
 0x51e   : > { %v4066_v28 = vsel %vm4002_vm6, %v3970_v1, %v4034_v29  ;;  %v3631_v60 = vadd.f32 %v7913_v61, %v3353_v55  ;;  %v3202_v29 = vadd.f32 %v7615_v46, %v8344_v8 }
 0x51f   : > { %v4484_v13 = vmul.f32 0.25, %v4420_v0  ;;  %v4485_v5 = vmul.f32 0.25, %v4421_v25  ;;  %v3855_v26 = vpop.f32.mrf.mxu1  ;;  %v4094_v50 = vadd.f32 %v4066_v28, %v4064_v22  ;;  %v4611_v19 = vperm.slane %v4483_v35, 0  ;;  %v8004_v22 = vpop.f32.mrf.mxu3 }
 0x520   : > { %5387 = vmatmul.msk.f32.gmra.mxu1 %vm2188_vm3, %v7815_v3  ;;  %v4486_v6 = vmul.f32 0.25, %v4422_v45  ;;  %v3355_v0 = vadd.f32 %v7931_v59, %v3203_v36  ;;  %v3354_v51 = vadd.f32 %v7918_v11, %v3202_v29  ;;  %v3783_v45 = vadd.f32 %v7915_v47, %v3631_v60  ;;  %v8014_v47 = vpop.f32.mrf.mxu2  ;;  %v8345_v36 = vld [vmem:[#allocation7_spill] sm:$0xff] }
 0x521   : > { %v4612_v53 = vperm.slane %v4484_v13, 0  ;;  %v4132_v40 = vrot.slane %v4094_v50, 2  ;;  %v4133_v52 = vrot.slane %v4094_v50, 4  ;;  %v4134_v31 = vrot.slane %v4094_v50, 6 }
 0x522   : > { %v5407_v30 = vrot.slane %v4094_v50, 9  ;;  %v4613_v1 = vperm.slane %v4485_v5, 0  ;;  %v4614_v5 = vperm.slane %v4486_v6, 0  ;;  %v3633_v59 = vadd.f32 %v7936_v4, %v3355_v0 }
 0x523   : > { %v4681_v57 = vsel %vm4667_vm11, %v4612_v53, %v4611_v19  ;;  %v5408_v44 = vrot.slane %v4132_v40, 9  ;;  %v5409_v18 = vrot.slane %v4133_v52, 9  ;;  %v5410_v41 = vrot.slane %v4134_v31, 9 }
 0x524   : > { %v4423_v25 = vadd.f32 %v5407_v30, %v4094_v50  ;;  %v4682_v61 = vsel %vm4669_vm12, %v4613_v1, %v4681_v57  ;;  %v3935_v30 = vadd.f32 %v3855_v26, %v3783_v45  ;;  %v3204_v60 = vadd.f32 %v7645_v15, %v8345_v36 }
 0x525   : > { %v4424_v35 = vadd.f32 %v5408_v44, %v4132_v40  ;;  %v4425_v3 = vadd.f32 %v5409_v18, %v4133_v52  ;;  %v4426_v28 = vadd.f32 %v5410_v41, %v4134_v31  ;;  %v8009_v40 = vpop.f32.mrf.mxu0  ;;  %v4683_v52 = vsel %vm4671_vm13, %v4614_v5, %v4682_v61 }
 0x526   : > { %v4487_v55 = vmul.f32 0.25, %v4423_v25  ;;  %v3632_v4 = vadd.f32 %v7925_v62, %v3354_v51  ;;  %v3356_v44 = vadd.f32 %v7942_v58, %v3204_v60  ;;  %v3785_v18 = vadd.f32 %v7938_v21, %v3633_v59 }
 0x527   : > { %v3858_v13 = vpop.f32.mrf.mxu1  ;;  %v4488_v19 = vmul.f32 0.25, %v4424_v35  ;;  %v4489_v53 = vmul.f32 0.25, %v4425_v3  ;;  %v4490_v46 = vmul.f32 0.25, %v4426_v28  ;;  %v8029_v62 = vpop.f32.mrf.mxu3 }
 0x528   : > { %v4615_v50 = vperm.slane %v4487_v55, 0  ;;  %5388 = vmatmul.msk.f32.gmra.mxu1 %vm2188_vm3, %v7827_v54  ;;  %v3971_v54 = vadd.f32 %v7909_v23, %v3935_v30  ;;  %v3784_v15 = vadd.f32 %v7928_v14, %v3632_v4  ;;  %v3634_v29 = vadd.f32 %v7946_v2, %v3356_v44  ;;  %v8037_v3 = vpop.f32.mrf.mxu2 }
 0x529   : > { %v4616_v11 = vperm.slane %v4488_v19, 0  ;;  %v4617_v31 = vperm.slane %v4489_v53, 0  ;;  %v4618_v6 = vperm.slane %v4490_v46, 0 }
 0x52a   : > { %v4684_v63 = vsel %vm4673_vm14, %v4615_v50, %v4683_v52  ;;  %v4035_v0 = vmul.f32 0.2, %v3971_v54  ;;  %v3936_v25 = vadd.f32 %v3858_v13, %v3784_v15  ;;  %vm4003_vm7 = vcmp.gt.f32.partialorder %v3971_v54, 0.0 }
 0x52b   : > { %v4685_v1 = vsel %vm4675_vm15, %v4616_v11, %v4684_v63  ;;  %v3786_v2 = vadd.f32 %v7954_v27, %v3634_v29  ;;  %v8346_v27 = vld [vmem:[#allocation8_spill] sm:$0xff] }
 0x52c   : > { %v4686_v57 = vsel %vm4677_vm0, %v4617_v31, %v4685_v1  ;;  %v4067_v14 = vsel %vm4003_vm7, %v3971_v54, %v4035_v0  ;;  %v3972_v28 = vadd.f32 %v7909_v23, %v3936_v25  ;;  %v3205_v30 = vadd.f32 %v7660_v17, %v8346_v27 }
 0x52d   : > { %v4687_v26 = vsel %vm4679_vm2, %v4618_v6, %v4686_v57  ;;  %v8035_v35 = vpop.f32.mrf.mxu0 }
 0x52e   : > { %4739 = vst.msk [vmem:[%s7959_s19 + $0x8] sm:$0xff] %vm2188_vm3, %v4687_v26  ;;  %v4036_v53 = vmul.f32 0.2, %v3972_v28  ;;  %vm4004_vm9 = vcmp.gt.f32.partialorder %v3972_v28, 0.0  ;;  %v3357_v6 = vadd.f32 %v7962_v43, %v3205_v30  ;;  %v8347_v43 = vld [vmem:[#allocation10_spill] sm:$0xff] }
 0x52f   : > { %v3861_v41 = vpop.f32.mrf.mxu1  ;;  %v8044_v59 = vpop.f32.mrf.mxu3 }
 0x530   : > { %v3937_v8 = vadd.f32 %v3861_v41, %v3785_v18  ;;  %5389 = vmatmul.msk.f32.gmra.mxu1 %vm2188_vm3, %v7839_v38  ;;  %v8051_v57 = vpop.f32.mrf.mxu2  ;;  %v4068_v44 = vsel %vm4004_vm9, %v3972_v28, %v4036_v53 }
 0x532   : > { %v3973_v58 = vadd.f32 %v7909_v23, %v3937_v8 }
 0x534   : > { %vm4005_vm8 = vcmp.gt.f32.partialorder %v3973_v58, 0.0  ;;  %v4037_v21 = vmul.f32 0.2, %v3973_v58 }
 0x535   : > { %v8049_v1 = vpop.f32.mrf.mxu0 }
 0x536   : > { %v4069_v51 = vsel %vm4005_vm8, %v3973_v58, %v4037_v21  ;;  %v3207_v21 = vadd.f32 %v7693_v48, %v8347_v43 }
 0x537   : > { %v4095_v61 = vadd.f32 %v4069_v51, %v4067_v14  ;;  %v3864_v55 = vpop.f32.mrf.mxu1  ;;  %v3635_v14 = vadd.f32 %v7974_v9, %v3357_v6 }
 0x538   : > { %v3938_v45 = vadd.f32 %v3864_v55, %v3786_v2  ;;  %5390 = vmatmul.msk.f32.gmra.mxu1 %vm2188_vm3, %v7851_v16 }
 0x539   : > { %v4135_v13 = vrot.slane %v4095_v61, 2  ;;  %v4136_v5 = vrot.slane %v4095_v61, 4  ;;  %v4137_v19 = vrot.slane %v4095_v61, 6  ;;  %v5411_v38 = vrot.slane %v4095_v61, 9 }
 0x53a   : > { %v3974_v46 = vadd.f32 %v7909_v23, %v3938_v45 }
 0x53b   : > { %v5412_v50 = vrot.slane %v4135_v13, 9  ;;  %v5413_v52 = vrot.slane %v4136_v5, 9  ;;  %v5414_v11 = vrot.slane %v4137_v19, 9  ;;  %v4427_v31 = vadd.f32 %v5411_v38, %v4095_v61  ;;  %v8062_v38 = vpop.f32.mrf.mxu3 }
 0x53c   : > { %vm4006_vm10 = vcmp.gt.f32.partialorder %v3974_v46, 0.0  ;;  %v4038_v63 = vmul.f32 0.2, %v3974_v46 }
 0x53d   : > { %v4428_v36 = vadd.f32 %v5412_v50, %v4135_v13  ;;  %v4429_v60 = vadd.f32 %v5413_v52, %v4136_v5  ;;  %v4491_v4 = vmul.f32 0.25, %v4427_v31  ;;  %v4430_v26 = vadd.f32 %v5414_v11, %v4137_v19  ;;  %v8348_v13 = vld [vmem:[#allocation9_spill] sm:$0xff]  ;;  %v8067_v27 = vpop.f32.mrf.mxu0 }
 0x53e   : > { %v4070_v16 = vsel %vm4006_vm10, %v3974_v46, %v4038_v63  ;;  %v3206_v5 = vadd.f32 %v7677_v24, %v8348_v13  ;;  %v3359_v19 = vadd.f32 %v7992_v20, %v3207_v21  ;;  %v3787_v11 = vadd.f32 %v7976_v42, %v3635_v14 }
 0x53f   : > { %v4492_v54 = vmul.f32 0.25, %v4428_v36  ;;  %v4493_v18 = vmul.f32 0.25, %v4429_v60  ;;  %v3867_v41 = vpop.f32.mrf.mxu1  ;;  %v4096_v15 = vadd.f32 %v4070_v16, %v4068_v44  ;;  %v4619_v17 = vperm.slane %v4491_v4, 0  ;;  %v8070_v60 = vpop.f32.mrf.mxu2 }
 0x540   : > { %5391 = vmatmul.msk.f32.gmra.mxu1 %vm2188_vm3, %v7863_v39  ;;  %v4494_v28 = vmul.f32 0.25, %v4430_v26  ;;  %v3358_v9 = vadd.f32 %v7979_v33, %v3206_v5  ;;  %v3637_v36 = vadd.f32 %v8004_v22, %v3359_v19  ;;  %v3939_v44 = vadd.f32 %v3867_v41, %v3787_v11 }
 0x541   : > { %v4620_v8 = vperm.slane %v4492_v54, 0  ;;  %v4138_v29 = vrot.slane %v4096_v15, 2  ;;  %v4139_v0 = vrot.slane %v4096_v15, 4  ;;  %v4140_v25 = vrot.slane %v4096_v15, 6 }
 0x542   : > { %v5415_v58 = vrot.slane %v4096_v15, 9  ;;  %v4621_v51 = vperm.slane %v4493_v18, 0  ;;  %v4622_v30 = vperm.slane %v4494_v28, 0  ;;  %v3208_v26 = vadd.f32 %v7711_v37, %v7434_v32  ;;  %v3411_v37 = vld [vmem:[#allocation3 + $0x19a] sm:$0xff] }
 0x543   : > { %v4688_v2 = vsel %vm4667_vm11, %v4620_v8, %v4619_v17  ;;  %v5416_v61 = vrot.slane %v4138_v29, 9  ;;  %v5417_v55 = vrot.slane %v4139_v0, 9  ;;  %v5418_v45 = vrot.slane %v4140_v25, 9 }
 0x544   : > { %v4431_v39 = vadd.f32 %v5415_v58, %v4096_v15  ;;  %v4689_v50 = vsel %vm4669_vm12, %v4621_v51, %v4688_v2  ;;  %v3636_v54 = vadd.f32 %v7987_v56, %v3358_v9  ;;  %v3360_v17 = vadd.f32 %v8014_v47, %v3208_v26 }
 0x545   : > { %v4432_v53 = vadd.f32 %v5416_v61, %v4138_v29  ;;  %v4433_v46 = vadd.f32 %v5417_v55, %v4139_v0  ;;  %v4434_v48 = vadd.f32 %v5418_v45, %v4140_v25  ;;  %v4690_v6 = vsel %vm4671_vm13, %v4622_v30, %v4689_v50  ;;  %v8085_v29 = vpop.f32.mrf.mxu3  ;;  %v8091_v58 = vpop.f32.mrf.mxu0  ;;  %v3412_v55 = vld [vmem:[#allocation3 + $0x1a2] sm:$0xff] }
 0x546   : > { %v4495_v52 = vmul.f32 0.25, %v4431_v39  ;;  %v3975_v41 = vadd.f32 %v7909_v23, %v3939_v44  ;;  %v3788_v56 = vadd.f32 %v7990_v49, %v3636_v54  ;;  %v3638_v25 = vadd.f32 %v8029_v62, %v3360_v17 }
 0x547   : > { %v3870_v31 = vpop.f32.mrf.mxu1  ;;  %v4496_v24 = vmul.f32 0.25, %v4432_v53  ;;  %v4497_v63 = vmul.f32 0.25, %v4433_v46  ;;  %v4498_v20 = vmul.f32 0.25, %v4434_v48 }
 0x548   : > { %v4623_v4 = vperm.slane %v4495_v52, 0  ;;  %5392 = vmatmul.msk.f32.gmra.mxu1 %vm2188_vm3, %v7874_v7  ;;  %v3789_v7 = vadd.f32 %v8009_v40, %v3637_v36  ;;  %v4039_v47 = vmul.f32 0.2, %v3975_v41  ;;  %v3940_v43 = vadd.f32 %v3870_v31, %v3788_v56  ;;  %v8095_v40 = vpop.f32.mrf.mxu2 }
 0x549   : > { %v4624_v33 = vperm.slane %v4496_v24, 0  ;;  %v4625_v16 = vperm.slane %v4497_v63, 0  ;;  %v4626_v22 = vperm.slane %v4498_v20, 0  ;;  %vm4007_vm4 = vcmp.gt.f32.partialorder %v3975_v41, 0.0 }
 0x54a   : > { %v4691_v42 = vsel %vm4673_vm14, %v4623_v4, %v4690_v6  ;;  %v4071_v28 = vsel %vm4007_vm4, %v3975_v41, %v4039_v47  ;;  %v3976_v51 = vadd.f32 %v7909_v23, %v3940_v43  ;;  %v3790_v2 = vadd.f32 %v8035_v35, %v3638_v25  ;;  %v8350_v43 = vld [vmem:[#allocation11_spill] sm:$0xff] }
 0x54b   : > { %v4692_v18 = vsel %vm4675_vm15, %v4624_v33, %v4691_v42  ;;  %v3209_v35 = vadd.f32 %v7729_v34, %v7445_v10 }
 0x54c   : > { %v4693_v15 = vsel %vm4677_vm0, %v4625_v16, %v4692_v18  ;;  %v4040_v46 = vmul.f32 0.2, %v3976_v51  ;;  %vm4008_vm1 = vcmp.gt.f32.partialorder %v3976_v51, 0.0 }
 0x54d   : > { %v4694_v8 = vsel %vm4679_vm2, %v4626_v22, %v4693_v15  ;;  %v8099_v13 = vpop.f32.mrf.mxu3  ;;  %v8105_v31 = vpop.f32.mrf.mxu0  ;;  %v3361_v4 = vadd.f32 %v8037_v3, %v3209_v35 }
 0x54e   : > { %4740 = vst.msk [vmem:[%s7959_s19 + $0x10] sm:$0xff] %vm2188_vm3, %v4694_v8  ;;  %v4072_v33 = vsel %vm4008_vm1, %v3976_v51, %v4040_v46  ;;  %v8349_v8 = vld [vmem:[#allocation26_spill] sm:$0xff] }
 0x54f   : > { %v3873_v32 = vpop.f32.mrf.mxu1  ;;  %v3211_v41 = vadd.f32 %v8349_v8, %v7473_v12 }
 0x550   : > { %v3941_v0 = vadd.f32 %v3873_v32, %v3789_v7  ;;  %5393 = vmatmul.msk.f32.gmra.mxu1 %vm2188_vm3, %v3411_v37  ;;  %v8107_v24 = vpop.f32.mrf.mxu2  ;;  %v3639_v7 = vadd.f32 %v8044_v59, %v3361_v4 }
 0x552   : > { %v3977_v21 = vadd.f32 %v7909_v23, %v3941_v0 }
 0x554   : > { %vm4009_vm5 = vcmp.gt.f32.partialorder %v3977_v21, 0.0  ;;  %v4041_v14 = vmul.f32 0.2, %v3977_v21 }
 0x555   : > { %v8113_v32 = vpop.f32.mrf.mxu3 }
 0x556   : > { %v4073_v49 = vsel %vm4009_vm5, %v3977_v21, %v4041_v14  ;;  %v8351_v21 = vld [vmem:[#allocation25_spill] sm:$0xff] }
 0x557   : > { %v4097_v62 = vadd.f32 %v4073_v49, %v4071_v28  ;;  %v3876_v61 = vpop.f32.mrf.mxu1  ;;  %v3210_v14 = vadd.f32 %v8351_v21, %v8350_v43  ;;  %v3363_v28 = vadd.f32 %v8070_v60, %v3211_v41  ;;  %v8119_v49 = vpop.f32.mrf.mxu0 }
 0x558   : > { %v3942_v45 = vadd.f32 %v3876_v61, %v3790_v2  ;;  %5394 = vmatmul.msk.f32.gmra.mxu1 %vm2188_vm3, %v3412_v55  ;;  %v8122_v61 = vpop.f32.mrf.mxu2 }
 0x559   : > { %v4141_v5 = vrot.slane %v4097_v62, 2  ;;  %v4142_v19 = vrot.slane %v4097_v62, 4  ;;  %v4143_v39 = vrot.slane %v4097_v62, 6  ;;  %v5419_v53 = vrot.slane %v4097_v62, 9 }
 0x55a   : > { %v3978_v48 = vadd.f32 %v7909_v23, %v3942_v45 }
 0x55b   : > { %v5420_v9 = vrot.slane %v4141_v5, 9  ;;  %v5421_v50 = vrot.slane %v4142_v19, 9  ;;  %v5422_v52 = vrot.slane %v4143_v39, 9  ;;  %v4435_v11 = vadd.f32 %v5419_v53, %v4097_v62 }
 0x55c   : > { %vm4010_vm6 = vcmp.gt.f32.partialorder %v3978_v48, 0.0  ;;  %v4042_v30 = vmul.f32 0.2, %v3978_v48  ;;  %v3362_v62 = vadd.f32 %v8051_v57, %v3210_v14 }
 0x55d   : > { %v4436_v63 = vadd.f32 %v5420_v9, %v4141_v5  ;;  %v4437_v20 = vadd.f32 %v5421_v50, %v4142_v19  ;;  %v4499_v36 = vmul.f32 0.25, %v4435_v11  ;;  %v4438_v16 = vadd.f32 %v5422_v52, %v4143_v39 }
 0x55e   : > { %v4074_v6 = vsel %vm4010_vm6, %v3978_v48, %v4042_v30  ;;  %v3791_v5 = vadd.f32 %v8049_v1, %v3639_v7  ;;  %v3641_v48 = vadd.f32 %v8085_v29, %v3363_v28  ;;  %v8352_v30 = vld [vmem:[#allocation12_spill] sm:$0xff]  ;;  %v3640_v1 = vadd.f32 %v8062_v38, %v3362_v62 }
 0x55f   : > { %v4500_v44 = vmul.f32 0.25, %v4436_v63  ;;  %v4501_v42 = vmul.f32 0.25, %v4437_v20  ;;  %v3879_v26 = vpop.f32.mrf.mxu1  ;;  %v4098_v54 = vadd.f32 %v4074_v6, %v4072_v33  ;;  %v4627_v10 = vperm.slane %v4499_v36, 0  ;;  %v8353_v63 = vld [vmem:[#allocation27_spill] sm:$0xff]  ;;  %v8133_v6 = vpop.f32.mrf.mxu3  ;;  %v8355_v62 = vld [vmem:[#allocation28_spill] sm:$0xff] }
 0x560   : > { %v4502_v3 = vmul.f32 0.25, %v4438_v16  ;;  %v3943_v11 = vadd.f32 %v3879_v26, %v3791_v5  ;;  %v3212_v20 = vadd.f32 %v8353_v63, %v8352_v30  ;;  %v3792_v38 = vadd.f32 %v8067_v27, %v3640_v1 }
 0x561   : > { %v4628_v34 = vperm.slane %v4500_v44, 0  ;;  %v4144_v22 = vrot.slane %v4098_v54, 2  ;;  %v4145_v18 = vrot.slane %v4098_v54, 4  ;;  %v4146_v15 = vrot.slane %v4098_v54, 6 }
 0x562   : > { %v5423_v17 = vrot.slane %v4098_v54, 9  ;;  %v4629_v37 = vperm.slane %v4501_v42, 0  ;;  %v4630_v39 = vperm.slane %v4502_v3, 0  ;;  %v3364_v33 = vadd.f32 %v8095_v40, %v3212_v20 }
 0x563   : > { %v4695_v56 = vsel %vm4667_vm11, %v4628_v34, %v4627_v10  ;;  %v5424_v0 = vrot.slane %v4144_v22, 9  ;;  %v5425_v25 = vrot.slane %v4145_v18, 9  ;;  %v5426_v47 = vrot.slane %v4146_v15, 9  ;;  %v3315_v34 = vpop.f32.mrf.mxu2 }
 0x564   : > { %v4439_v51 = vadd.f32 %v5423_v17, %v4098_v54  ;;  %v4696_v55 = vsel %vm4669_vm12, %v4629_v37, %v4695_v56  ;;  %v3979_v44 = vadd.f32 %v7909_v23, %v3943_v11  ;;  %v3793_v42 = vadd.f32 %v8091_v58, %v3641_v48  ;;  %v8142_v54 = vpop.f32.mrf.mxu0 }
 0x565   : > { %v4440_v12 = vadd.f32 %v5424_v0, %v4144_v22  ;;  %v4441_v2 = vadd.f32 %v5425_v25, %v4145_v18  ;;  %v4442_v59 = vadd.f32 %v5426_v47, %v4146_v15  ;;  %v4697_v50 = vsel %vm4671_vm13, %v4630_v39, %v4696_v55 }
 0x566   : > { %v4503_v45 = vmul.f32 0.25, %v4439_v51  ;;  %v3642_v22 = vadd.f32 %v8099_v13, %v3364_v33  ;;  %v4043_v18 = vmul.f32 0.2, %v3979_v44  ;;  %vm4011_vm7 = vcmp.gt.f32.partialorder %v3979_v44, 0.0 }
 0x567   : > { %v3882_v19 = vpop.f32.mrf.mxu1  ;;  %v4504_v53 = vmul.f32 0.25, %v4440_v12  ;;  %v4505_v46 = vmul.f32 0.25, %v4441_v2  ;;  %v4506_v60 = vmul.f32 0.25, %v4442_v59  ;;  %v8149_v3 = vpop.f32.mrf.mxu3  ;;  %v8354_v59 = vld [vmem:[#allocation13_spill] sm:$0xff] }
 0x568   : > { %v4631_v9 = vperm.slane %v4503_v45, 0  ;;  %v3944_v15 = vadd.f32 %v3882_v19, %v3792_v38  ;;  %v4075_v8 = vsel %vm4011_vm7, %v3979_v44, %v4043_v18  ;;  %v3794_v7 = vadd.f32 %v8105_v31, %v3642_v22  ;;  %v8358_v18 = vld [vmem:[#allocation14_spill] sm:$0xff] }
 0x569   : > { %v4632_v52 = vperm.slane %v4504_v53, 0  ;;  %v4633_v57 = vperm.slane %v4505_v46, 0  ;;  %v4634_v36 = vperm.slane %v4506_v60, 0  ;;  %v3213_v55 = vadd.f32 %v8355_v62, %v8354_v59 }
 0x56a   : > { %v4698_v35 = vsel %vm4673_vm14, %v4631_v9, %v4697_v50  ;;  %v3980_v58 = vadd.f32 %v7909_v23, %v3944_v15  ;;  %v8359_v15 = vld [vmem:[#allocation29_spill] sm:$0xff] }
 0x56b   : > { %v4699_v4 = vsel %vm4675_vm15, %v4632_v52, %v4698_v35  ;;  %v8154_v28 = vpop.f32.mrf.mxu2  ;;  %v3365_v53 = vadd.f32 %v8107_v24, %v3213_v55  ;;  %v8360_v55 = vld [vmem:[#allocation16_spill] sm:$0xff] }
 0x56c   : > { %v4700_v29 = vsel %vm4677_vm0, %v4633_v57, %v4699_v4  ;;  %v8151_v43 = vpop.f32.mrf.mxu0  ;;  %v4044_v21 = vmul.f32 0.2, %v3980_v58  ;;  %vm4012_vm9 = vcmp.gt.f32.partialorder %v3980_v58, 0.0  ;;  %v8356_v4 = vld [vmem:[#allocation15_spill] sm:$0xff] }
 0x56d   : > { %v4701_v16 = vsel %vm4679_vm2, %v4634_v36, %v4700_v29  ;;  %v8357_v29 = vld [vmem:[#allocation30_spill] sm:$0xff] }
 0x56e   : > { %4741 = vst.msk [vmem:[%s7959_s19 + $0x18] sm:$0xff] %vm2188_vm3, %v4701_v16  ;;  %v4076_v60 = vsel %vm4012_vm9, %v3980_v58, %v4044_v21  ;;  %v3215_v33 = vadd.f32 %v8357_v29, %v8356_v4  ;;  %v3643_v16 = vadd.f32 %v8113_v32, %v3365_v53 }
 0x56f   : > { %v3885_v26 = vpop.f32.mrf.mxu1  ;;  %v3596_v11 = vpop.f32.mrf.mxu3 }
 0x570   : > { %v3945_v10 = vadd.f32 %v3885_v26, %v3793_v42 }
 0x572   : > { %v3981_v40 = vadd.f32 %v7909_v23, %v3945_v10 }
 0x574   : > { %vm4013_vm8 = vcmp.gt.f32.partialorder %v3981_v40, 0.0  ;;  %v4045_v17 = vmul.f32 0.2, %v3981_v40  ;;  %v3748_v42 = vpop.f32.mrf.mxu0 }
 0x576   : > { %v4077_v41 = vsel %vm4013_vm8, %v3981_v40, %v4045_v17  ;;  %v3214_v40 = vadd.f32 %v8359_v15, %v8358_v18  ;;  %v3367_v17 = vadd.f32 %v3315_v34, %v3215_v33 }
 0x577   : > { %v4099_v27 = vadd.f32 %v4077_v41, %v4075_v8  ;;  %v3888_v37 = vpop.f32.mrf.mxu1  ;;  %v8165_v8 = vpop.f32.mrf.mxu2 }
 0x578   : > { %v3946_v56 = vadd.f32 %v3888_v37, %v3794_v7  ;;  %v3366_v32 = vadd.f32 %v8122_v61, %v3214_v40  ;;  %v3645_v34 = vadd.f32 %v8149_v3, %v3367_v17  ;;  %v8172_v61 = vpop.f32.mrf.mxu3 }
 0x579   : > { %v4147_v0 = vrot.slane %v4099_v27, 2  ;;  %v4148_v13 = vrot.slane %v4099_v27, 4  ;;  %v4149_v25 = vrot.slane %v4099_v27, 6  ;;  %v5427_v47 = vrot.slane %v4099_v27, 9 }
 0x57a   : > { %v3982_v14 = vadd.f32 %v7909_v23, %v3946_v56 }
 0x57b   : > { %v5428_v51 = vrot.slane %v4147_v0, 9  ;;  %v5429_v12 = vrot.slane %v4148_v13, 9  ;;  %v5430_v2 = vrot.slane %v4149_v25, 9  ;;  %v4443_v31 = vadd.f32 %v5427_v47, %v4099_v27 }
 0x57c   : > { %vm4014_vm10 = vcmp.gt.f32.partialorder %v3982_v14, 0.0  ;;  %v4046_v45 = vmul.f32 0.2, %v3982_v14 }
 0x57d   : > { %v4444_v5 = vadd.f32 %v5428_v51, %v4147_v0  ;;  %v4445_v19 = vadd.f32 %v5429_v12, %v4148_v13  ;;  %v4507_v39 = vmul.f32 0.25, %v4443_v31  ;;  %v4446_v48 = vadd.f32 %v5430_v2, %v4149_v25 }
 0x57e   : > { %v4078_v46 = vsel %vm4014_vm10, %v3982_v14, %v4046_v45  ;;  %v3795_v0 = vadd.f32 %v8119_v49, %v3643_v16  ;;  %v8361_v49 = vld [vmem:[#allocation31_spill] sm:$0xff] }
 0x57f   : > { %v4508_v9 = vmul.f32 0.25, %v4444_v5  ;;  %v4509_v50 = vmul.f32 0.25, %v4445_v19  ;;  %v3891_v52 = vpop.f32.mrf.mxu1  ;;  %v4100_v57 = vadd.f32 %v4078_v46, %v4076_v60  ;;  %v4635_v35 = vperm.slane %v4507_v39, 0  ;;  %v8181_v46 = vpop.f32.mrf.mxu0 }
 0x580   : > { %v4510_v24 = vmul.f32 0.25, %v4446_v48  ;;  %v3947_v59 = vadd.f32 %v3891_v52, %v3795_v0  ;;  %v3216_v45 = vadd.f32 %v8361_v49, %v8360_v55  ;;  %v3644_v5 = vadd.f32 %v8133_v6, %v3366_v32 }
 0x581   : > { %v4636_v30 = vperm.slane %v4508_v9, 0  ;;  %v4150_v63 = vrot.slane %v4100_v57, 2  ;;  %v4151_v20 = vrot.slane %v4100_v57, 4  ;;  %v4152_v1 = vrot.slane %v4100_v57, 6 }
 0x582   : > { %v5431_v36 = vrot.slane %v4100_v57, 9  ;;  %v4637_v44 = vperm.slane %v4509_v50, 0  ;;  %v4638_v25 = vperm.slane %v4510_v24, 0  ;;  %v3368_v53 = vadd.f32 %v8154_v28, %v3216_v45  ;;  %v8186_v50 = vpop.f32.mrf.mxu2 }
 0x583   : > { %v4702_v26 = vsel %vm4667_vm11, %v4636_v30, %v4635_v35  ;;  %v5432_v38 = vrot.slane %v4150_v63, 9  ;;  %v5433_v10 = vrot.slane %v4151_v20, 9  ;;  %v5434_v22 = vrot.slane %v4152_v1, 9 }
 0x584   : > { %v4447_v58 = vadd.f32 %v5431_v36, %v4100_v57  ;;  %v4703_v37 = vsel %vm4669_vm12, %v4637_v44, %v4702_v26  ;;  %v3983_v48 = vadd.f32 %v7909_v23, %v3947_v59  ;;  %v3797_v9 = vadd.f32 %v8151_v43, %v3645_v34  ;;  %v8197_v43 = vld [vmem:[%s8267_s4] ss:$0 sm:$0xff] }
 0x585   : > { %v4448_v41 = vadd.f32 %v5432_v38, %v4150_v63  ;;  %v4449_v7 = vadd.f32 %v5433_v10, %v4151_v20  ;;  %v4450_v27 = vadd.f32 %v5434_v22, %v4152_v1  ;;  %v4704_v12 = vsel %vm4671_vm13, %v4638_v25, %v4703_v37  ;;  %v8192_v1 = vpop.f32.mrf.mxu3 }
 0x586   : > { %v4511_v56 = vmul.f32 0.25, %v4447_v58  ;;  %v3796_v52 = vadd.f32 %v8142_v54, %v3644_v5  ;;  %v3646_v35 = vadd.f32 %v3596_v11, %v3368_v53  ;;  %v4047_v30 = vmul.f32 0.2, %v3983_v48  ;;  %v8364_v5 = vld [vmem:[#allocation19_spill] sm:$0xff] }
 0x587   : > { %v3894_v13 = vpop.f32.mrf.mxu1  ;;  %v4512_v47 = vmul.f32 0.25, %v4448_v41  ;;  %v4513_v21 = vmul.f32 0.25, %v4449_v7  ;;  %v4514_v14 = vmul.f32 0.25, %v4450_v27  ;;  %vm4015_vm4 = vcmp.gt.f32.partialorder %v3983_v48, 0.0  ;;  %v8200_v16 = vpop.f32.mrf.mxu0  ;;  %v8362_v41 = vld [vmem:[#allocation17_spill] sm:$0xff]  ;;  %v8363_v7 = vld [vmem:[#allocation32_spill] sm:$0xff] }
 0x588   : > { %v4639_v51 = vperm.slane %v4511_v56, 0  ;;  %v3948_v63 = vadd.f32 %v3894_v13, %v3796_v52  ;;  %v4079_v36 = vsel %vm4015_vm4, %v3983_v48, %v4047_v30  ;;  %v3798_v29 = vadd.f32 %v3748_v42, %v3646_v35  ;;  %v8367_v35 = vld [vmem:[#allocation33_spill] sm:$0xff] }
 0x589   : > { %v4640_v2 = vperm.slane %v4512_v47, 0  ;;  %v4641_v31 = vperm.slane %v4513_v21, 0  ;;  %v4642_v19 = vperm.slane %v4514_v14, 0  ;;  %v3217_v42 = vadd.f32 %v8363_v7, %v8362_v41  ;;  %v8369_v41 = vld [vmem:[#allocation35_spill] sm:$0xff] }
 0x58a   : > { %v4705_v62 = vsel %vm4673_vm14, %v4639_v51, %v4704_v12  ;;  %v3984_v4 = vadd.f32 %v8197_v43, %v3948_v63  ;;  %v3327_v24 = vpop.f32.mrf.mxu2 }
 0x58b   : > { %v4706_v39 = vsel %vm4675_vm15, %v4640_v2, %v4705_v62  ;;  %v3369_v0 = vadd.f32 %v8165_v8, %v3217_v42 }
 0x58c   : > { %v4707_v3 = vsel %vm4677_vm0, %v4641_v31, %v4706_v39  ;;  %v4048_v22 = vmul.f32 0.2, %v3984_v4  ;;  %vm4016_vm1 = vcmp.gt.f32.partialorder %v3984_v4, 0.0 }
 0x58d   : > { %v4708_v60 = vsel %vm4679_vm2, %v4642_v19, %v4707_v3  ;;  %v3605_v25 = vpop.f32.mrf.mxu3  ;;  %v8365_v19 = vld [vmem:[#allocation34_spill] sm:$0xff]  ;;  %v3647_v8 = vadd.f32 %v8172_v61, %v3369_v0 }
 0x58e   : > { %4742 = vst.msk [vmem:[%s7959_s19 + $0x20] sm:$0xff] %vm2188_vm3, %v4708_v60  ;;  %v4080_v47 = vsel %vm4016_vm1, %v3984_v4, %v4048_v22  ;;  %v3219_v39 = vadd.f32 %v8365_v19, %v8364_v5 }
 0x58f   : > { %v3897_v6 = vpop.f32.mrf.mxu1  ;;  %v3757_v59 = vpop.f32.mrf.mxu0 }
 0x590   : > { %v3949_v57 = vadd.f32 %v3897_v6, %v3797_v9  ;;  %v3371_v63 = vadd.f32 %v3327_v24, %v3219_v39 }
 0x592   : > { %v3985_v28 = vadd.f32 %v7909_v23, %v3949_v57  ;;  %v3330_v3 = vpop.f32.mrf.mxu2  ;;  %v8366_v57 = vld [vmem:[#allocation18_spill] sm:$0xff] }
 0x593   : > { %v3218_v30 = vadd.f32 %v8367_v35, %v8366_v57 }
 0x594   : > { %vm4017_vm5 = vcmp.gt.f32.partialorder %v3985_v28, 0.0  ;;  %v4049_v20 = vmul.f32 0.2, %v3985_v28 }
 0x595   : > { %v3608_v22 = vpop.f32.mrf.mxu3 }
 0x596   : > { %v4081_v54 = vsel %vm4017_vm5, %v3985_v28, %v4049_v20 }
 0x597   : > { %v4101_v11 = vadd.f32 %v4081_v54, %v4079_v36  ;;  %v3900_v33 = vpop.f32.mrf.mxu1  ;;  %v3370_v54 = vadd.f32 %v8186_v50, %v3218_v30  ;;  %v3760_v42 = vpop.f32.mrf.mxu0 }
 0x598   : > { %v3950_v23 = vadd.f32 %v3900_v33, %v3798_v29 }
 0x599   : > { %v4153_v44 = vrot.slane %v4101_v11, 2  ;;  %v4154_v26 = vrot.slane %v4101_v11, 4  ;;  %v4155_v38 = vrot.slane %v4101_v11, 6  ;;  %v5435_v10 = vrot.slane %v4101_v11, 9 }
 0x59a   : > { %v3986_v18 = vadd.f32 %v8197_v43, %v3950_v23 }
 0x59b   : > { %v5436_v15 = vrot.slane %v4153_v44, 9  ;;  %v5437_v40 = vrot.slane %v4154_v26, 9  ;;  %v5438_v17 = vrot.slane %v4155_v38, 9  ;;  %v4451_v58 = vadd.f32 %v5435_v10, %v4101_v11 }
 0x59c   : > { %vm4018_vm6 = vcmp.gt.f32.partialorder %v3986_v18, 0.0  ;;  %v4050_v27 = vmul.f32 0.2, %v3986_v18  ;;  %v3799_v11 = vadd.f32 %v8181_v46, %v3647_v8  ;;  %v3649_v10 = vadd.f32 %v3605_v25, %v3371_v63  ;;  %v8370_v63 = vld [vmem:[#allocation21_spill] sm:$0xff] }
 0x59d   : > { %v4452_v32 = vadd.f32 %v5436_v15, %v4153_v44  ;;  %v4453_v37 = vadd.f32 %v5437_v40, %v4154_v26  ;;  %v4515_v56 = vmul.f32 0.25, %v4451_v58  ;;  %v4454_v21 = vadd.f32 %v5438_v17, %v4155_v38  ;;  %v8368_v58 = vld [vmem:[#allocation20_spill] sm:$0xff] }
 0x59e   : > { %v4082_v13 = vsel %vm4018_vm6, %v3986_v18, %v4050_v27  ;;  %v3220_v7 = vadd.f32 %v8369_v41, %v8368_v58  ;;  %v3648_v46 = vadd.f32 %v8192_v1, %v3370_v54 }
 0x59f   : > { %v4516_v14 = vmul.f32 0.25, %v4452_v32  ;;  %v4517_v34 = vmul.f32 0.25, %v4453_v37  ;;  %v3903_v51 = vpop.f32.mrf.mxu1  ;;  %v4102_v12 = vadd.f32 %v4082_v13, %v4080_v47  ;;  %v4643_v2 = vperm.slane %v4515_v56, 0  ;;  %v3333_v37 = vpop.f32.mrf.mxu2 }
 0x5a0   : > { %v4518_v53 = vmul.f32 0.25, %v4454_v21  ;;  %v3951_v17 = vadd.f32 %v3903_v51, %v3799_v11  ;;  %v3372_v0 = vadd.f32 %v3330_v3, %v3220_v7  ;;  %v3801_v47 = vadd.f32 %v3757_v59, %v3649_v10  ;;  %v8372_v7 = vld [vmem:[#allocation23_spill] sm:$0xff] }
 0x5a1   : > { %v4644_v31 = vperm.slane %v4516_v14, 0  ;;  %v4156_v62 = vrot.slane %v4102_v12, 2  ;;  %v4157_v55 = vrot.slane %v4102_v12, 4  ;;  %v4158_v49 = vrot.slane %v4102_v12, 6 }
 0x5a2   : > { %v5439_v45 = vrot.slane %v4102_v12, 9  ;;  %v4645_v60 = vperm.slane %v4517_v34, 0  ;;  %v4646_v23 = vperm.slane %v4518_v53, 0  ;;  %v3987_v25 = vadd.f32 %v8197_v43, %v3951_v17 }
 0x5a3   : > { %v4709_v48 = vsel %vm4667_vm11, %v4644_v31, %v4643_v2  ;;  %v5440_v9 = vrot.slane %v4156_v62, 9  ;;  %v5441_v6 = vrot.slane %v4157_v55, 9  ;;  %v5442_v52 = vrot.slane %v4158_v49, 9  ;;  %v3611_v31 = vpop.f32.mrf.mxu3 }
 0x5a4   : > { %v4455_v28 = vadd.f32 %v5439_v45, %v4102_v12  ;;  %v4710_v61 = vsel %vm4669_vm12, %v4645_v60, %v4709_v48  ;;  %v3800_v14 = vadd.f32 %v8200_v16, %v3648_v46  ;;  %v3650_v1 = vadd.f32 %v3608_v22, %v3372_v0  ;;  %v8373_v46 = vld [vmem:[#allocation38_spill] sm:$0xff] }
 0x5a5   : > { %v4456_v20 = vadd.f32 %v5440_v9, %v4156_v62  ;;  %v4457_v36 = vadd.f32 %v5441_v6, %v4157_v55  ;;  %v4458_v4 = vadd.f32 %v5442_v52, %v4158_v49  ;;  %v4711_v24 = vsel %vm4671_vm13, %v4646_v23, %v4710_v61  ;;  %v3763_v55 = vpop.f32.mrf.mxu0 }
 0x5a6   : > { %v4519_v29 = vmul.f32 0.25, %v4455_v28  ;;  %v4051_v51 = vmul.f32 0.2, %v3987_v25  ;;  %vm4019_vm7 = vcmp.gt.f32.partialorder %v3987_v25, 0.0  ;;  %v3802_v5 = vadd.f32 %v3760_v42, %v3650_v1  ;;  %v8371_v28 = vld [vmem:[#allocation36_spill] sm:$0xff] }
 0x5a7   : > { %v3906_v33 = vpop.f32.mrf.mxu1  ;;  %v4520_v44 = vmul.f32 0.25, %v4456_v20  ;;  %v4521_v26 = vmul.f32 0.25, %v4457_v36  ;;  %v4522_v38 = vmul.f32 0.25, %v4458_v4  ;;  %v3336_v19 = vpop.f32.mrf.mxu2  ;;  %v3221_v20 = vadd.f32 %v8371_v28, %v8370_v63  ;;  %v8377_v63 = vld [vmem:[#allocation39_spill] sm:$0xff] }
 0x5a8   : > { %v4647_v18 = vperm.slane %v4519_v29, 0  ;;  %v3952_v12 = vadd.f32 %v3906_v33, %v3800_v14  ;;  %v4083_v49 = vsel %vm4019_vm7, %v3987_v25, %v4051_v51  ;;  %v3223_v42 = vadd.f32 %v8373_v46, %v8372_v7 }
 0x5a9   : > { %v4648_v15 = vperm.slane %v4520_v44, 0  ;;  %v4649_v40 = vperm.slane %v4521_v26, 0  ;;  %v4650_v27 = vperm.slane %v4522_v38, 0  ;;  %v3373_v11 = vadd.f32 %v3333_v37, %v3221_v20 }
 0x5aa   : > { %v4712_v50 = vsel %vm4673_vm14, %v4647_v18, %v4711_v24  ;;  %v3988_v45 = vadd.f32 %v8197_v43, %v3952_v12 }
 0x5ab   : > { %v4713_v32 = vsel %vm4675_vm15, %v4648_v15, %v4712_v50  ;;  %v3614_v4 = vpop.f32.mrf.mxu3 }
 0x5ac   : > { %v4714_v56 = vsel %vm4677_vm0, %v4649_v40, %v4713_v32  ;;  %v4052_v9 = vmul.f32 0.2, %v3988_v45  ;;  %vm4020_vm9 = vcmp.gt.f32.partialorder %v3988_v45, 0.0 }
 0x5ad   : > { %v4715_v13 = vsel %vm4679_vm2, %v4650_v27, %v4714_v56  ;;  %v3766_v18 = vpop.f32.mrf.mxu0  ;;  %v3651_v27 = vadd.f32 %v3611_v31, %v3373_v11 }
 0x5ae   : > { %4743 = vst.msk [vmem:[%s7959_s19 + $0x28] sm:$0xff] %vm2188_vm3, %v4715_v13  ;;  %v4084_v23 = vsel %vm4020_vm9, %v3988_v45, %v4052_v9 }
 0x5af   : > { %v3909_v21 = vpop.f32.mrf.mxu1  ;;  %v3339_v24 = vpop.f32.mrf.mxu2 }
 0x5b0   : > { %v3953_v34 = vadd.f32 %v3909_v21, %v3801_v47  ;;  %v8374_v47 = vld [vmem:[#allocation22_spill] sm:$0xff]  ;;  %v8375_v21 = vld [vmem:[#allocation37_spill] sm:$0xff] }
 0x5b1   : > { %v3222_v14 = vadd.f32 %v8375_v21, %v8374_v47 }
 0x5b2   : > { %v3989_v2 = vadd.f32 %v8197_v43, %v3953_v34  ;;  %v3375_v34 = vadd.f32 %v3339_v24, %v3223_v42 }
 0x5b4   : > { %vm4021_vm8 = vcmp.gt.f32.partialorder %v3989_v2, 0.0  ;;  %v4053_v62 = vmul.f32 0.2, %v3989_v2 }
 0x5b6   : > { %v4085_v59 = vsel %vm4021_vm8, %v3989_v2, %v4053_v62  ;;  %v3374_v62 = vadd.f32 %v3336_v19, %v3222_v14 }
 0x5b7   : > { %v4103_v39 = vadd.f32 %v4085_v59, %v4083_v49  ;;  %v3912_v8 = vpop.f32.mrf.mxu1  ;;  %v3617_v49 = vpop.f32.mrf.mxu3  ;;  %v3803_v59 = vadd.f32 %v3763_v55, %v3651_v27 }
 0x5b8   : > { %v3954_v16 = vadd.f32 %v3912_v8, %v3802_v5  ;;  %v3342_v19 = vpop.f32.mrf.mxu2  ;;  %v3652_v28 = vadd.f32 %v3614_v4, %v3374_v62 }
 0x5b9   : > { %v4159_v3 = vrot.slane %v4103_v39, 2  ;;  %v4160_v53 = vrot.slane %v4103_v39, 4  ;;  %v4161_v60 = vrot.slane %v4103_v39, 6  ;;  %v5443_v48 = vrot.slane %v4103_v39, 9 }
 0x5ba   : > { %v3990_v6 = vadd.f32 %v8197_v43, %v3954_v16 }
 0x5bb   : > { %v5444_v52 = vrot.slane %v4159_v3, 9  ;;  %v5445_v57 = vrot.slane %v4160_v53, 9  ;;  %v5446_v35 = vrot.slane %v4161_v60, 9  ;;  %v4459_v30 = vadd.f32 %v5443_v48, %v4103_v39 }
 0x5bc   : > { %vm4022_vm10 = vcmp.gt.f32.partialorder %v3990_v6, 0.0  ;;  %v4054_v36 = vmul.f32 0.2, %v3990_v6 }
 0x5bd   : > { %v4460_v54 = vadd.f32 %v5444_v52, %v4159_v3  ;;  %v4461_v61 = vadd.f32 %v5445_v57, %v4160_v53  ;;  %v4523_v29 = vmul.f32 0.25, %v4459_v30  ;;  %v4462_v44 = vadd.f32 %v5446_v35, %v4161_v60  ;;  %v3769_v57 = vpop.f32.mrf.mxu0  ;;  %v8376_v30 = vld [vmem:[#allocation24_spill] sm:$0xff] }
 0x5be   : > { %v4086_v33 = vsel %vm4022_vm10, %v3990_v6, %v4054_v36  ;;  %v3653_v53 = vadd.f32 %v3617_v49, %v3375_v34  ;;  %v3224_v55 = vadd.f32 %v8377_v63, %v8376_v30 }
 0x5bf   : > { %v4524_v26 = vmul.f32 0.25, %v4460_v54  ;;  %v4525_v38 = vmul.f32 0.25, %v4461_v61  ;;  %v3915_v10 = vpop.f32.mrf.mxu1  ;;  %v4104_v22 = vadd.f32 %v4086_v33, %v4084_v23  ;;  %v4651_v15 = vperm.slane %v4523_v29, 0 }
 0x5c0   : > { %v4526_v32 = vmul.f32 0.25, %v4462_v44  ;;  %v3955_v52 = vadd.f32 %v3915_v10, %v3803_v59  ;;  %v3376_v61 = vadd.f32 %v3342_v19, %v3224_v55  ;;  %v3805_v33 = vadd.f32 %v3769_v57, %v3653_v53 }
 0x5c1   : > { %v4652_v40 = vperm.slane %v4524_v26, 0  ;;  %v4162_v17 = vrot.slane %v4104_v22, 2  ;;  %v4163_v50 = vrot.slane %v4104_v22, 4  ;;  %v4164_v58 = vrot.slane %v4104_v22, 6 }
 0x5c2   : > { %v5447_v41 = vrot.slane %v4104_v22, 9  ;;  %v4653_v37 = vperm.slane %v4525_v38, 0  ;;  %v4654_v39 = vperm.slane %v4526_v32, 0  ;;  %v3991_v11 = vadd.f32 %v8197_v43, %v3955_v52  ;;  %v3620_v38 = vpop.f32.mrf.mxu3 }
 0x5c3   : > { %v4716_v56 = vsel %vm4667_vm11, %v4652_v40, %v4651_v15  ;;  %v5448_v0 = vrot.slane %v4162_v17, 9  ;;  %v5449_v13 = vrot.slane %v4163_v50, 9  ;;  %v5450_v25 = vrot.slane %v4164_v58, 9 }
 0x5c4   : > { %v4463_v1 = vadd.f32 %v5447_v41, %v4104_v22  ;;  %v4717_v45 = vsel %vm4669_vm12, %v4653_v37, %v4716_v56  ;;  %v3804_v44 = vadd.f32 %v3766_v18, %v3652_v28  ;;  %v3654_v10 = vadd.f32 %v3620_v38, %v3376_v61 }
 0x5c5   : > { %v4464_v51 = vadd.f32 %v5448_v0, %v4162_v17  ;;  %v4465_v12 = vadd.f32 %v5449_v13, %v4163_v50  ;;  %v4466_v2 = vadd.f32 %v5450_v25, %v4164_v58  ;;  %v4718_v48 = vsel %vm4671_vm13, %v4654_v39, %v4717_v45  ;;  %v3772_v40 = vpop.f32.mrf.mxu0 }
 0x5c6   : > { %v4527_v31 = vmul.f32 0.25, %v4463_v1  ;;  %v4055_v22 = vmul.f32 0.2, %v3991_v11  ;;  %vm4023_vm4 = vcmp.gt.f32.partialorder %v3991_v11, 0.0  ;;  %v3806_v41 = vadd.f32 %v3772_v40, %v3654_v10 }
 0x5c7   : > { %v3918_v5 = vpop.f32.mrf.mxu1  ;;  %v4528_v8 = vmul.f32 0.25, %v4464_v51  ;;  %v4529_v16 = vmul.f32 0.25, %v4465_v12  ;;  %v4530_v3 = vmul.f32 0.25, %v4466_v2 }
 0x5c8   : > { %v4655_v60 = vperm.slane %v4527_v31, 0  ;;  %v3956_v4 = vadd.f32 %v3918_v5, %v3804_v44  ;;  %v4087_v17 = vsel %vm4023_vm4, %v3991_v11, %v4055_v22 }
 0x5c9   : > { %v4656_v9 = vperm.slane %v4528_v8, 0  ;;  %v4657_v6 = vperm.slane %v4529_v16, 0  ;;  %v4658_v20 = vperm.slane %v4530_v3, 0 }
 0x5ca   : > { %v4719_v35 = vsel %vm4673_vm14, %v4655_v60, %v4718_v48  ;;  %v3992_v50 = vadd.f32 %v8197_v43, %v3956_v4 }
 0x5cb   : > { %v4720_v36 = vsel %vm4675_vm15, %v4656_v9, %v4719_v35 }
 0x5cc   : > { %v4721_v54 = vsel %vm4677_vm0, %v4657_v6, %v4720_v36  ;;  %v4056_v56 = vmul.f32 0.2, %v3992_v50  ;;  %vm4024_vm1 = vcmp.gt.f32.partialorder %v3992_v50, 0.0 }
 0x5cd   : > { %v4722_v29 = vsel %vm4679_vm2, %v4658_v20, %v4721_v54 }
 0x5ce   : > { %4744 = vst.msk [vmem:[%s7959_s19 + $0x30] sm:$0xff] %vm2188_vm3, %v4722_v29  ;;  %v4088_v2 = vsel %vm4024_vm1, %v3992_v50, %v4056_v56 }
 0x5cf   : > { %v3921_v23 = vpop.f32.mrf.mxu1 }
 0x5d0   : > { %v3957_v26 = vadd.f32 %v3921_v23, %v3805_v33 }
 0x5d2   : > { %v3993_v24 = vadd.f32 %v8197_v43, %v3957_v26 }
 0x5d4   : > { %vm4025_vm5 = vcmp.gt.f32.partialorder %v3993_v24, 0.0  ;;  %v4057_v15 = vmul.f32 0.2, %v3993_v24 }
 0x5d6   : > { %v4089_v58 = vsel %vm4025_vm5, %v3993_v24, %v4057_v15 }
 0x5d7   : > { %v4105_v7 = vadd.f32 %v4089_v58, %v4087_v17  ;;  %v3924_v46 = vpop.f32.mrf.mxu1 }
 0x5d8   : > { %v3958_v42 = vadd.f32 %v3924_v46, %v3806_v41 }
 0x5d9   : > { %v4165_v18 = vrot.slane %v4105_v7, 2  ;;  %v4166_v27 = vrot.slane %v4105_v7, 4  ;;  %v4167_v32 = vrot.slane %v4105_v7, 6  ;;  %v5451_v37 = vrot.slane %v4105_v7, 9 }
 0x5da   : > { %v3994_v0 = vadd.f32 %v8197_v43, %v3958_v42 }
 0x5db   : > { %v5452_v13 = vrot.slane %v4165_v18, 9  ;;  %v5453_v25 = vrot.slane %v4166_v27, 9  ;;  %v5454_v47 = vrot.slane %v4167_v32, 9  ;;  %v4467_v21 = vadd.f32 %v5451_v37, %v4105_v7 }
 0x5dc   : > { %vm4026_vm6 = vcmp.gt.f32.partialorder %v3994_v0, 0.0  ;;  %v4058_v14 = vmul.f32 0.2, %v3994_v0 }
 0x5dd   : > { %v4468_v34 = vadd.f32 %v5452_v13, %v4165_v18  ;;  %v4469_v1 = vadd.f32 %v5453_v25, %v4166_v27  ;;  %v4531_v51 = vmul.f32 0.25, %v4467_v21  ;;  %v4470_v62 = vadd.f32 %v5454_v47, %v4167_v32 }
 0x5de   : > { %v4090_v12 = vsel %vm4026_vm6, %v3994_v0, %v4058_v14 }
 0x5df   : > { %v4532_v49 = vmul.f32 0.25, %v4468_v34  ;;  %v4533_v45 = vmul.f32 0.25, %v4469_v1  ;;  %v4106_v31 = vadd.f32 %v4090_v12, %v4088_v2  ;;  %v4659_v59 = vperm.slane %v4531_v51, 0 }
 0x5e0   : > { %v4534_v3 = vmul.f32 0.25, %v4470_v62 }
 0x5e1   : > { %v4660_v5 = vperm.slane %v4532_v49, 0  ;;  %v4168_v39 = vrot.slane %v4106_v31, 2  ;;  %v4169_v43 = vrot.slane %v4106_v31, 4  ;;  %v4170_v8 = vrot.slane %v4106_v31, 6 }
 0x5e2   : > { %v5455_v16 = vrot.slane %v4106_v31, 9  ;;  %v4661_v53 = vperm.slane %v4533_v45, 0  ;;  %v4662_v55 = vperm.slane %v4534_v3, 0 }
 0x5e3   : > { %v4723_v60 = vsel %vm4667_vm11, %v4660_v5, %v4659_v59  ;;  %v5456_v48 = vrot.slane %v4168_v39, 9  ;;  %v5457_v9 = vrot.slane %v4169_v43, 9  ;;  %v5458_v6 = vrot.slane %v4170_v8, 9 }
 0x5e4   : > { %v4471_v52 = vadd.f32 %v5455_v16, %v4106_v31  ;;  %v4724_v30 = vsel %vm4669_vm12, %v4661_v53, %v4723_v60 }
 0x5e5   : > { %v4472_v57 = vadd.f32 %v5456_v48, %v4168_v39  ;;  %v4473_v19 = vadd.f32 %v5457_v9, %v4169_v43  ;;  %v4474_v35 = vadd.f32 %v5458_v6, %v4170_v8  ;;  %v4725_v61 = vsel %vm4671_vm13, %v4662_v55, %v4724_v30 }
 0x5e6   : > { %v4535_v63 = vmul.f32 0.25, %v4471_v52 }
 0x5e7   : > { %v4536_v28 = vmul.f32 0.25, %v4472_v57  ;;  %v4537_v20 = vmul.f32 0.25, %v4473_v19  ;;  %v4538_v36 = vmul.f32 0.25, %v4474_v35 }
 0x5e8   : > { %v4663_v54 = vperm.slane %v4535_v63, 0 }
 0x5e9   : > { %v4664_v29 = vperm.slane %v4536_v28, 0  ;;  %v4665_v11 = vperm.slane %v4537_v20, 0  ;;  %v4666_v23 = vperm.slane %v4538_v36, 0 }
 0x5ea   : > { %v4726_v33 = vsel %vm4673_vm14, %v4663_v54, %v4725_v61 }
 0x5eb   : > { %v4727_v44 = vsel %vm4675_vm15, %v4664_v29, %v4726_v33 }
 0x5ec   : > { %v4728_v26 = vsel %vm4677_vm0, %v4665_v11, %v4727_v44 }
 0x5ed   : > { %v4729_v38 = vsel %vm4679_vm2, %v4666_v23, %v4728_v26 }
 0x5ee   : > { %4745 = vst.msk [vmem:[%s7959_s19 + $0x38] sm:$0xff] %vm2188_vm3, %v4729_v38 }
 0x5ef PF: > { %s15_s18 = sadd.s32 1, %s5484_s18  }
 0x5f0   : > { %p12_p4 = scmp.ge.s32.totalorder %s15_s18, 4  }
 0x5f2   :  { %14 = sbr.rel (!%p12_p4) target bundleno = 1 (0x1), region = 72 }

</bundles_post_ra>
